<compile_context>
chip_gen: v7x
topology: tpu7x:2x2x1
jax: 0.10.0
libtpu: 0.0.40
codegen_flags: <defaults>
</compile_context>

<pallas_src>
import jax
import jax.numpy as jnp
from jax import lax
from jax.experimental import pallas as pl
from jax.experimental.pallas import tpu as pltpu

LANE = 128


def _round_up(x, m):
    return ((x + m - 1) // m) * m


def _pad_last(a, new):
    cur = a.shape[-1]
    if cur == new:
        return a
    pad = [(0, 0)] * (a.ndim - 1) + [(0, new - cur)]
    return jnp.pad(a, pad)


def _pad_rows(a, new):
    cur = a.shape[0]
    if cur == new:
        return a
    return jnp.pad(a, ((0, new - cur), (0, 0)))


def _gru_recurrent_kernel(gi_ref, whh_ref, bhn_ref, out_ref, h_scr):
    """Serial (recurrent) part of one GRU layer; TBLK timesteps per grid step.

    gi_ref : (TBLK, BC, 3*Hp) precomputed input-side gates (r,z,n; r/z slots
             already hold b_ih + b_hh, n slot holds b_ih only), io dtype.
    whh_ref: (Hp, 3*Hp)  fused hidden->hidden weights (matmul dtype, resident).
    bhn_ref: (1, Hp)     b_hh_n only (must sit inside r * (W_hn h + b_hn)).
    out_ref: (TBLK, BC, Hp) hidden state per timestep of this block (io dtype).
    h_scr  : (BC, Hp) f32 recurrent carry across the sequential time grid axis.
    """
    hp = out_ref.shape[-1]
    tblk = out_ref.shape[0]

    @pl.when(pl.program_id(1) == 0)   # first time block of this batch chunk
    def _():
        h_scr[...] = jnp.zeros_like(h_scr)

    w = whh_ref[...]                          # hoisted out of the timestep loop
    b_hn = bhn_ref[...].astype(jnp.float32)   # (1, Hp)

    def step(s, h):
        gi = gi_ref[s].astype(jnp.float32)                        # (BC, 3Hp)
        gh = jnp.dot(h.astype(w.dtype), w,
                     preferred_element_type=jnp.float32)          # (BC, 3Hp)
        # Hp is a multiple of 128 -> lane-aligned, copy-free gate slices.
        r = jax.nn.sigmoid(gi[:, :hp] + gh[:, :hp])
        z = jax.nn.sigmoid(gi[:, hp:2 * hp] + gh[:, hp:2 * hp])
        n = jnp.tanh(gi[:, 2 * hp:] + r * (gh[:, 2 * hp:] + b_hn))
        h_new = n + z * (h - n)               # == (1 - z) * n + z * h
        out_ref[s] = h_new.astype(out_ref.dtype)
        return h_new

    # fori_loop(unroll=True): LLO visibility with bounded per-step live ranges.
    h_scr[...] = lax.fori_loop(0, tblk, step, h_scr[...], unroll=True)


def gru_layer_pallas(gi, whh_cat, bhn, hp, *, tblk, bchunk, out_dtype,
                     vmem_budget=40 * 1024 * 1024):
    """Run the recurrent part of one GRU layer.

    gi: (T, B, 3*Hp) precomputed input-side gates, time-major. B % bchunk == 0.
    Returns (T, B, Hp) hidden states for every timestep (out_dtype).
    """
    T, B, G = gi.shape
    assert G == 3 * hp and B % bchunk == 0
    tblk = max(1, min(tblk, T))

    def vmem_bytes(tb):
        io = jnp.dtype(out_dtype).itemsize
        return (2 * tb * bchunk * G * jnp.dtype(gi.dtype).itemsize   # gi (2 bufs)
                + 2 * tb * bchunk * hp * io                          # out (2 bufs)
                + hp * G * jnp.dtype(whh_cat.dtype).itemsize         # W_hh (1 buf)
                + hp * 4                                             # b_hn
                + bchunk * hp * 4)                                   # h carry

    # Cap tblk so the working set fits a v7x-safe (~40 MiB) budget.
    while tblk > 1 and vmem_bytes(tblk) > vmem_budget:
        tblk //= 2

    n_t = pl.cdiv(T, tblk)
    t_pad = n_t * tblk
    if t_pad != T:
        # Padded steps see gi = 0 and keep evolving h_scr; their outputs are
        # sliced off below and nothing reads h_scr after the kernel.
        gi = jnp.pad(gi, ((0, t_pad - T), (0, 0), (0, 0)))
    n_b = B // bchunk

    vmem_limit = int(min(max(2 * vmem_bytes(tblk) + (4 << 20), 16 << 20), 48 << 20))

    out = pl.pallas_call(
        _gru_recurrent_kernel,
        out_shape=jax.ShapeDtypeStruct((t_pad, B, hp), out_dtype),
        grid_spec=pltpu.PrefetchScalarGridSpec(
            num_scalar_prefetch=0,
            grid=(n_b, n_t),
            in_specs=[
                pl.BlockSpec((tblk, bchunk, G), lambda b, t: (t, b, 0)),
                # Constant index maps -> single resident buffer (no wasted
                # double-buffering of the weights / bias).
                pl.BlockSpec((hp, G), lambda b, t: (0, 0),
                             pipeline_mode=pl.Buffered(1)),
                pl.BlockSpec((1, hp), lambda b, t: (0, 0),
                             pipeline_mode=pl.Buffered(1)),
            ],
            out_specs=pl.BlockSpec((tblk, bchunk, hp), lambda b, t: (t, b, 0)),
            scratch_shapes=[pltpu.VMEM((bchunk, hp), jnp.float32)],
        ),
        compiler_params=pltpu.CompilerParams(
            # Batch chunks are independent ("parallel": shards across v7x's two
            # TensorCores / megacore); time is a recurrence and must stay
            # "arbitrary" so the h_scr carry is sequential.
            dimension_semantics=("parallel", "arbitrary"),
            vmem_limit_bytes=vmem_limit,
        ),
    )(gi, whh_cat, bhn)
    return out[:T]


def prepare_params(raw_params, matmul_dtype=jnp.bfloat16):
    """Fold raw per-gate GRUCell params into the fused, lane-padded layout.

    Per layer: (wih_cat:(Din,3Hp), whh_cat:(Hp,3Hp), bi_fold:(1,3Hp), bh_n:(1,Hp))
    with Hp = round_up(H, 128); each gate's hidden dim is zero-padded so r/z/n
    slices are lane-aligned and padded lanes stay exactly zero.
    Call once, outside jit.
    """
    H = raw_params[0][1].shape[-1]
    hp = _round_up(H, LANE)
    prepared = []
    for li, (wih, whh, bih, bhh) in enumerate(raw_params):
        wih_g = [_pad_last(wih[g], hp) for g in range(3)]       # (Din, Hp)
        whh_g = [_pad_rows(_pad_last(whh[g], hp), hp) for g in range(3)]  # (Hp, Hp)
        if li > 0:
            wih_g = [_pad_rows(w, hp) for w in wih_g]           # layer input is Hp wide
        wih_cat = jnp.concatenate(wih_g, axis=-1).astype(matmul_dtype)   # (Din, 3Hp)
        whh_cat = jnp.concatenate(whh_g, axis=-1).astype(matmul_dtype)   # (Hp, 3Hp)
        # r/z hidden biases fold into the hoisted input projection; b_hh_n must
        # stay inside r * (W_hn h + b_hn), so it is passed to the kernel alone.
        bi_fold = jnp.concatenate(
            [_pad_last(bih[0] + bhh[0], hp),
             _pad_last(bih[1] + bhh[1], hp),
             _pad_last(bih[2], hp)], axis=-1).astype(jnp.float32)        # (1, 3Hp)
        bh_n = _pad_last(bhh[2], hp).astype(jnp.float32)                 # (1, Hp)
        prepared.append((wih_cat, whh_cat, bi_fold, bh_n))
    return prepared, hp


def build_gru_encoder(hidden_size, hp, *, io_dtype=jnp.bfloat16, tblk=32,
                      bchunk_max=128):
    """Returns forward(x_btd, prepared) -> (out:(B,T,H), h:(L,B,H)), both f32."""
    sublane = 8 * (4 // jnp.dtype(io_dtype).itemsize)   # 8 for f32, 16 for bf16

    def forward(x_btd, prepared):
        B, T, _ = x_btd.shape
        # Pad batch to a sublane multiple (and a multiple of the batch chunk):
        # fills MXU rows / vreg sublanes and keeps output stores unmasked.
        b_pad = _round_up(max(B, sublane), sublane)
        bchunk = min(b_pad, bchunk_max)
        b_pad = _round_up(b_pad, bchunk)
        if b_pad != B:
            x_btd = jnp.pad(x_btd, ((0, b_pad - B), (0, 0), (0, 0)))
        # Single (B,T,D)->(T,B,D) transpose at entry; stays time-major between layers.
        layer_in = jnp.transpose(x_btd, (1, 0, 2)).astype(io_dtype)
        h_finals = []
        for (wih_cat, whh_cat, bi_fold, bh_n) in prepared:
            # Hoisted input projection: fully parallel over time, one big MXU
            # matmul in XLA with f32 accumulation, streamed to the kernel in
            # io_dtype (bf16 halves the dominant gi HBM traffic).
            # TODO(synk): for large H, fuse this projection into the Pallas
            # kernel per time block (wih_cat resident in VMEM) to remove the gi
            # HBM round trip entirely, budget permitting on v7x's 64 MiB VMEM.
            gi = (jnp.einsum('tbd,dg->tbg', layer_in, wih_cat,
                             preferred_element_type=jnp.float32)
                  + bi_fold).astype(io_dtype)                          # (T, Bp, 3Hp)
            layer_out = gru_layer_pallas(gi, whh_cat, bh_n, hp,
                                         tblk=tblk, bchunk=bchunk,
                                         out_dtype=io_dtype)           # (T, Bp, Hp)
            h_finals.append(layer_out[-1])                             # (Bp, Hp)
            layer_in = layer_out                    # stays time-major between layers
        out = jnp.transpose(layer_in, (1, 0, 2))[:B, :, :hidden_size]
        h = jnp.stack(h_finals, axis=0)[:, :B, :hidden_size]
        return out.astype(jnp.float32), h.astype(jnp.float32)

    return forward


def init_params(key, input_size, hidden_size, num_layers):
    """Deterministic raw GRUCell params: gate-major (r, z, n), weights (D, H)."""
    params = []
    d = input_size
    bound = 1.0 / jnp.sqrt(jnp.float32(hidden_size))
    for _ in range(num_layers):
        key, k1, k2, k3, k4 = jax.random.split(key, 5)
        wih = jax.random.uniform(k1, (3, d, hidden_size), jnp.float32, -bound, bound)
        whh = jax.random.uniform(k2, (3, hidden_size, hidden_size), jnp.float32, -bound, bound)
        bih = jax.random.uniform(k3, (3, 1, hidden_size), jnp.float32, -bound, bound)
        bhh = jax.random.uniform(k4, (3, 1, hidden_size), jnp.float32, -bound, bound)
        params.append((wih, whh, bih, bhh))
        d = hidden_size
    return params


def gru_encoder_reference(x_btd, raw_params):
    """Pure-JAX reference mirroring the PyTorch loop (for correctness check)."""
    B, T, _ = x_btd.shape
    H = raw_params[0][1].shape[-1]
    h_n = [jnp.zeros((B, H), jnp.float32) for _ in raw_params]
    outs = []
    for i in range(T):
        x_i = x_btd[:, i, :]
        for j, (wih, whh, bih, bhh) in enumerate(raw_params):
            h = h_n[j]
            gi = [x_i @ wih[g] + bih[g] for g in range(3)]
            gh = [h @ whh[g] + bhh[g] for g in range(3)]
            r = jax.nn.sigmoid(gi[0] + gh[0])
            z = jax.nn.sigmoid(gi[1] + gh[1])
            n = jnp.tanh(gi[2] + r * gh[2])
            x_i = (1.0 - z) * n + z * h
            h_n[j] = x_i
        outs.append(x_i)
    return jnp.stack(outs, axis=1), jnp.stack(h_n, axis=0)


if __name__ == "__main__":
    B, T, input_size, hidden_size, num_layers = 2, 8, 16, 32, 2

    key = jax.random.PRNGKey(0)
    kx, kp = jax.random.split(key)
    x = jax.random.normal(kx, (B, T, input_size), jnp.float32)
    raw_params = init_params(kp, input_size, hidden_size, num_layers)

    out_ref, h_ref = gru_encoder_reference(x, raw_params)

    # --- f32 configuration: strict semantics check vs. the reference. ---
    prep_f32, hp = prepare_params(raw_params, matmul_dtype=jnp.float32)
    fwd_f32 = jax.jit(build_gru_encoder(hidden_size, hp,
                                        io_dtype=jnp.float32, tblk=8))
    out32, h32 = jax.block_until_ready(fwd_f32(x, prep_f32))
    assert out32.shape == (B, T, hidden_size)
    assert h32.shape == (num_layers, B, hidden_size)
    assert jnp.allclose(out32, out_ref, atol=1e-4, rtol=1e-4), \
        float(jnp.max(jnp.abs(out32 - out_ref)))
    assert jnp.allclose(h32, h_ref, atol=1e-4, rtol=1e-4), \
        float(jnp.max(jnp.abs(h32 - h_ref)))

    # --- bf16 configuration: production perf mode (bf16 weights / gi / layer
    #     outputs; f32 MXU accumulation and f32 recurrent carry). ---
    prep_bf, hp = prepare_params(raw_params, matmul_dtype=jnp.bfloat16)
    fwd_bf = jax.jit(build_gru_encoder(hidden_size, hp,
                                       io_dtype=jnp.bfloat16, tblk=8))
    outbf, hbf = jax.block_until_ready(fwd_bf(x, prep_bf))
    assert outbf.shape == (B, T, hidden_size)
    assert hbf.shape == (num_layers, B, hidden_size)
    assert jnp.allclose(outbf, out_ref, atol=8e-2, rtol=5e-2), \
        float(jnp.max(jnp.abs(outbf - out_ref)))
    assert jnp.allclose(hbf, h_ref, atol=8e-2, rtol=5e-2), \
        float(jnp.max(jnp.abs(hbf - h_ref)))

    print("KERNEL_OK")
</pallas_src>

<mosaic_0001>
module attributes {stable_mosaic.version = 11 : i64} {
  func.func @_gru_recurrent_kernel(%arg0: i32, %arg1: i32, %arg2: memref<8x8x384xf32, #tpu.memory_space<vmem>>, %arg3: memref<128x384xf32, #tpu.memory_space<vmem>>, %arg4: memref<1x128xf32, #tpu.memory_space<vmem>>, %arg5: memref<8x8x128xf32, #tpu.memory_space<vmem>>, %arg6: memref<8x128xf32, #tpu.memory_space<vmem>>) attributes {dimension_semantics = [#tpu.dimension_semantics<parallel>, #tpu.dimension_semantics<arbitrary>], iteration_bounds = array<i64: 1, 1>, scalar_prefetch = 0 : i64, scratch_operands = 1 : i64, tpu.core_type = #tpu.core_type<tc>, window_params = [{transform_indices = @transform_0, window_bounds = array<i64: 8, 8, 384>}, {pipeline_mode = #tpu.pipeline_mode<synchronous>, transform_indices = @transform_1, window_bounds = array<i64: 128, 384>}, {pipeline_mode = #tpu.pipeline_mode<synchronous>, transform_indices = @transform_2, window_bounds = array<i64: 1, 128>}, {transform_indices = @transform_3, window_bounds = array<i64: 8, 8, 128>}]} {
    %c0_i32 = arith.constant 0 : i32
    %0 = arith.cmpi eq, %arg1, %c0_i32 : i32
    %1 = arith.extui %0 : i1 to i32
    %c0_i32_0 = arith.constant 0 : i32
    %2 = arith.cmpi ne, %1, %c0_i32_0 : i32
    scf.if %2 {
      %cst_64 = arith.constant 0.000000e+00 : f32
      %279 = vector.broadcast %cst_64 : f32 to vector<8x128xf32>
      %c0_65 = arith.constant 0 : index
      %c0_66 = arith.constant 0 : index
      %280 = vector.load %arg6[%c0_65, %c0_66] : memref<8x128xf32, #tpu.memory_space<vmem>>, vector<8x128xf32>
      tpu.vector_store %arg6[%c0_65, %c0_66], %279 {strides = array<i32>} : memref<8x128xf32, #tpu.memory_space<vmem>>, vector<8x128xf32>,
    } else {
    }
    %c0 = arith.constant 0 : index
    %c0_1 = arith.constant 0 : index
    %3 = vector.load %arg3[%c0, %c0_1] : memref<128x384xf32, #tpu.memory_space<vmem>>, vector<128x384xf32>
    %c0_2 = arith.constant 0 : index
    %c0_3 = arith.constant 0 : index
    %4 = vector.load %arg4[%c0_2, %c0_3] : memref<1x128xf32, #tpu.memory_space<vmem>>, vector<1x128xf32>
    %c0_4 = arith.constant 0 : index
    %c0_5 = arith.constant 0 : index
    %5 = vector.load %arg6[%c0_4, %c0_5] : memref<8x128xf32, #tpu.memory_space<vmem>>, vector<8x128xf32>
    %c0_i32_6 = arith.constant 0 : i32
    %6 = arith.index_cast %c0_i32_6 : i32 to index
    %c0_7 = arith.constant 0 : index
    %c0_8 = arith.constant 0 : index
    %7 = vector.load %arg2[%6, %c0_7, %c0_8] : memref<8x8x384xf32, #tpu.memory_space<vmem>>, vector<1x8x384xf32>
    %8 = vector.shape_cast %7 : vector<1x8x384xf32> to vector<8x384xf32>
    %cst = arith.constant dense<0.000000e+00> : vector<8x384xf32>
    %9 = tpu.matmul %5, %3, %cst {dimension_numbers = #tpu.dot_dimension_numbers<[1], [0], [0], [1], [0, 0, 1, 1], [], []>} : vector<8x128xf32>, vector<128x384xf32>, vector<8x384xf32> -> vector<8x384xf32>
    %10 = vector.extract_strided_slice %8 {offsets = [0, 0], sizes = [8, 128], strides = [1, 1]} : vector<8x384xf32> to vector<8x128xf32>
    %11 = vector.extract_strided_slice %9 {offsets = [0, 0], sizes = [8, 128], strides = [1, 1]} : vector<8x384xf32> to vector<8x128xf32>
    %12 = arith.addf %10, %11 : vector<8x128xf32>
    %13 = arith.negf %12 : vector<8x128xf32>
    %14 = math.exp %13 : vector<8x128xf32>
    %cst_9 = arith.constant 1.000000e+00 : f32
    %15 = vector.broadcast %cst_9 : f32 to vector<8x128xf32>
    %16 = arith.addf %15, %14 : vector<8x128xf32>
    %17 = arith.divf %15, %16 : vector<8x128xf32>
    %18 = vector.extract_strided_slice %8 {offsets = [0, 128], sizes = [8, 128], strides = [1, 1]} : vector<8x384xf32> to vector<8x128xf32>
    %19 = vector.extract_strided_slice %9 {offsets = [0, 128], sizes = [8, 128], strides = [1, 1]} : vector<8x384xf32> to vector<8x128xf32>
    %20 = arith.addf %18, %19 : vector<8x128xf32>
    %21 = arith.negf %20 : vector<8x128xf32>
    %22 = math.exp %21 : vector<8x128xf32>
    %cst_10 = arith.constant 1.000000e+00 : f32
    %23 = vector.broadcast %cst_10 : f32 to vector<8x128xf32>
    %24 = arith.addf %23, %22 : vector<8x128xf32>
    %25 = arith.divf %23, %24 : vector<8x128xf32>
    %26 = vector.extract_strided_slice %8 {offsets = [0, 256], sizes = [8, 128], strides = [1, 1]} : vector<8x384xf32> to vector<8x128xf32>
    %27 = vector.extract_strided_slice %9 {offsets = [0, 256], sizes = [8, 128], strides = [1, 1]} : vector<8x384xf32> to vector<8x128xf32>
    %28 = vector.broadcast %4 : vector<1x128xf32> to vector<8x128xf32>
    %29 = arith.addf %27, %28 : vector<8x128xf32>
    %30 = arith.mulf %17, %29 : vector<8x128xf32>
    %31 = arith.addf %26, %30 : vector<8x128xf32>
    %32 = math.tanh %31 : vector<8x128xf32>
    %33 = arith.subf %5, %32 : vector<8x128xf32>
    %34 = arith.mulf %25, %33 : vector<8x128xf32>
    %35 = arith.addf %32, %34 : vector<8x128xf32>
    %36 = arith.index_cast %c0_i32_6 : i32 to index
    %c0_11 = arith.constant 0 : index
    %c0_12 = arith.constant 0 : index
    %37 = vector.load %arg5[%36, %c0_11, %c0_12] : memref<8x8x128xf32, #tpu.memory_space<vmem>>, vector<1x8x128xf32>
    %38 = vector.shape_cast %37 : vector<1x8x128xf32> to vector<8x128xf32>
    %39 = vector.shape_cast %35 : vector<8x128xf32> to vector<1x8x128xf32>
    tpu.vector_store %arg5[%36, %c0_11, %c0_12], %39 {strides = array<i32>} : memref<8x8x128xf32, #tpu.memory_space<vmem>>, vector<1x8x128xf32>,
    %c1_i32 = arith.constant 1 : i32
    %40 = arith.index_cast %c1_i32 : i32 to index
    %c0_13 = arith.constant 0 : index
    %c0_14 = arith.constant 0 : index
    %41 = vector.load %arg2[%40, %c0_13, %c0_14] : memref<8x8x384xf32, #tpu.memory_space<vmem>>, vector<1x8x384xf32>
    %42 = vector.shape_cast %41 : vector<1x8x384xf32> to vector<8x384xf32>
    %cst_15 = arith.constant dense<0.000000e+00> : vector<8x384xf32>
    %43 = tpu.matmul %35, %3, %cst_15 {dimension_numbers = #tpu.dot_dimension_numbers<[1], [0], [0], [1], [0, 0, 1, 1], [], []>} : vector<8x128xf32>, vector<128x384xf32>, vector<8x384xf32> -> vector<8x384xf32>
    %44 = vector.extract_strided_slice %42 {offsets = [0, 0], sizes = [8, 128], strides = [1, 1]} : vector<8x384xf32> to vector<8x128xf32>
    %45 = vector.extract_strided_slice %43 {offsets = [0, 0], sizes = [8, 128], strides = [1, 1]} : vector<8x384xf32> to vector<8x128xf32>
    %46 = arith.addf %44, %45 : vector<8x128xf32>
    %47 = arith.negf %46 : vector<8x128xf32>
    %48 = math.exp %47 : vector<8x128xf32>
    %cst_16 = arith.constant 1.000000e+00 : f32
    %49 = vector.broadcast %cst_16 : f32 to vector<8x128xf32>
    %50 = arith.addf %49, %48 : vector<8x128xf32>
    %51 = arith.divf %49, %50 : vector<8x128xf32>
    %52 = vector.extract_strided_slice %42 {offsets = [0, 128], sizes = [8, 128], strides = [1, 1]} : vector<8x384xf32> to vector<8x128xf32>
    %53 = vector.extract_strided_slice %43 {offsets = [0, 128], sizes = [8, 128], strides = [1, 1]} : vector<8x384xf32> to vector<8x128xf32>
    %54 = arith.addf %52, %53 : vector<8x128xf32>
    %55 = arith.negf %54 : vector<8x128xf32>
    %56 = math.exp %55 : vector<8x128xf32>
    %cst_17 = arith.constant 1.000000e+00 : f32
    %57 = vector.broadcast %cst_17 : f32 to vector<8x128xf32>
    %58 = arith.addf %57, %56 : vector<8x128xf32>
    %59 = arith.divf %57, %58 : vector<8x128xf32>
    %60 = vector.extract_strided_slice %42 {offsets = [0, 256], sizes = [8, 128], strides = [1, 1]} : vector<8x384xf32> to vector<8x128xf32>
    %61 = vector.extract_strided_slice %43 {offsets = [0, 256], sizes = [8, 128], strides = [1, 1]} : vector<8x384xf32> to vector<8x128xf32>
    %62 = vector.broadcast %4 : vector<1x128xf32> to vector<8x128xf32>
    %63 = arith.addf %61, %62 : vector<8x128xf32>
    %64 = arith.mulf %51, %63 : vector<8x128xf32>
    %65 = arith.addf %60, %64 : vector<8x128xf32>
    %66 = math.tanh %65 : vector<8x128xf32>
    %67 = arith.subf %35, %66 : vector<8x128xf32>
    %68 = arith.mulf %59, %67 : vector<8x128xf32>
    %69 = arith.addf %66, %68 : vector<8x128xf32>
    %70 = arith.index_cast %c1_i32 : i32 to index
    %c0_18 = arith.constant 0 : index
    %c0_19 = arith.constant 0 : index
    %71 = vector.load %arg5[%70, %c0_18, %c0_19] : memref<8x8x128xf32, #tpu.memory_space<vmem>>, vector<1x8x128xf32>
    %72 = vector.shape_cast %71 : vector<1x8x128xf32> to vector<8x128xf32>
    %73 = vector.shape_cast %69 : vector<8x128xf32> to vector<1x8x128xf32>
    tpu.vector_store %arg5[%70, %c0_18, %c0_19], %73 {strides = array<i32>} : memref<8x8x128xf32, #tpu.memory_space<vmem>>, vector<1x8x128xf32>,
    %c2_i32 = arith.constant 2 : i32
    %74 = arith.index_cast %c2_i32 : i32 to index
    %c0_20 = arith.constant 0 : index
    %c0_21 = arith.constant 0 : index
    %75 = vector.load %arg2[%74, %c0_20, %c0_21] : memref<8x8x384xf32, #tpu.memory_space<vmem>>, vector<1x8x384xf32>
    %76 = vector.shape_cast %75 : vector<1x8x384xf32> to vector<8x384xf32>
    %cst_22 = arith.constant dense<0.000000e+00> : vector<8x384xf32>
    %77 = tpu.matmul %69, %3, %cst_22 {dimension_numbers = #tpu.dot_dimension_numbers<[1], [0], [0], [1], [0, 0, 1, 1], [], []>} : vector<8x128xf32>, vector<128x384xf32>, vector<8x384xf32> -> vector<8x384xf32>
    %78 = vector.extract_strided_slice %76 {offsets = [0, 0], sizes = [8, 128], strides = [1, 1]} : vector<8x384xf32> to vector<8x128xf32>
    %79 = vector.extract_strided_slice %77 {offsets = [0, 0], sizes = [8, 128], strides = [1, 1]} : vector<8x384xf32> to vector<8x128xf32>
    %80 = arith.addf %78, %79 : vector<8x128xf32>
    %81 = arith.negf %80 : vector<8x128xf32>
    %82 = math.exp %81 : vector<8x128xf32>
    %cst_23 = arith.constant 1.000000e+00 : f32
    %83 = vector.broadcast %cst_23 : f32 to vector<8x128xf32>
    %84 = arith.addf %83, %82 : vector<8x128xf32>
    %85 = arith.divf %83, %84 : vector<8x128xf32>
    %86 = vector.extract_strided_slice %76 {offsets = [0, 128], sizes = [8, 128], strides = [1, 1]} : vector<8x384xf32> to vector<8x128xf32>
    %87 = vector.extract_strided_slice %77 {offsets = [0, 128], sizes = [8, 128], strides = [1, 1]} : vector<8x384xf32> to vector<8x128xf32>
    %88 = arith.addf %86, %87 : vector<8x128xf32>
    %89 = arith.negf %88 : vector<8x128xf32>
    %90 = math.exp %89 : vector<8x128xf32>
    %cst_24 = arith.constant 1.000000e+00 : f32
    %91 = vector.broadcast %cst_24 : f32 to vector<8x128xf32>
    %92 = arith.addf %91, %90 : vector<8x128xf32>
    %93 = arith.divf %91, %92 : vector<8x128xf32>
    %94 = vector.extract_strided_slice %76 {offsets = [0, 256], sizes = [8, 128], strides = [1, 1]} : vector<8x384xf32> to vector<8x128xf32>
    %95 = vector.extract_strided_slice %77 {offsets = [0, 256], sizes = [8, 128], strides = [1, 1]} : vector<8x384xf32> to vector<8x128xf32>
    %96 = vector.broadcast %4 : vector<1x128xf32> to vector<8x128xf32>
    %97 = arith.addf %95, %96 : vector<8x128xf32>
    %98 = arith.mulf %85, %97 : vector<8x128xf32>
    %99 = arith.addf %94, %98 : vector<8x128xf32>
    %100 = math.tanh %99 : vector<8x128xf32>
    %101 = arith.subf %69, %100 : vector<8x128xf32>
    %102 = arith.mulf %93, %101 : vector<8x128xf32>
    %103 = arith.addf %100, %102 : vector<8x128xf32>
    %104 = arith.index_cast %c2_i32 : i32 to index
    %c0_25 = arith.constant 0 : index
    %c0_26 = arith.constant 0 : index
    %105 = vector.load %arg5[%104, %c0_25, %c0_26] : memref<8x8x128xf32, #tpu.memory_space<vmem>>, vector<1x8x128xf32>
    %106 = vector.shape_cast %105 : vector<1x8x128xf32> to vector<8x128xf32>
    %107 = vector.shape_cast %103 : vector<8x128xf32> to vector<1x8x128xf32>
    tpu.vector_store %arg5[%104, %c0_25, %c0_26], %107 {strides = array<i32>} : memref<8x8x128xf32, #tpu.memory_space<vmem>>, vector<1x8x128xf32>,
    %c3_i32 = arith.constant 3 : i32
    %108 = arith.index_cast %c3_i32 : i32 to index
    %c0_27 = arith.constant 0 : index
    %c0_28 = arith.constant 0 : index
    %109 = vector.load %arg2[%108, %c0_27, %c0_28] : memref<8x8x384xf32, #tpu.memory_space<vmem>>, vector<1x8x384xf32>
    %110 = vector.shape_cast %109 : vector<1x8x384xf32> to vector<8x384xf32>
    %cst_29 = arith.constant dense<0.000000e+00> : vector<8x384xf32>
    %111 = tpu.matmul %103, %3, %cst_29 {dimension_numbers = #tpu.dot_dimension_numbers<[1], [0], [0], [1], [0, 0, 1, 1], [], []>} : vector<8x128xf32>, vector<128x384xf32>, vector<8x384xf32> -> vector<8x384xf32>
    %112 = vector.extract_strided_slice %110 {offsets = [0, 0], sizes = [8, 128], strides = [1, 1]} : vector<8x384xf32> to vector<8x128xf32>
    %113 = vector.extract_strided_slice %111 {offsets = [0, 0], sizes = [8, 128], strides = [1, 1]} : vector<8x384xf32> to vector<8x128xf32>
    %114 = arith.addf %112, %113 : vector<8x128xf32>
    %115 = arith.negf %114 : vector<8x128xf32>
    %116 = math.exp %115 : vector<8x128xf32>
    %cst_30 = arith.constant 1.000000e+00 : f32
    %117 = vector.broadcast %cst_30 : f32 to vector<8x128xf32>
    %118 = arith.addf %117, %116 : vector<8x128xf32>
    %119 = arith.divf %117, %118 : vector<8x128xf32>
    %120 = vector.extract_strided_slice %110 {offsets = [0, 128], sizes = [8, 128], strides = [1, 1]} : vector<8x384xf32> to vector<8x128xf32>
    %121 = vector.extract_strided_slice %111 {offsets = [0, 128], sizes = [8, 128], strides = [1, 1]} : vector<8x384xf32> to vector<8x128xf32>
    %122 = arith.addf %120, %121 : vector<8x128xf32>
    %123 = arith.negf %122 : vector<8x128xf32>
    %124 = math.exp %123 : vector<8x128xf32>
    %cst_31 = arith.constant 1.000000e+00 : f32
    %125 = vector.broadcast %cst_31 : f32 to vector<8x128xf32>
    %126 = arith.addf %125, %124 : vector<8x128xf32>
    %127 = arith.divf %125, %126 : vector<8x128xf32>
    %128 = vector.extract_strided_slice %110 {offsets = [0, 256], sizes = [8, 128], strides = [1, 1]} : vector<8x384xf32> to vector<8x128xf32>
    %129 = vector.extract_strided_slice %111 {offsets = [0, 256], sizes = [8, 128], strides = [1, 1]} : vector<8x384xf32> to vector<8x128xf32>
    %130 = vector.broadcast %4 : vector<1x128xf32> to vector<8x128xf32>
    %131 = arith.addf %129, %130 : vector<8x128xf32>
    %132 = arith.mulf %119, %131 : vector<8x128xf32>
    %133 = arith.addf %128, %132 : vector<8x128xf32>
    %134 = math.tanh %133 : vector<8x128xf32>
    %135 = arith.subf %103, %134 : vector<8x128xf32>
    %136 = arith.mulf %127, %135 : vector<8x128xf32>
    %137 = arith.addf %134, %136 : vector<8x128xf32>
    %138 = arith.index_cast %c3_i32 : i32 to index
    %c0_32 = arith.constant 0 : index
    %c0_33 = arith.constant 0 : index
    %139 = vector.load %arg5[%138, %c0_32, %c0_33] : memref<8x8x128xf32, #tpu.memory_space<vmem>>, vector<1x8x128xf32>
    %140 = vector.shape_cast %139 : vector<1x8x128xf32> to vector<8x128xf32>
    %141 = vector.shape_cast %137 : vector<8x128xf32> to vector<1x8x128xf32>
    tpu.vector_store %arg5[%138, %c0_32, %c0_33], %141 {strides = array<i32>} : memref<8x8x128xf32, #tpu.memory_space<vmem>>, vector<1x8x128xf32>,
    %c4_i32 = arith.constant 4 : i32
    %142 = arith.index_cast %c4_i32 : i32 to index
    %c0_34 = arith.constant 0 : index
    %c0_35 = arith.constant 0 : index
    %143 = vector.load %arg2[%142, %c0_34, %c0_35] : memref<8x8x384xf32, #tpu.memory_space<vmem>>, vector<1x8x384xf32>
    %144 = vector.shape_cast %143 : vector<1x8x384xf32> to vector<8x384xf32>
    %cst_36 = arith.constant dense<0.000000e+00> : vector<8x384xf32>
    %145 = tpu.matmul %137, %3, %cst_36 {dimension_numbers = #tpu.dot_dimension_numbers<[1], [0], [0], [1], [0, 0, 1, 1], [], []>} : vector<8x128xf32>, vector<128x384xf32>, vector<8x384xf32> -> vector<8x384xf32>
    %146 = vector.extract_strided_slice %144 {offsets = [0, 0], sizes = [8, 128], strides = [1, 1]} : vector<8x384xf32> to vector<8x128xf32>
    %147 = vector.extract_strided_slice %145 {offsets = [0, 0], sizes = [8, 128], strides = [1, 1]} : vector<8x384xf32> to vector<8x128xf32>
    %148 = arith.addf %146, %147 : vector<8x128xf32>
    %149 = arith.negf %148 : vector<8x128xf32>
    %150 = math.exp %149 : vector<8x128xf32>
    %cst_37 = arith.constant 1.000000e+00 : f32
    %151 = vector.broadcast %cst_37 : f32 to vector<8x128xf32>
    %152 = arith.addf %151, %150 : vector<8x128xf32>
    %153 = arith.divf %151, %152 : vector<8x128xf32>
    %154 = vector.extract_strided_slice %144 {offsets = [0, 128], sizes = [8, 128], strides = [1, 1]} : vector<8x384xf32> to vector<8x128xf32>
    %155 = vector.extract_strided_slice %145 {offsets = [0, 128], sizes = [8, 128], strides = [1, 1]} : vector<8x384xf32> to vector<8x128xf32>
    %156 = arith.addf %154, %155 : vector<8x128xf32>
    %157 = arith.negf %156 : vector<8x128xf32>
    %158 = math.exp %157 : vector<8x128xf32>
    %cst_38 = arith.constant 1.000000e+00 : f32
    %159 = vector.broadcast %cst_38 : f32 to vector<8x128xf32>
    %160 = arith.addf %159, %158 : vector<8x128xf32>
    %161 = arith.divf %159, %160 : vector<8x128xf32>
    %162 = vector.extract_strided_slice %144 {offsets = [0, 256], sizes = [8, 128], strides = [1, 1]} : vector<8x384xf32> to vector<8x128xf32>
    %163 = vector.extract_strided_slice %145 {offsets = [0, 256], sizes = [8, 128], strides = [1, 1]} : vector<8x384xf32> to vector<8x128xf32>
    %164 = vector.broadcast %4 : vector<1x128xf32> to vector<8x128xf32>
    %165 = arith.addf %163, %164 : vector<8x128xf32>
    %166 = arith.mulf %153, %165 : vector<8x128xf32>
    %167 = arith.addf %162, %166 : vector<8x128xf32>
    %168 = math.tanh %167 : vector<8x128xf32>
    %169 = arith.subf %137, %168 : vector<8x128xf32>
    %170 = arith.mulf %161, %169 : vector<8x128xf32>
    %171 = arith.addf %168, %170 : vector<8x128xf32>
    %172 = arith.index_cast %c4_i32 : i32 to index
    %c0_39 = arith.constant 0 : index
    %c0_40 = arith.constant 0 : index
    %173 = vector.load %arg5[%172, %c0_39, %c0_40] : memref<8x8x128xf32, #tpu.memory_space<vmem>>, vector<1x8x128xf32>
    %174 = vector.shape_cast %173 : vector<1x8x128xf32> to vector<8x128xf32>
    %175 = vector.shape_cast %171 : vector<8x128xf32> to vector<1x8x128xf32>
    tpu.vector_store %arg5[%172, %c0_39, %c0_40], %175 {strides = array<i32>} : memref<8x8x128xf32, #tpu.memory_space<vmem>>, vector<1x8x128xf32>,
    %c5_i32 = arith.constant 5 : i32
    %176 = arith.index_cast %c5_i32 : i32 to index
    %c0_41 = arith.constant 0 : index
    %c0_42 = arith.constant 0 : index
    %177 = vector.load %arg2[%176, %c0_41, %c0_42] : memref<8x8x384xf32, #tpu.memory_space<vmem>>, vector<1x8x384xf32>
    %178 = vector.shape_cast %177 : vector<1x8x384xf32> to vector<8x384xf32>
    %cst_43 = arith.constant dense<0.000000e+00> : vector<8x384xf32>
    %179 = tpu.matmul %171, %3, %cst_43 {dimension_numbers = #tpu.dot_dimension_numbers<[1], [0], [0], [1], [0, 0, 1, 1], [], []>} : vector<8x128xf32>, vector<128x384xf32>, vector<8x384xf32> -> vector<8x384xf32>
    %180 = vector.extract_strided_slice %178 {offsets = [0, 0], sizes = [8, 128], strides = [1, 1]} : vector<8x384xf32> to vector<8x128xf32>
    %181 = vector.extract_strided_slice %179 {offsets = [0, 0], sizes = [8, 128], strides = [1, 1]} : vector<8x384xf32> to vector<8x128xf32>
    %182 = arith.addf %180, %181 : vector<8x128xf32>
    %183 = arith.negf %182 : vector<8x128xf32>
    %184 = math.exp %183 : vector<8x128xf32>
    %cst_44 = arith.constant 1.000000e+00 : f32
    %185 = vector.broadcast %cst_44 : f32 to vector<8x128xf32>
    %186 = arith.addf %185, %184 : vector<8x128xf32>
    %187 = arith.divf %185, %186 : vector<8x128xf32>
    %188 = vector.extract_strided_slice %178 {offsets = [0, 128], sizes = [8, 128], strides = [1, 1]} : vector<8x384xf32> to vector<8x128xf32>
    %189 = vector.extract_strided_slice %179 {offsets = [0, 128], sizes = [8, 128], strides = [1, 1]} : vector<8x384xf32> to vector<8x128xf32>
    %190 = arith.addf %188, %189 : vector<8x128xf32>
    %191 = arith.negf %190 : vector<8x128xf32>
    %192 = math.exp %191 : vector<8x128xf32>
    %cst_45 = arith.constant 1.000000e+00 : f32
    %193 = vector.broadcast %cst_45 : f32 to vector<8x128xf32>
    %194 = arith.addf %193, %192 : vector<8x128xf32>
    %195 = arith.divf %193, %194 : vector<8x128xf32>
    %196 = vector.extract_strided_slice %178 {offsets = [0, 256], sizes = [8, 128], strides = [1, 1]} : vector<8x384xf32> to vector<8x128xf32>
    %197 = vector.extract_strided_slice %179 {offsets = [0, 256], sizes = [8, 128], strides = [1, 1]} : vector<8x384xf32> to vector<8x128xf32>
    %198 = vector.broadcast %4 : vector<1x128xf32> to vector<8x128xf32>
    %199 = arith.addf %197, %198 : vector<8x128xf32>
    %200 = arith.mulf %187, %199 : vector<8x128xf32>
    %201 = arith.addf %196, %200 : vector<8x128xf32>
    %202 = math.tanh %201 : vector<8x128xf32>
    %203 = arith.subf %171, %202 : vector<8x128xf32>
    %204 = arith.mulf %195, %203 : vector<8x128xf32>
    %205 = arith.addf %202, %204 : vector<8x128xf32>
    %206 = arith.index_cast %c5_i32 : i32 to index
    %c0_46 = arith.constant 0 : index
    %c0_47 = arith.constant 0 : index
    %207 = vector.load %arg5[%206, %c0_46, %c0_47] : memref<8x8x128xf32, #tpu.memory_space<vmem>>, vector<1x8x128xf32>
    %208 = vector.shape_cast %207 : vector<1x8x128xf32> to vector<8x128xf32>
    %209 = vector.shape_cast %205 : vector<8x128xf32> to vector<1x8x128xf32>
    tpu.vector_store %arg5[%206, %c0_46, %c0_47], %209 {strides = array<i32>} : memref<8x8x128xf32, #tpu.memory_space<vmem>>, vector<1x8x128xf32>,
    %c6_i32 = arith.constant 6 : i32
    %210 = arith.index_cast %c6_i32 : i32 to index
    %c0_48 = arith.constant 0 : index
    %c0_49 = arith.constant 0 : index
    %211 = vector.load %arg2[%210, %c0_48, %c0_49] : memref<8x8x384xf32, #tpu.memory_space<vmem>>, vector<1x8x384xf32>
    %212 = vector.shape_cast %211 : vector<1x8x384xf32> to vector<8x384xf32>
    %cst_50 = arith.constant dense<0.000000e+00> : vector<8x384xf32>
    %213 = tpu.matmul %205, %3, %cst_50 {dimension_numbers = #tpu.dot_dimension_numbers<[1], [0], [0], [1], [0, 0, 1, 1], [], []>} : vector<8x128xf32>, vector<128x384xf32>, vector<8x384xf32> -> vector<8x384xf32>
    %214 = vector.extract_strided_slice %212 {offsets = [0, 0], sizes = [8, 128], strides = [1, 1]} : vector<8x384xf32> to vector<8x128xf32>
    %215 = vector.extract_strided_slice %213 {offsets = [0, 0], sizes = [8, 128], strides = [1, 1]} : vector<8x384xf32> to vector<8x128xf32>
    %216 = arith.addf %214, %215 : vector<8x128xf32>
    %217 = arith.negf %216 : vector<8x128xf32>
    %218 = math.exp %217 : vector<8x128xf32>
    %cst_51 = arith.constant 1.000000e+00 : f32
    %219 = vector.broadcast %cst_51 : f32 to vector<8x128xf32>
    %220 = arith.addf %219, %218 : vector<8x128xf32>
    %221 = arith.divf %219, %220 : vector<8x128xf32>
    %222 = vector.extract_strided_slice %212 {offsets = [0, 128], sizes = [8, 128], strides = [1, 1]} : vector<8x384xf32> to vector<8x128xf32>
    %223 = vector.extract_strided_slice %213 {offsets = [0, 128], sizes = [8, 128], strides = [1, 1]} : vector<8x384xf32> to vector<8x128xf32>
    %224 = arith.addf %222, %223 : vector<8x128xf32>
    %225 = arith.negf %224 : vector<8x128xf32>
    %226 = math.exp %225 : vector<8x128xf32>
    %cst_52 = arith.constant 1.000000e+00 : f32
    %227 = vector.broadcast %cst_52 : f32 to vector<8x128xf32>
    %228 = arith.addf %227, %226 : vector<8x128xf32>
    %229 = arith.divf %227, %228 : vector<8x128xf32>
    %230 = vector.extract_strided_slice %212 {offsets = [0, 256], sizes = [8, 128], strides = [1, 1]} : vector<8x384xf32> to vector<8x128xf32>
    %231 = vector.extract_strided_slice %213 {offsets = [0, 256], sizes = [8, 128], strides = [1, 1]} : vector<8x384xf32> to vector<8x128xf32>
    %232 = vector.broadcast %4 : vector<1x128xf32> to vector<8x128xf32>
    %233 = arith.addf %231, %232 : vector<8x128xf32>
    %234 = arith.mulf %221, %233 : vector<8x128xf32>
    %235 = arith.addf %230, %234 : vector<8x128xf32>
    %236 = math.tanh %235 : vector<8x128xf32>
    %237 = arith.subf %205, %236 : vector<8x128xf32>
    %238 = arith.mulf %229, %237 : vector<8x128xf32>
    %239 = arith.addf %236, %238 : vector<8x128xf32>
    %240 = arith.index_cast %c6_i32 : i32 to index
    %c0_53 = arith.constant 0 : index
    %c0_54 = arith.constant 0 : index
    %241 = vector.load %arg5[%240, %c0_53, %c0_54] : memref<8x8x128xf32, #tpu.memory_space<vmem>>, vector<1x8x128xf32>
    %242 = vector.shape_cast %241 : vector<1x8x128xf32> to vector<8x128xf32>
    %243 = vector.shape_cast %239 : vector<8x128xf32> to vector<1x8x128xf32>
    tpu.vector_store %arg5[%240, %c0_53, %c0_54], %243 {strides = array<i32>} : memref<8x8x128xf32, #tpu.memory_space<vmem>>, vector<1x8x128xf32>,
    %c7_i32 = arith.constant 7 : i32
    %244 = arith.index_cast %c7_i32 : i32 to index
    %c0_55 = arith.constant 0 : index
    %c0_56 = arith.constant 0 : index
    %245 = vector.load %arg2[%244, %c0_55, %c0_56] : memref<8x8x384xf32, #tpu.memory_space<vmem>>, vector<1x8x384xf32>
    %246 = vector.shape_cast %245 : vector<1x8x384xf32> to vector<8x384xf32>
    %cst_57 = arith.constant dense<0.000000e+00> : vector<8x384xf32>
    %247 = tpu.matmul %239, %3, %cst_57 {dimension_numbers = #tpu.dot_dimension_numbers<[1], [0], [0], [1], [0, 0, 1, 1], [], []>} : vector<8x128xf32>, vector<128x384xf32>, vector<8x384xf32> -> vector<8x384xf32>
    %248 = vector.extract_strided_slice %246 {offsets = [0, 0], sizes = [8, 128], strides = [1, 1]} : vector<8x384xf32> to vector<8x128xf32>
    %249 = vector.extract_strided_slice %247 {offsets = [0, 0], sizes = [8, 128], strides = [1, 1]} : vector<8x384xf32> to vector<8x128xf32>
    %250 = arith.addf %248, %249 : vector<8x128xf32>
    %251 = arith.negf %250 : vector<8x128xf32>
    %252 = math.exp %251 : vector<8x128xf32>
    %cst_58 = arith.constant 1.000000e+00 : f32
    %253 = vector.broadcast %cst_58 : f32 to vector<8x128xf32>
    %254 = arith.addf %253, %252 : vector<8x128xf32>
    %255 = arith.divf %253, %254 : vector<8x128xf32>
    %256 = vector.extract_strided_slice %246 {offsets = [0, 128], sizes = [8, 128], strides = [1, 1]} : vector<8x384xf32> to vector<8x128xf32>
    %257 = vector.extract_strided_slice %247 {offsets = [0, 128], sizes = [8, 128], strides = [1, 1]} : vector<8x384xf32> to vector<8x128xf32>
    %258 = arith.addf %256, %257 : vector<8x128xf32>
    %259 = arith.negf %258 : vector<8x128xf32>
    %260 = math.exp %259 : vector<8x128xf32>
    %cst_59 = arith.constant 1.000000e+00 : f32
    %261 = vector.broadcast %cst_59 : f32 to vector<8x128xf32>
    %262 = arith.addf %261, %260 : vector<8x128xf32>
    %263 = arith.divf %261, %262 : vector<8x128xf32>
    %264 = vector.extract_strided_slice %246 {offsets = [0, 256], sizes = [8, 128], strides = [1, 1]} : vector<8x384xf32> to vector<8x128xf32>
    %265 = vector.extract_strided_slice %247 {offsets = [0, 256], sizes = [8, 128], strides = [1, 1]} : vector<8x384xf32> to vector<8x128xf32>
    %266 = vector.broadcast %4 : vector<1x128xf32> to vector<8x128xf32>
    %267 = arith.addf %265, %266 : vector<8x128xf32>
    %268 = arith.mulf %255, %267 : vector<8x128xf32>
    %269 = arith.addf %264, %268 : vector<8x128xf32>
    %270 = math.tanh %269 : vector<8x128xf32>
    %271 = arith.subf %239, %270 : vector<8x128xf32>
    %272 = arith.mulf %263, %271 : vector<8x128xf32>
    %273 = arith.addf %270, %272 : vector<8x128xf32>
    %274 = arith.index_cast %c7_i32 : i32 to index
    %c0_60 = arith.constant 0 : index
    %c0_61 = arith.constant 0 : index
    %275 = vector.load %arg5[%274, %c0_60, %c0_61] : memref<8x8x128xf32, #tpu.memory_space<vmem>>, vector<1x8x128xf32>
    %276 = vector.shape_cast %275 : vector<1x8x128xf32> to vector<8x128xf32>
    %277 = vector.shape_cast %273 : vector<8x128xf32> to vector<1x8x128xf32>
    tpu.vector_store %arg5[%274, %c0_60, %c0_61], %277 {strides = array<i32>} : memref<8x8x128xf32, #tpu.memory_space<vmem>>, vector<1x8x128xf32>,
    %c8_i32 = arith.constant 8 : i32
    %c0_62 = arith.constant 0 : index
    %c0_63 = arith.constant 0 : index
    %278 = vector.load %arg6[%c0_62, %c0_63] : memref<8x128xf32, #tpu.memory_space<vmem>>, vector<8x128xf32>
    tpu.vector_store %arg6[%c0_62, %c0_63], %273 {strides = array<i32>} : memref<8x128xf32, #tpu.memory_space<vmem>>, vector<8x128xf32>,
    return
  }
  func.func @transform_0(%arg0: i32, %arg1: i32) -> (i32, i32, i32) {
    %c0_i32 = arith.constant 0 : i32
    %c0_i32_0 = arith.constant 0 : i32
    return %arg1, %arg0, %c0_i32 : i32, i32, i32
  }
  func.func @transform_1(%arg0: i32, %arg1: i32) -> (i32, i32) {
    %c0_i32 = arith.constant 0 : i32
    %c0_i32_0 = arith.constant 0 : i32
    %c0_i32_1 = arith.constant 0 : i32
    return %c0_i32, %c0_i32_0 : i32, i32
  }
  func.func @transform_2(%arg0: i32, %arg1: i32) -> (i32, i32) {
    %c0_i32 = arith.constant 0 : i32
    %c0_i32_0 = arith.constant 0 : i32
    %c0_i32_1 = arith.constant 0 : i32
    return %c0_i32, %c0_i32_0 : i32, i32
  }
  func.func @transform_3(%arg0: i32, %arg1: i32) -> (i32, i32, i32) {
    %c0_i32 = arith.constant 0 : i32
    %c0_i32_0 = arith.constant 0 : i32
    return %arg1, %arg0, %c0_i32 : i32, i32, i32
  }
}

module attributes {stable_mosaic.version = 11 : i64} {
  func.func @_gru_recurrent_kernel(%arg0: i32, %arg1: i32, %arg2: memref<8x8x384xf32, #tpu.memory_space<vmem>>, %arg3: memref<128x384xf32, #tpu.memory_space<vmem>>, %arg4: memref<1x128xf32, #tpu.memory_space<vmem>>, %arg5: memref<8x8x128xf32, #tpu.memory_space<vmem>>, %arg6: memref<8x128xf32, #tpu.memory_space<vmem>>) attributes {dimension_semantics = [#tpu.dimension_semantics<parallel>, #tpu.dimension_semantics<arbitrary>], iteration_bounds = array<i64: 1, 1>, scalar_prefetch = 0 : i64, scratch_operands = 1 : i64, tpu.core_type = #tpu.core_type<tc>, window_params = [{transform_indices = @transform_0, window_bounds = array<i64: 8, 8, 384>}, {pipeline_mode = #tpu.pipeline_mode<synchronous>, transform_indices = @transform_1, window_bounds = array<i64: 128, 384>}, {pipeline_mode = #tpu.pipeline_mode<synchronous>, transform_indices = @transform_2, window_bounds = array<i64: 1, 128>}, {transform_indices = @transform_3, window_bounds = array<i64: 8, 8, 128>}]} {
    %c0_i32 = arith.constant 0 : i32
    %0 = arith.cmpi eq, %arg1, %c0_i32 : i32
    %1 = arith.extui %0 : i1 to i32
    %c0_i32_0 = arith.constant 0 : i32
    %2 = arith.cmpi ne, %1, %c0_i32_0 : i32
    scf.if %2 {
      %cst_64 = arith.constant 0.000000e+00 : f32
      %279 = vector.broadcast %cst_64 : f32 to vector<8x128xf32>
      %c0_65 = arith.constant 0 : index
      %c0_66 = arith.constant 0 : index
      %280 = vector.load %arg6[%c0_65, %c0_66] : memref<8x128xf32, #tpu.memory_space<vmem>>, vector<8x128xf32>
      tpu.vector_store %arg6[%c0_65, %c0_66], %279 {strides = array<i32>} : memref<8x128xf32, #tpu.memory_space<vmem>>, vector<8x128xf32>,
    } else {
    }
    %c0 = arith.constant 0 : index
    %c0_1 = arith.constant 0 : index
    %3 = vector.load %arg3[%c0, %c0_1] : memref<128x384xf32, #tpu.memory_space<vmem>>, vector<128x384xf32>
    %c0_2 = arith.constant 0 : index
    %c0_3 = arith.constant 0 : index
    %4 = vector.load %arg4[%c0_2, %c0_3] : memref<1x128xf32, #tpu.memory_space<vmem>>, vector<1x128xf32>
    %c0_4 = arith.constant 0 : index
    %c0_5 = arith.constant 0 : index
    %5 = vector.load %arg6[%c0_4, %c0_5] : memref<8x128xf32, #tpu.memory_space<vmem>>, vector<8x128xf32>
    %c0_i32_6 = arith.constant 0 : i32
    %6 = arith.index_cast %c0_i32_6 : i32 to index
    %c0_7 = arith.constant 0 : index
    %c0_8 = arith.constant 0 : index
    %7 = vector.load %arg2[%6, %c0_7, %c0_8] : memref<8x8x384xf32, #tpu.memory_space<vmem>>, vector<1x8x384xf32>
    %8 = vector.shape_cast %7 : vector<1x8x384xf32> to vector<8x384xf32>
    %cst = arith.constant dense<0.000000e+00> : vector<8x384xf32>
    %9 = tpu.matmul %5, %3, %cst {dimension_numbers = #tpu.dot_dimension_numbers<[1], [0], [0], [1], [0, 0, 1, 1], [], []>} : vector<8x128xf32>, vector<128x384xf32>, vector<8x384xf32> -> vector<8x384xf32>
    %10 = vector.extract_strided_slice %8 {offsets = [0, 0], sizes = [8, 128], strides = [1, 1]} : vector<8x384xf32> to vector<8x128xf32>
    %11 = vector.extract_strided_slice %9 {offsets = [0, 0], sizes = [8, 128], strides = [1, 1]} : vector<8x384xf32> to vector<8x128xf32>
    %12 = arith.addf %10, %11 : vector<8x128xf32>
    %13 = arith.negf %12 : vector<8x128xf32>
    %14 = math.exp %13 : vector<8x128xf32>
    %cst_9 = arith.constant 1.000000e+00 : f32
    %15 = vector.broadcast %cst_9 : f32 to vector<8x128xf32>
    %16 = arith.addf %15, %14 : vector<8x128xf32>
    %17 = arith.divf %15, %16 : vector<8x128xf32>
    %18 = vector.extract_strided_slice %8 {offsets = [0, 128], sizes = [8, 128], strides = [1, 1]} : vector<8x384xf32> to vector<8x128xf32>
    %19 = vector.extract_strided_slice %9 {offsets = [0, 128], sizes = [8, 128], strides = [1, 1]} : vector<8x384xf32> to vector<8x128xf32>
    %20 = arith.addf %18, %19 : vector<8x128xf32>
    %21 = arith.negf %20 : vector<8x128xf32>
    %22 = math.exp %21 : vector<8x128xf32>
    %cst_10 = arith.constant 1.000000e+00 : f32
    %23 = vector.broadcast %cst_10 : f32 to vector<8x128xf32>
    %24 = arith.addf %23, %22 : vector<8x128xf32>
    %25 = arith.divf %23, %24 : vector<8x128xf32>
    %26 = vector.extract_strided_slice %8 {offsets = [0, 256], sizes = [8, 128], strides = [1, 1]} : vector<8x384xf32> to vector<8x128xf32>
    %27 = vector.extract_strided_slice %9 {offsets = [0, 256], sizes = [8, 128], strides = [1, 1]} : vector<8x384xf32> to vector<8x128xf32>
    %28 = vector.broadcast %4 : vector<1x128xf32> to vector<8x128xf32>
    %29 = arith.addf %27, %28 : vector<8x128xf32>
    %30 = arith.mulf %17, %29 : vector<8x128xf32>
    %31 = arith.addf %26, %30 : vector<8x128xf32>
    %32 = math.tanh %31 : vector<8x128xf32>
    %33 = arith.subf %5, %32 : vector<8x128xf32>
    %34 = arith.mulf %25, %33 : vector<8x128xf32>
    %35 = arith.addf %32, %34 : vector<8x128xf32>
    %36 = arith.index_cast %c0_i32_6 : i32 to index
    %c0_11 = arith.constant 0 : index
    %c0_12 = arith.constant 0 : index
    %37 = vector.load %arg5[%36, %c0_11, %c0_12] : memref<8x8x128xf32, #tpu.memory_space<vmem>>, vector<1x8x128xf32>
    %38 = vector.shape_cast %37 : vector<1x8x128xf32> to vector<8x128xf32>
    %39 = vector.shape_cast %35 : vector<8x128xf32> to vector<1x8x128xf32>
    tpu.vector_store %arg5[%36, %c0_11, %c0_12], %39 {strides = array<i32>} : memref<8x8x128xf32, #tpu.memory_space<vmem>>, vector<1x8x128xf32>,
    %c1_i32 = arith.constant 1 : i32
    %40 = arith.index_cast %c1_i32 : i32 to index
    %c0_13 = arith.constant 0 : index
    %c0_14 = arith.constant 0 : index
    %41 = vector.load %arg2[%40, %c0_13, %c0_14] : memref<8x8x384xf32, #tpu.memory_space<vmem>>, vector<1x8x384xf32>
    %42 = vector.shape_cast %41 : vector<1x8x384xf32> to vector<8x384xf32>
    %cst_15 = arith.constant dense<0.000000e+00> : vector<8x384xf32>
    %43 = tpu.matmul %35, %3, %cst_15 {dimension_numbers = #tpu.dot_dimension_numbers<[1], [0], [0], [1], [0, 0, 1, 1], [], []>} : vector<8x128xf32>, vector<128x384xf32>, vector<8x384xf32> -> vector<8x384xf32>
    %44 = vector.extract_strided_slice %42 {offsets = [0, 0], sizes = [8, 128], strides = [1, 1]} : vector<8x384xf32> to vector<8x128xf32>
    %45 = vector.extract_strided_slice %43 {offsets = [0, 0], sizes = [8, 128], strides = [1, 1]} : vector<8x384xf32> to vector<8x128xf32>
    %46 = arith.addf %44, %45 : vector<8x128xf32>
    %47 = arith.negf %46 : vector<8x128xf32>
    %48 = math.exp %47 : vector<8x128xf32>
    %cst_16 = arith.constant 1.000000e+00 : f32
    %49 = vector.broadcast %cst_16 : f32 to vector<8x128xf32>
    %50 = arith.addf %49, %48 : vector<8x128xf32>
    %51 = arith.divf %49, %50 : vector<8x128xf32>
    %52 = vector.extract_strided_slice %42 {offsets = [0, 128], sizes = [8, 128], strides = [1, 1]} : vector<8x384xf32> to vector<8x128xf32>
    %53 = vector.extract_strided_slice %43 {offsets = [0, 128], sizes = [8, 128], strides = [1, 1]} : vector<8x384xf32> to vector<8x128xf32>
    %54 = arith.addf %52, %53 : vector<8x128xf32>
    %55 = arith.negf %54 : vector<8x128xf32>
    %56 = math.exp %55 : vector<8x128xf32>
    %cst_17 = arith.constant 1.000000e+00 : f32
    %57 = vector.broadcast %cst_17 : f32 to vector<8x128xf32>
    %58 = arith.addf %57, %56 : vector<8x128xf32>
    %59 = arith.divf %57, %58 : vector<8x128xf32>
    %60 = vector.extract_strided_slice %42 {offsets = [0, 256], sizes = [8, 128], strides = [1, 1]} : vector<8x384xf32> to vector<8x128xf32>
    %61 = vector.extract_strided_slice %43 {offsets = [0, 256], sizes = [8, 128], strides = [1, 1]} : vector<8x384xf32> to vector<8x128xf32>
    %62 = vector.broadcast %4 : vector<1x128xf32> to vector<8x128xf32>
    %63 = arith.addf %61, %62 : vector<8x128xf32>
    %64 = arith.mulf %51, %63 : vector<8x128xf32>
    %65 = arith.addf %60, %64 : vector<8x128xf32>
    %66 = math.tanh %65 : vector<8x128xf32>
    %67 = arith.subf %35, %66 : vector<8x128xf32>
    %68 = arith.mulf %59, %67 : vector<8x128xf32>
    %69 = arith.addf %66, %68 : vector<8x128xf32>
    %70 = arith.index_cast %c1_i32 : i32 to index
    %c0_18 = arith.constant 0 : index
    %c0_19 = arith.constant 0 : index
    %71 = vector.load %arg5[%70, %c0_18, %c0_19] : memref<8x8x128xf32, #tpu.memory_space<vmem>>, vector<1x8x128xf32>
    %72 = vector.shape_cast %71 : vector<1x8x128xf32> to vector<8x128xf32>
    %73 = vector.shape_cast %69 : vector<8x128xf32> to vector<1x8x128xf32>
    tpu.vector_store %arg5[%70, %c0_18, %c0_19], %73 {strides = array<i32>} : memref<8x8x128xf32, #tpu.memory_space<vmem>>, vector<1x8x128xf32>,
    %c2_i32 = arith.constant 2 : i32
    %74 = arith.index_cast %c2_i32 : i32 to index
    %c0_20 = arith.constant 0 : index
    %c0_21 = arith.constant 0 : index
    %75 = vector.load %arg2[%74, %c0_20, %c0_21] : memref<8x8x384xf32, #tpu.memory_space<vmem>>, vector<1x8x384xf32>
    %76 = vector.shape_cast %75 : vector<1x8x384xf32> to vector<8x384xf32>
    %cst_22 = arith.constant dense<0.000000e+00> : vector<8x384xf32>
    %77 = tpu.matmul %69, %3, %cst_22 {dimension_numbers = #tpu.dot_dimension_numbers<[1], [0], [0], [1], [0, 0, 1, 1], [], []>} : vector<8x128xf32>, vector<128x384xf32>, vector<8x384xf32> -> vector<8x384xf32>
    %78 = vector.extract_strided_slice %76 {offsets = [0, 0], sizes = [8, 128], strides = [1, 1]} : vector<8x384xf32> to vector<8x128xf32>
    %79 = vector.extract_strided_slice %77 {offsets = [0, 0], sizes = [8, 128], strides = [1, 1]} : vector<8x384xf32> to vector<8x128xf32>
    %80 = arith.addf %78, %79 : vector<8x128xf32>
    %81 = arith.negf %80 : vector<8x128xf32>
    %82 = math.exp %81 : vector<8x128xf32>
    %cst_23 = arith.constant 1.000000e+00 : f32
    %83 = vector.broadcast %cst_23 : f32 to vector<8x128xf32>
    %84 = arith.addf %83, %82 : vector<8x128xf32>
    %85 = arith.divf %83, %84 : vector<8x128xf32>
    %86 = vector.extract_strided_slice %76 {offsets = [0, 128], sizes = [8, 128], strides = [1, 1]} : vector<8x384xf32> to vector<8x128xf32>
    %87 = vector.extract_strided_slice %77 {offsets = [0, 128], sizes = [8, 128], strides = [1, 1]} : vector<8x384xf32> to vector<8x128xf32>
    %88 = arith.addf %86, %87 : vector<8x128xf32>
    %89 = arith.negf %88 : vector<8x128xf32>
    %90 = math.exp %89 : vector<8x128xf32>
    %cst_24 = arith.constant 1.000000e+00 : f32
    %91 = vector.broadcast %cst_24 : f32 to vector<8x128xf32>
    %92 = arith.addf %91, %90 : vector<8x128xf32>
    %93 = arith.divf %91, %92 : vector<8x128xf32>
    %94 = vector.extract_strided_slice %76 {offsets = [0, 256], sizes = [8, 128], strides = [1, 1]} : vector<8x384xf32> to vector<8x128xf32>
    %95 = vector.extract_strided_slice %77 {offsets = [0, 256], sizes = [8, 128], strides = [1, 1]} : vector<8x384xf32> to vector<8x128xf32>
    %96 = vector.broadcast %4 : vector<1x128xf32> to vector<8x128xf32>
    %97 = arith.addf %95, %96 : vector<8x128xf32>
    %98 = arith.mulf %85, %97 : vector<8x128xf32>
    %99 = arith.addf %94, %98 : vector<8x128xf32>
    %100 = math.tanh %99 : vector<8x128xf32>
    %101 = arith.subf %69, %100 : vector<8x128xf32>
    %102 = arith.mulf %93, %101 : vector<8x128xf32>
    %103 = arith.addf %100, %102 : vector<8x128xf32>
    %104 = arith.index_cast %c2_i32 : i32 to index
    %c0_25 = arith.constant 0 : index
    %c0_26 = arith.constant 0 : index
    %105 = vector.load %arg5[%104, %c0_25, %c0_26] : memref<8x8x128xf32, #tpu.memory_space<vmem>>, vector<1x8x128xf32>
    %106 = vector.shape_cast %105 : vector<1x8x128xf32> to vector<8x128xf32>
    %107 = vector.shape_cast %103 : vector<8x128xf32> to vector<1x8x128xf32>
    tpu.vector_store %arg5[%104, %c0_25, %c0_26], %107 {strides = array<i32>} : memref<8x8x128xf32, #tpu.memory_space<vmem>>, vector<1x8x128xf32>,
    %c3_i32 = arith.constant 3 : i32
    %108 = arith.index_cast %c3_i32 : i32 to index
    %c0_27 = arith.constant 0 : index
    %c0_28 = arith.constant 0 : index
    %109 = vector.load %arg2[%108, %c0_27, %c0_28] : memref<8x8x384xf32, #tpu.memory_space<vmem>>, vector<1x8x384xf32>
    %110 = vector.shape_cast %109 : vector<1x8x384xf32> to vector<8x384xf32>
    %cst_29 = arith.constant dense<0.000000e+00> : vector<8x384xf32>
    %111 = tpu.matmul %103, %3, %cst_29 {dimension_numbers = #tpu.dot_dimension_numbers<[1], [0], [0], [1], [0, 0, 1, 1], [], []>} : vector<8x128xf32>, vector<128x384xf32>, vector<8x384xf32> -> vector<8x384xf32>
    %112 = vector.extract_strided_slice %110 {offsets = [0, 0], sizes = [8, 128], strides = [1, 1]} : vector<8x384xf32> to vector<8x128xf32>
    %113 = vector.extract_strided_slice %111 {offsets = [0, 0], sizes = [8, 128], strides = [1, 1]} : vector<8x384xf32> to vector<8x128xf32>
    %114 = arith.addf %112, %113 : vector<8x128xf32>
    %115 = arith.negf %114 : vector<8x128xf32>
    %116 = math.exp %115 : vector<8x128xf32>
    %cst_30 = arith.constant 1.000000e+00 : f32
    %117 = vector.broadcast %cst_30 : f32 to vector<8x128xf32>
    %118 = arith.addf %117, %116 : vector<8x128xf32>
    %119 = arith.divf %117, %118 : vector<8x128xf32>
    %120 = vector.extract_strided_slice %110 {offsets = [0, 128], sizes = [8, 128], strides = [1, 1]} : vector<8x384xf32> to vector<8x128xf32>
    %121 = vector.extract_strided_slice %111 {offsets = [0, 128], sizes = [8, 128], strides = [1, 1]} : vector<8x384xf32> to vector<8x128xf32>
    %122 = arith.addf %120, %121 : vector<8x128xf32>
    %123 = arith.negf %122 : vector<8x128xf32>
    %124 = math.exp %123 : vector<8x128xf32>
    %cst_31 = arith.constant 1.000000e+00 : f32
    %125 = vector.broadcast %cst_31 : f32 to vector<8x128xf32>
    %126 = arith.addf %125, %124 : vector<8x128xf32>
    %127 = arith.divf %125, %126 : vector<8x128xf32>
    %128 = vector.extract_strided_slice %110 {offsets = [0, 256], sizes = [8, 128], strides = [1, 1]} : vector<8x384xf32> to vector<8x128xf32>
    %129 = vector.extract_strided_slice %111 {offsets = [0, 256], sizes = [8, 128], strides = [1, 1]} : vector<8x384xf32> to vector<8x128xf32>
    %130 = vector.broadcast %4 : vector<1x128xf32> to vector<8x128xf32>
    %131 = arith.addf %129, %130 : vector<8x128xf32>
    %132 = arith.mulf %119, %131 : vector<8x128xf32>
    %133 = arith.addf %128, %132 : vector<8x128xf32>
    %134 = math.tanh %133 : vector<8x128xf32>
    %135 = arith.subf %103, %134 : vector<8x128xf32>
    %136 = arith.mulf %127, %135 : vector<8x128xf32>
    %137 = arith.addf %134, %136 : vector<8x128xf32>
    %138 = arith.index_cast %c3_i32 : i32 to index
    %c0_32 = arith.constant 0 : index
    %c0_33 = arith.constant 0 : index
    %139 = vector.load %arg5[%138, %c0_32, %c0_33] : memref<8x8x128xf32, #tpu.memory_space<vmem>>, vector<1x8x128xf32>
    %140 = vector.shape_cast %139 : vector<1x8x128xf32> to vector<8x128xf32>
    %141 = vector.shape_cast %137 : vector<8x128xf32> to vector<1x8x128xf32>
    tpu.vector_store %arg5[%138, %c0_32, %c0_33], %141 {strides = array<i32>} : memref<8x8x128xf32, #tpu.memory_space<vmem>>, vector<1x8x128xf32>,
    %c4_i32 = arith.constant 4 : i32
    %142 = arith.index_cast %c4_i32 : i32 to index
    %c0_34 = arith.constant 0 : index
    %c0_35 = arith.constant 0 : index
    %143 = vector.load %arg2[%142, %c0_34, %c0_35] : memref<8x8x384xf32, #tpu.memory_space<vmem>>, vector<1x8x384xf32>
    %144 = vector.shape_cast %143 : vector<1x8x384xf32> to vector<8x384xf32>
    %cst_36 = arith.constant dense<0.000000e+00> : vector<8x384xf32>
    %145 = tpu.matmul %137, %3, %cst_36 {dimension_numbers = #tpu.dot_dimension_numbers<[1], [0], [0], [1], [0, 0, 1, 1], [], []>} : vector<8x128xf32>, vector<128x384xf32>, vector<8x384xf32> -> vector<8x384xf32>
    %146 = vector.extract_strided_slice %144 {offsets = [0, 0], sizes = [8, 128], strides = [1, 1]} : vector<8x384xf32> to vector<8x128xf32>
    %147 = vector.extract_strided_slice %145 {offsets = [0, 0], sizes = [8, 128], strides = [1, 1]} : vector<8x384xf32> to vector<8x128xf32>
    %148 = arith.addf %146, %147 : vector<8x128xf32>
    %149 = arith.negf %148 : vector<8x128xf32>
    %150 = math.exp %149 : vector<8x128xf32>
    %cst_37 = arith.constant 1.000000e+00 : f32
    %151 = vector.broadcast %cst_37 : f32 to vector<8x128xf32>
    %152 = arith.addf %151, %150 : vector<8x128xf32>
    %153 = arith.divf %151, %152 : vector<8x128xf32>
    %154 = vector.extract_strided_slice %144 {offsets = [0, 128], sizes = [8, 128], strides = [1, 1]} : vector<8x384xf32> to vector<8x128xf32>
    %155 = vector.extract_strided_slice %145 {offsets = [0, 128], sizes = [8, 128], strides = [1, 1]} : vector<8x384xf32> to vector<8x128xf32>
    %156 = arith.addf %154, %155 : vector<8x128xf32>
    %157 = arith.negf %156 : vector<8x128xf32>
    %158 = math.exp %157 : vector<8x128xf32>
    %cst_38 = arith.constant 1.000000e+00 : f32
    %159 = vector.broadcast %cst_38 : f32 to vector<8x128xf32>
    %160 = arith.addf %159, %158 : vector<8x128xf32>
    %161 = arith.divf %159, %160 : vector<8x128xf32>
    %162 = vector.extract_strided_slice %144 {offsets = [0, 256], sizes = [8, 128], strides = [1, 1]} : vector<8x384xf32> to vector<8x128xf32>
    %163 = vector.extract_strided_slice %145 {offsets = [0, 256], sizes = [8, 128], strides = [1, 1]} : vector<8x384xf32> to vector<8x128xf32>
    %164 = vector.broadcast %4 : vector<1x128xf32> to vector<8x128xf32>
    %165 = arith.addf %163, %164 : vector<8x128xf32>
    %166 = arith.mulf %153, %165 : vector<8x128xf32>
    %167 = arith.addf %162, %166 : vector<8x128xf32>
    %168 = math.tanh %167 : vector<8x128xf32>
    %169 = arith.subf %137, %168 : vector<8x128xf32>
    %170 = arith.mulf %161, %169 : vector<8x128xf32>
    %171 = arith.addf %168, %170 : vector<8x128xf32>
    %172 = arith.index_cast %c4_i32 : i32 to index
    %c0_39 = arith.constant 0 : index
    %c0_40 = arith.constant 0 : index
    %173 = vector.load %arg5[%172, %c0_39, %c0_40] : memref<8x8x128xf32, #tpu.memory_space<vmem>>, vector<1x8x128xf32>
    %174 = vector.shape_cast %173 : vector<1x8x128xf32> to vector<8x128xf32>
    %175 = vector.shape_cast %171 : vector<8x128xf32> to vector<1x8x128xf32>
    tpu.vector_store %arg5[%172, %c0_39, %c0_40], %175 {strides = array<i32>} : memref<8x8x128xf32, #tpu.memory_space<vmem>>, vector<1x8x128xf32>,
    %c5_i32 = arith.constant 5 : i32
    %176 = arith.index_cast %c5_i32 : i32 to index
    %c0_41 = arith.constant 0 : index
    %c0_42 = arith.constant 0 : index
    %177 = vector.load %arg2[%176, %c0_41, %c0_42] : memref<8x8x384xf32, #tpu.memory_space<vmem>>, vector<1x8x384xf32>
    %178 = vector.shape_cast %177 : vector<1x8x384xf32> to vector<8x384xf32>
    %cst_43 = arith.constant dense<0.000000e+00> : vector<8x384xf32>
    %179 = tpu.matmul %171, %3, %cst_43 {dimension_numbers = #tpu.dot_dimension_numbers<[1], [0], [0], [1], [0, 0, 1, 1], [], []>} : vector<8x128xf32>, vector<128x384xf32>, vector<8x384xf32> -> vector<8x384xf32>
    %180 = vector.extract_strided_slice %178 {offsets = [0, 0], sizes = [8, 128], strides = [1, 1]} : vector<8x384xf32> to vector<8x128xf32>
    %181 = vector.extract_strided_slice %179 {offsets = [0, 0], sizes = [8, 128], strides = [1, 1]} : vector<8x384xf32> to vector<8x128xf32>
    %182 = arith.addf %180, %181 : vector<8x128xf32>
    %183 = arith.negf %182 : vector<8x128xf32>
    %184 = math.exp %183 : vector<8x128xf32>
    %cst_44 = arith.constant 1.000000e+00 : f32
    %185 = vector.broadcast %cst_44 : f32 to vector<8x128xf32>
    %186 = arith.addf %185, %184 : vector<8x128xf32>
    %187 = arith.divf %185, %186 : vector<8x128xf32>
    %188 = vector.extract_strided_slice %178 {offsets = [0, 128], sizes = [8, 128], strides = [1, 1]} : vector<8x384xf32> to vector<8x128xf32>
    %189 = vector.extract_strided_slice %179 {offsets = [0, 128], sizes = [8, 128], strides = [1, 1]} : vector<8x384xf32> to vector<8x128xf32>
    %190 = arith.addf %188, %189 : vector<8x128xf32>
    %191 = arith.negf %190 : vector<8x128xf32>
    %192 = math.exp %191 : vector<8x128xf32>
    %cst_45 = arith.constant 1.000000e+00 : f32
    %193 = vector.broadcast %cst_45 : f32 to vector<8x128xf32>
    %194 = arith.addf %193, %192 : vector<8x128xf32>
    %195 = arith.divf %193, %194 : vector<8x128xf32>
    %196 = vector.extract_strided_slice %178 {offsets = [0, 256], sizes = [8, 128], strides = [1, 1]} : vector<8x384xf32> to vector<8x128xf32>
    %197 = vector.extract_strided_slice %179 {offsets = [0, 256], sizes = [8, 128], strides = [1, 1]} : vector<8x384xf32> to vector<8x128xf32>
    %198 = vector.broadcast %4 : vector<1x128xf32> to vector<8x128xf32>
    %199 = arith.addf %197, %198 : vector<8x128xf32>
    %200 = arith.mulf %187, %199 : vector<8x128xf32>
    %201 = arith.addf %196, %200 : vector<8x128xf32>
    %202 = math.tanh %201 : vector<8x128xf32>
    %203 = arith.subf %171, %202 : vector<8x128xf32>
    %204 = arith.mulf %195, %203 : vector<8x128xf32>
    %205 = arith.addf %202, %204 : vector<8x128xf32>
    %206 = arith.index_cast %c5_i32 : i32 to index
    %c0_46 = arith.constant 0 : index
    %c0_47 = arith.constant 0 : index
    %207 = vector.load %arg5[%206, %c0_46, %c0_47] : memref<8x8x128xf32, #tpu.memory_space<vmem>>, vector<1x8x128xf32>
    %208 = vector.shape_cast %207 : vector<1x8x128xf32> to vector<8x128xf32>
    %209 = vector.shape_cast %205 : vector<8x128xf32> to vector<1x8x128xf32>
    tpu.vector_store %arg5[%206, %c0_46, %c0_47], %209 {strides = array<i32>} : memref<8x8x128xf32, #tpu.memory_space<vmem>>, vector<1x8x128xf32>,
    %c6_i32 = arith.constant 6 : i32
    %210 = arith.index_cast %c6_i32 : i32 to index
    %c0_48 = arith.constant 0 : index
    %c0_49 = arith.constant 0 : index
    %211 = vector.load %arg2[%210, %c0_48, %c0_49] : memref<8x8x384xf32, #tpu.memory_space<vmem>>, vector<1x8x384xf32>
    %212 = vector.shape_cast %211 : vector<1x8x384xf32> to vector<8x384xf32>
    %cst_50 = arith.constant dense<0.000000e+00> : vector<8x384xf32>
    %213 = tpu.matmul %205, %3, %cst_50 {dimension_numbers = #tpu.dot_dimension_numbers<[1], [0], [0], [1], [0, 0, 1, 1], [], []>} : vector<8x128xf32>, vector<128x384xf32>, vector<8x384xf32> -> vector<8x384xf32>
    %214 = vector.extract_strided_slice %212 {offsets = [0, 0], sizes = [8, 128], strides = [1, 1]} : vector<8x384xf32> to vector<8x128xf32>
    %215 = vector.extract_strided_slice %213 {offsets = [0, 0], sizes = [8, 128], strides = [1, 1]} : vector<8x384xf32> to vector<8x128xf32>
    %216 = arith.addf %214, %215 : vector<8x128xf32>
    %217 = arith.negf %216 : vector<8x128xf32>
    %218 = math.exp %217 : vector<8x128xf32>
    %cst_51 = arith.constant 1.000000e+00 : f32
    %219 = vector.broadcast %cst_51 : f32 to vector<8x128xf32>
    %220 = arith.addf %219, %218 : vector<8x128xf32>
    %221 = arith.divf %219, %220 : vector<8x128xf32>
    %222 = vector.extract_strided_slice %212 {offsets = [0, 128], sizes = [8, 128], strides = [1, 1]} : vector<8x384xf32> to vector<8x128xf32>
    %223 = vector.extract_strided_slice %213 {offsets = [0, 128], sizes = [8, 128], strides = [1, 1]} : vector<8x384xf32> to vector<8x128xf32>
    %224 = arith.addf %222, %223 : vector<8x128xf32>
    %225 = arith.negf %224 : vector<8x128xf32>
    %226 = math.exp %225 : vector<8x128xf32>
    %cst_52 = arith.constant 1.000000e+00 : f32
    %227 = vector.broadcast %cst_52 : f32 to vector<8x128xf32>
    %228 = arith.addf %227, %226 : vector<8x128xf32>
    %229 = arith.divf %227, %228 : vector<8x128xf32>
    %230 = vector.extract_strided_slice %212 {offsets = [0, 256], sizes = [8, 128], strides = [1, 1]} : vector<8x384xf32> to vector<8x128xf32>
    %231 = vector.extract_strided_slice %213 {offsets = [0, 256], sizes = [8, 128], strides = [1, 1]} : vector<8x384xf32> to vector<8x128xf32>
    %232 = vector.broadcast %4 : vector<1x128xf32> to vector<8x128xf32>
    %233 = arith.addf %231, %232 : vector<8x128xf32>
    %234 = arith.mulf %221, %233 : vector<8x128xf32>
    %235 = arith.addf %230, %234 : vector<8x128xf32>
    %236 = math.tanh %235 : vector<8x128xf32>
    %237 = arith.subf %205, %236 : vector<8x128xf32>
    %238 = arith.mulf %229, %237 : vector<8x128xf32>
    %239 = arith.addf %236, %238 : vector<8x128xf32>
    %240 = arith.index_cast %c6_i32 : i32 to index
    %c0_53 = arith.constant 0 : index
    %c0_54 = arith.constant 0 : index
    %241 = vector.load %arg5[%240, %c0_53, %c0_54] : memref<8x8x128xf32, #tpu.memory_space<vmem>>, vector<1x8x128xf32>
    %242 = vector.shape_cast %241 : vector<1x8x128xf32> to vector<8x128xf32>
    %243 = vector.shape_cast %239 : vector<8x128xf32> to vector<1x8x128xf32>
    tpu.vector_store %arg5[%240, %c0_53, %c0_54], %243 {strides = array<i32>} : memref<8x8x128xf32, #tpu.memory_space<vmem>>, vector<1x8x128xf32>,
    %c7_i32 = arith.constant 7 : i32
    %244 = arith.index_cast %c7_i32 : i32 to index
    %c0_55 = arith.constant 0 : index
    %c0_56 = arith.constant 0 : index
    %245 = vector.load %arg2[%244, %c0_55, %c0_56] : memref<8x8x384xf32, #tpu.memory_space<vmem>>, vector<1x8x384xf32>
    %246 = vector.shape_cast %245 : vector<1x8x384xf32> to vector<8x384xf32>
    %cst_57 = arith.constant dense<0.000000e+00> : vector<8x384xf32>
    %247 = tpu.matmul %239, %3, %cst_57 {dimension_numbers = #tpu.dot_dimension_numbers<[1], [0], [0], [1], [0, 0, 1, 1], [], []>} : vector<8x128xf32>, vector<128x384xf32>, vector<8x384xf32> -> vector<8x384xf32>
    %248 = vector.extract_strided_slice %246 {offsets = [0, 0], sizes = [8, 128], strides = [1, 1]} : vector<8x384xf32> to vector<8x128xf32>
    %249 = vector.extract_strided_slice %247 {offsets = [0, 0], sizes = [8, 128], strides = [1, 1]} : vector<8x384xf32> to vector<8x128xf32>
    %250 = arith.addf %248, %249 : vector<8x128xf32>
    %251 = arith.negf %250 : vector<8x128xf32>
    %252 = math.exp %251 : vector<8x128xf32>
    %cst_58 = arith.constant 1.000000e+00 : f32
    %253 = vector.broadcast %cst_58 : f32 to vector<8x128xf32>
    %254 = arith.addf %253, %252 : vector<8x128xf32>
    %255 = arith.divf %253, %254 : vector<8x128xf32>
    %256 = vector.extract_strided_slice %246 {offsets = [0, 128], sizes = [8, 128], strides = [1, 1]} : vector<8x384xf32> to vector<8x128xf32>
    %257 = vector.extract_strided_slice %247 {offsets = [0, 128], sizes = [8, 128], strides = [1, 1]} : vector<8x384xf32> to vector<8x128xf32>
    %258 = arith.addf %256, %257 : vector<8x128xf32>
    %259 = arith.negf %258 : vector<8x128xf32>
    %260 = math.exp %259 : vector<8x128xf32>
    %cst_59 = arith.constant 1.000000e+00 : f32
    %261 = vector.broadcast %cst_59 : f32 to vector<8x128xf32>
    %262 = arith.addf %261, %260 : vector<8x128xf32>
    %263 = arith.divf %261, %262 : vector<8x128xf32>
    %264 = vector.extract_strided_slice %246 {offsets = [0, 256], sizes = [8, 128], strides = [1, 1]} : vector<8x384xf32> to vector<8x128xf32>
    %265 = vector.extract_strided_slice %247 {offsets = [0, 256], sizes = [8, 128], strides = [1, 1]} : vector<8x384xf32> to vector<8x128xf32>
    %266 = vector.broadcast %4 : vector<1x128xf32> to vector<8x128xf32>
    %267 = arith.addf %265, %266 : vector<8x128xf32>
    %268 = arith.mulf %255, %267 : vector<8x128xf32>
    %269 = arith.addf %264, %268 : vector<8x128xf32>
    %270 = math.tanh %269 : vector<8x128xf32>
    %271 = arith.subf %239, %270 : vector<8x128xf32>
    %272 = arith.mulf %263, %271 : vector<8x128xf32>
    %273 = arith.addf %270, %272 : vector<8x128xf32>
    %274 = arith.index_cast %c7_i32 : i32 to index
    %c0_60 = arith.constant 0 : index
    %c0_61 = arith.constant 0 : index
    %275 = vector.load %arg5[%274, %c0_60, %c0_61] : memref<8x8x128xf32, #tpu.memory_space<vmem>>, vector<1x8x128xf32>
    %276 = vector.shape_cast %275 : vector<1x8x128xf32> to vector<8x128xf32>
    %277 = vector.shape_cast %273 : vector<8x128xf32> to vector<1x8x128xf32>
    tpu.vector_store %arg5[%274, %c0_60, %c0_61], %277 {strides = array<i32>} : memref<8x8x128xf32, #tpu.memory_space<vmem>>, vector<1x8x128xf32>,
    %c8_i32 = arith.constant 8 : i32
    %c0_62 = arith.constant 0 : index
    %c0_63 = arith.constant 0 : index
    %278 = vector.load %arg6[%c0_62, %c0_63] : memref<8x128xf32, #tpu.memory_space<vmem>>, vector<8x128xf32>
    tpu.vector_store %arg6[%c0_62, %c0_63], %273 {strides = array<i32>} : memref<8x128xf32, #tpu.memory_space<vmem>>, vector<8x128xf32>,
    return
  }
  func.func @transform_0(%arg0: i32, %arg1: i32) -> (i32, i32, i32) {
    %c0_i32 = arith.constant 0 : i32
    %c0_i32_0 = arith.constant 0 : i32
    return %arg1, %arg0, %c0_i32 : i32, i32, i32
  }
  func.func @transform_1(%arg0: i32, %arg1: i32) -> (i32, i32) {
    %c0_i32 = arith.constant 0 : i32
    %c0_i32_0 = arith.constant 0 : i32
    %c0_i32_1 = arith.constant 0 : i32
    return %c0_i32, %c0_i32_0 : i32, i32
  }
  func.func @transform_2(%arg0: i32, %arg1: i32) -> (i32, i32) {
    %c0_i32 = arith.constant 0 : i32
    %c0_i32_0 = arith.constant 0 : i32
    %c0_i32_1 = arith.constant 0 : i32
    return %c0_i32, %c0_i32_0 : i32, i32
  }
  func.func @transform_3(%arg0: i32, %arg1: i32) -> (i32, i32, i32) {
    %c0_i32 = arith.constant 0 : i32
    %c0_i32_0 = arith.constant 0 : i32
    return %arg1, %arg0, %c0_i32 : i32, i32, i32
  }
}

</mosaic_0001>

<bundles_post_ra>
// kernel: forward.3
= control target key start
LH: loop header
LB: loop body
LE: loop exit
PB: predicated region body
PF: predicated region fallthrough
CT: control target
= control target key end

     0   :  { %v2414_v3 = vmov 0.0|0.0   ;;  %v2415_v4 = vmov 0.0   ;;  %vm2416_vm0 = vmmov 0   ;;  %s3056_s1 = inlined_call_operand.vmem [shape: f32[128,384], index: 1, kind: input, shape index: {}]   ;;  %s3057_s0 = inlined_call_operand.vmem [shape: f32[8,8,384], index: 0, kind: input, shape index: {}]   ;;  %s3058_s2 = inlined_call_operand.vmem [shape: f32[1,128], index: 2, kind: input, shape index: {}]   ;;  %s3059_s3 = inlined_call_operand.vmem [shape: f32[8,8,128], index: 3, kind: output, shape index: {}]  }
   0x1   :  { %v20_v0 = vld [vmem:[%s3056_s1 + $0x8] sm:$0xff]  ;;  %v23_v1 = vld [vmem:[%s3056_s1 + $0x20] sm:$0xff]  ;;  %1915 = vmatprep.subr.bf16.mxu1 %v2414_v3  ;;  %136 = vmatprep.mubr.f32.mxu0 %v2415_v4  ;;  %v22_v6 = vld [vmem:[%s3056_s1 + $0x18] sm:$0xff] }
   0x2   :  { %v19_v2 = vld [vmem:[%s3056_s1] sm:$0xff]  ;;  %v2448_v5 = vpack.c.bf16 %v23_v1, %v20_v0  ;;  %v26_v7 = vld [vmem:[%s3056_s1 + $0x38] sm:$0xff]  ;;  %v29_v8 = vld [vmem:[%s3056_s1 + $0x50] sm:$0xff]  ;;  %1635 = vmatprep.mubr.msk.f32.mxu1 %vm2416_vm0, %v2415_v4 }
   0x3   :  { %v2461_v9 = vpack.c.bf16 %v22_v6, %v19_v2  ;;  %v2463_v10 = vpack.c.bf16 %v29_v8, %v26_v7  ;;  %v25_v11 = vld [vmem:[%s3056_s1 + $0x30] sm:$0xff]  ;;  %v28_v12 = vld [vmem:[%s3056_s1 + $0x48] sm:$0xff]  ;;  %v35_v14 = vld [vmem:[%s3056_s1 + $0x80] sm:$0xff] }
   0x4   :  { %v32_v13 = vld [vmem:[%s3056_s1 + $0x68] sm:$0xff]  ;;  %1884 = vmatprep.subr.bf16.mxu0 %v2448_v5  ;;  %v2479_v15 = vpack.c.bf16 %v28_v12, %v25_v11  ;;  %v31_v17 = vld [vmem:[%s3056_s1 + $0x60] sm:$0xff]  ;;  %v34_v18 = vld [vmem:[%s3056_s1 + $0x78] sm:$0xff] }
   0x5   :  { %1886 = vmatpush1.bf16.msra.mxu0 %v2461_v9  ;;  %v2482_v16 = vpack.c.bf16 %v35_v14, %v32_v13  ;;  %v38_v19 = vld [vmem:[%s3056_s1 + $0x98] sm:$0xff]  ;;  %v41_v20 = vld [vmem:[%s3056_s1 + $0xb0] sm:$0xff]  ;;  %v2497_v21 = vpack.c.bf16 %v34_v18, %v31_v17  ;;  %v40_v24 = vld [vmem:[%s3056_s1 + $0xa8] sm:$0xff] }
   0x6   :  { %1888 = vmatprep.subr.bf16.mxu0 %v2463_v10  ;;  %v37_v22 = vld [vmem:[%s3056_s1 + $0x90] sm:$0xff]  ;;  %v2503_v23 = vpack.c.bf16 %v41_v20, %v38_v19  ;;  %v24_v26 = vld [vmem:[%s3056_s1 + $0x28] sm:$0xff]  ;;  %v47_v28 = vld [vmem:[%s3056_s1 + $0xe0] sm:$0xff] }
   0x7   :  { %v21_v25 = vld [vmem:[%s3056_s1 + $0x10] sm:$0xff]  ;;  %v44_v27 = vld [vmem:[%s3056_s1 + $0xc8] sm:$0xff]  ;;  %v27_v30 = vld [vmem:[%s3056_s1 + $0x40] sm:$0xff]  ;;  %v2529_v32 = vpack.c.bf16 %v40_v24, %v37_v22 }
   0x8   :  { %v2520_v29 = vpack.c.bf16 %v24_v26, %v21_v25  ;;  %v30_v31 = vld [vmem:[%s3056_s1 + $0x58] sm:$0xff]  ;;  %v43_v33 = vld [vmem:[%s3056_s1 + $0xc0] sm:$0xff]  ;;  %v2538_v35 = vpack.c.bf16 %v47_v28, %v44_v27  ;;  %v33_v37 = vld [vmem:[%s3056_s1 + $0x70] sm:$0xff] }
   0x9   :  { %1890 = vmatpush1.bf16.msra.mxu0 %v2479_v15  ;;  %v2535_v34 = vpack.c.bf16 %v30_v31, %v27_v30  ;;  %v46_v36 = vld [vmem:[%s3056_s1 + $0xd8] sm:$0xff]  ;;  %v36_v38 = vld [vmem:[%s3056_s1 + $0x88] sm:$0xff]  ;;  %v53_v40 = vld [vmem:[%s3056_s1 + $0x110] sm:$0xff] }
   0xa   :  { %1892 = vmatprep.subr.bf16.mxu0 %v2482_v16  ;;  %1917 = vmatpush3.bf16.msra.mxu1 %v2520_v29  ;;  %v50_v39 = vld [vmem:[%s3056_s1 + $0xf8] sm:$0xff]  ;;  %v2557_v41 = vpack.c.bf16 %v46_v36, %v43_v33  ;;  %v49_v42 = vld [vmem:[%s3056_s1 + $0xf0] sm:$0xff]  ;;  %v2563_v43 = vpack.c.bf16 %v36_v38, %v33_v37  ;;  %v52_v45 = vld [vmem:[%s3056_s1 + $0x108] sm:$0xff] }
   0xb   :  { %1918 = vmatprep.subr.bf16.mxu1 %v2414_v3  ;;  %v2566_v44 = vpack.c.bf16 %v53_v40, %v50_v39  ;;  %v39_v46 = vld [vmem:[%s3056_s1 + $0xa0] sm:$0xff]  ;;  %v42_v47 = vld [vmem:[%s3056_s1 + $0xb8] sm:$0xff]  ;;  %v56_v48 = vld [vmem:[%s3056_s1 + $0x128] sm:$0xff]  ;;  %v2585_v50 = vpack.c.bf16 %v52_v45, %v49_v42 }
   0xc   :  { %v59_v49 = vld [vmem:[%s3056_s1 + $0x140] sm:$0xff]  ;;  %v2591_v52 = vpack.c.bf16 %v42_v47, %v39_v46  ;;  %v58_v54 = vld [vmem:[%s3056_s1 + $0x138] sm:$0xff]  ;;  %v45_v55 = vld [vmem:[%s3056_s1 + $0xd0] sm:$0xff] }
   0xd   :  { %1894 = vmatpush1.bf16.msra.mxu0 %v2497_v21  ;;  %v55_v51 = vld [vmem:[%s3056_s1 + $0x120] sm:$0xff]  ;;  %v2594_v53 = vpack.c.bf16 %v59_v49, %v56_v48  ;;  %v48_v56 = vld [vmem:[%s3056_s1 + $0xe8] sm:$0xff]  ;;  %v62_v57 = vld [vmem:[%s3056_s1 + $0x158] sm:$0xff] }
   0xe   :  { %1896 = vmatprep.subr.bf16.mxu0 %v2503_v23  ;;  %1920 = vmatpush3.bf16.msra.mxu1 %v2535_v34  ;;  %v65_v58 = vld [vmem:[%s3056_s1 + $0x170] sm:$0xff]  ;;  %v2613_v59 = vpack.c.bf16 %v58_v54, %v55_v51  ;;  %v2619_v61 = vpack.c.bf16 %v48_v56, %v45_v55  ;;  %v64_v63 = vld [vmem:[%s3056_s1 + $0x168] sm:$0xff]  ;;  %v51_v0 = vld [vmem:[%s3056_s1 + $0x100] sm:$0xff] }
   0xf   :  { %1921 = vmatprep.subr.bf16.mxu1 %v2414_v3  ;;  %v61_v60 = vld [vmem:[%s3056_s1 + $0x150] sm:$0xff]  ;;  %v2622_v62 = vpack.c.bf16 %v65_v58, %v62_v57  ;;  %v54_v1 = vld [vmem:[%s3056_s1 + $0x118] sm:$0xff]  ;;  %v60_v8 = vld [vmem:[%s3056_s1 + $0x148] sm:$0xff] }
  0x10   :  { %v2635_v2 = vpack.c.bf16 %v64_v63, %v61_v60  ;;  %v2638_v6 = vpack.c.bf16 %v54_v1, %v51_v0  ;;  %v57_v7 = vld [vmem:[%s3056_s1 + $0x130] sm:$0xff]  ;;  %v63_v12 = vld [vmem:[%s3056_s1 + $0x160] sm:$0xff]  ;;  %v66_v13 = vld [vmem:[%s3056_s1 + $0x178] sm:$0xff] }
  0x11   :  { %1898 = vmatpush1.bf16.msra.mxu0 %v2529_v32  ;;  %v2650_v11 = vpack.c.bf16 %v60_v8, %v57_v7  ;;  %v2662_v14 = vpack.c.bf16 %v66_v13, %v63_v12  ;;  %v69_v17 = vld [vmem:[%s3057_s0] sm:$0xff]  ;;  %v70_v24 = vld [vmem:[%s3057_s0 + $0x8] sm:$0xff]  ;;  %v71_v39 = vld [vmem:[%s3057_s0 + $0x10] sm:$0xff] }
  0x12   :  { %1900 = vmatprep.subr.bf16.mxu0 %v2538_v35  ;;  %1923 = vmatpush3.bf16.msra.mxu1 %v2563_v43  ;;  %v2712_v33 = vld [vmem:[%s3058_s2] ss:$0 sm:$0xff]  ;;  %v1425_v54 = vld [vmem:[%s3057_s0 + $0x18] sm:$0xff] }
  0x13   :  { %1924 = vmatprep.subr.bf16.mxu1 %v2414_v3  ;;  %v1426_v0 = vld [vmem:[%s3057_s0 + $0x20] sm:$0xff] }
  0x15   :  { %1902 = vmatpush1.bf16.msra.mxu0 %v2557_v41 }
  0x16   :  { %1904 = vmatprep.subr.bf16.mxu0 %v2566_v44  ;;  %1926 = vmatpush3.bf16.msra.mxu1 %v2591_v52 }
  0x17   :  { %1927 = vmatprep.subr.bf16.mxu1 %v2414_v3 }
  0x19   :  { %1906 = vmatpush1.bf16.msra.mxu0 %v2585_v50 }
  0x1a   :  { %1908 = vmatprep.subr.bf16.mxu0 %v2594_v53  ;;  %1929 = vmatpush3.bf16.msra.mxu1 %v2619_v61 }
  0x1b   :  { %1930 = vmatprep.subr.bf16.mxu1 %v2414_v3 }
  0x1d   :  { %1910 = vmatpush1.bf16.msra.mxu0 %v2613_v59 }
  0x1e   :  { %1912 = vmatprep.subr.bf16.mxu0 %v2622_v62  ;;  %1932 = vmatpush3.bf16.msra.mxu1 %v2638_v6 }
  0x1f   :  { %1933 = vmatprep.subr.bf16.mxu1 %v2414_v3 }
  0x21   :  { %1914 = vmatpush1.bf16.msra.mxu0 %v2635_v2 }
  0x22   :  { %1940 = vmatprep.subr.bf16.mxu0 %v2448_v5  ;;  %1935 = vmatpush3.bf16.msra.mxu1 %v2650_v11 }
  0x23   :  { %1936 = vmatprep.subr.bf16.mxu1 %v2414_v3 }
  0x24   :  { %137 = vmatmul.mubr.f32.vlgmr.msra.gmra.mrb[0].mxu0 %v2415_v4 }
  0x25   :  { %1942 = vmatpush1.bf16.msra.mxu0 %v2461_v9  ;;  %309 = vmatprep.mubr.f32.mxu0 %v2415_v4 }
  0x26   :  { %1944 = vmatprep.subr.bf16.mxu0 %v2463_v10  ;;  %1938 = vmatpush3.bf16.msra.mxu1 %v2662_v14 }
  0x27   :  { %1971 = vmatprep.subr.bf16.mxu1 %v2414_v3 }
  0x29   :  { %1946 = vmatpush1.bf16.msra.mxu0 %v2479_v15  ;;  %1636 = vmatmul.mubr.f32.vlgmr.msra.gmra.mrb[0].mxu1 %v2415_v4 }
  0x2a   :  { %1948 = vmatprep.subr.bf16.mxu0 %v2482_v16  ;;  %1973 = vmatpush3.bf16.msra.mxu1 %v2520_v29 }
  0x2b   :  { %1974 = vmatprep.subr.bf16.mxu1 %v2414_v3  ;;  %1670 = vmatprep.mubr.msk.f32.mxu1 %vm2416_vm0, %v2415_v4 }
  0x2d   :  { %1950 = vmatpush1.bf16.msra.mxu0 %v2497_v21 }
  0x2e   :  { %1952 = vmatprep.subr.bf16.mxu0 %v2503_v23  ;;  %1976 = vmatpush3.bf16.msra.mxu1 %v2535_v34 }
  0x2f   :  { %1977 = vmatprep.subr.bf16.mxu1 %v2414_v3 }
  0x31   :  { %1954 = vmatpush1.bf16.msra.mxu0 %v2529_v32 }
  0x32   :  { %1956 = vmatprep.subr.bf16.mxu0 %v2538_v35  ;;  %1979 = vmatpush3.bf16.msra.mxu1 %v2563_v43 }
  0x33   :  { %1980 = vmatprep.subr.bf16.mxu1 %v2414_v3 }
  0x35   :  { %1958 = vmatpush1.bf16.msra.mxu0 %v2557_v41 }
  0x36   :  { %1960 = vmatprep.subr.bf16.mxu0 %v2566_v44  ;;  %1982 = vmatpush3.bf16.msra.mxu1 %v2591_v52 }
  0x37   :  { %1983 = vmatprep.subr.bf16.mxu1 %v2414_v3 }
  0x39   :  { %1962 = vmatpush1.bf16.msra.mxu0 %v2585_v50 }
  0x3a   :  { %1964 = vmatprep.subr.bf16.mxu0 %v2594_v53  ;;  %1985 = vmatpush3.bf16.msra.mxu1 %v2619_v61 }
  0x3b   :  { %1986 = vmatprep.subr.bf16.mxu1 %v2414_v3 }
  0x3d   :  { %1966 = vmatpush1.bf16.msra.mxu0 %v2613_v59 }
  0x3e   :  { %1968 = vmatprep.subr.bf16.mxu0 %v2622_v62  ;;  %1988 = vmatpush3.bf16.msra.mxu1 %v2638_v6 }
  0x3f   :  { %1989 = vmatprep.subr.bf16.mxu1 %v2414_v3 }
  0x41   :  { %1970 = vmatpush1.bf16.msra.mxu0 %v2635_v2 }
  0x42   :  { %1996 = vmatprep.subr.bf16.mxu0 %v2448_v5  ;;  %1991 = vmatpush3.bf16.msra.mxu1 %v2650_v11 }
  0x43   :  { %1992 = vmatprep.subr.bf16.mxu1 %v2414_v3 }
  0x46   :  { %1994 = vmatpush3.bf16.msra.mxu1 %v2662_v14 }
  0x47   :  { %2027 = vmatprep.subr.bf16.mxu1 %v2414_v3 }
  0xf7   :  { %v138_v18 = vpop.f32.mrb[0].mxu0 }
  0xf8   :  { %v213_v19 = vadd.f32 %v138_v18, %v69_v17  ;;  %v140_v20 = vpop.f32.mrb[1].mxu0 }
  0xf9   :  { %v220_v26 = vadd.f32 %v140_v20, %v70_v24 }
  0xfa   :  { %v1422_v22 = vmul.f32 -1.442695, %v213_v19  ;;  %v1427_v19 = vld [vmem:[%s3057_s0 + $0x28] sm:$0xff] }
  0xfb   :  { %v1423_v28 = vmul.f32 -1.442695, %v220_v26 }
  0xfc   :  { %2334 = vpow2.f32 %v1422_v22  ;;  %v209_v25 = vpop.f32.mrb[0].mxu1 }
  0xfd   :  { %v1637_v27 = vpop.f32.mrb[1].mxu1  ;;  %2336 = vpow2.f32 %v1423_v28  ;;  %v233_v36 = vadd.f32 %v2712_v33, %v209_v25 }
 0x106   :  { %v2335_v30 = vpop.eup %2334 }
 0x107   :  { %v217_v31 = vadd.f32 1.0, %v2335_v30  ;;  %v2337_v37 = vpop.eup %2336 }
 0x108   :  { %v224_v42 = vadd.f32 1.0, %v2337_v37 }
 0x109   :  { %2338 = vrcp.f32 %v217_v31  ;;  %v1431_v31 = vld [vmem:[%s3057_s0 + $0x30] sm:$0xff] }
 0x113   :  { %v2339_v38 = vpop.eup %2338 }
 0x114   :  { %v234_v40 = vmul.f32 %v2339_v38, %v233_v36 }
 0x116   :  { %v235_v45 = vadd.f32 %v234_v40, %v71_v39 }
 0x118   :  { %2340 = vtanh.f32 %v235_v45  ;;  %v1432_v45 = vld [vmem:[%s3057_s0 + $0x38] sm:$0xff] }
 0x119   :  { %2342 = vrcp.f32 %v224_v42 }
 0x122   :  { %v2341_v46 = vpop.eup %2340 }
 0x123   :  { %v237_v47 = vsub.f32 0.0, %v2341_v46  ;;  %v2343_v48 = vpop.eup %2342 }
 0x125   :  { %v238_v49 = vmul.f32 %v2343_v48, %v237_v47 }
 0x127   :  { %v2718_v51 = vadd.f32 %v2341_v46, %v238_v49 }
 0x129   :  { %240 = vst [vmem:[%s3059_s3] sm:$0xff] %v2718_v51  ;;  %310 = vmatmul.mubr.f32.vlgmr.msra.gmra.mrb[2].mxu0 %v2718_v51  ;;  %1671 = vmatmul.mubr.f32.vlgmr.msra.gmra.mrb[2].mxu1 %v2718_v51 }
 0x12a   :  { %1998 = vmatpush1.bf16.msra.mxu0 %v2461_v9  ;;  %2029 = vmatpush3.bf16.msra.mxu1 %v2520_v29 }
 0x12b   :  { %2000 = vmatprep.subr.bf16.mxu0 %v2463_v10  ;;  %2030 = vmatprep.subr.bf16.mxu1 %v2414_v3 }
 0x12c   :  { %477 = vmatprep.mubr.f32.mxu0 %v2415_v4  ;;  %1705 = vmatprep.mubr.msk.f32.mxu1 %vm2416_vm0, %v2415_v4 }
 0x12e   :  { %2002 = vmatpush1.bf16.msra.mxu0 %v2479_v15  ;;  %2032 = vmatpush3.bf16.msra.mxu1 %v2535_v34 }
 0x12f   :  { %2004 = vmatprep.subr.bf16.mxu0 %v2482_v16  ;;  %2033 = vmatprep.subr.bf16.mxu1 %v2414_v3 }
 0x132   :  { %2006 = vmatpush1.bf16.msra.mxu0 %v2497_v21  ;;  %2035 = vmatpush3.bf16.msra.mxu1 %v2563_v43 }
 0x133   :  { %2008 = vmatprep.subr.bf16.mxu0 %v2503_v23  ;;  %2036 = vmatprep.subr.bf16.mxu1 %v2414_v3 }
 0x136   :  { %2010 = vmatpush1.bf16.msra.mxu0 %v2529_v32  ;;  %2038 = vmatpush3.bf16.msra.mxu1 %v2591_v52 }
 0x137   :  { %2012 = vmatprep.subr.bf16.mxu0 %v2538_v35  ;;  %2039 = vmatprep.subr.bf16.mxu1 %v2414_v3 }
 0x13a   :  { %2014 = vmatpush1.bf16.msra.mxu0 %v2557_v41  ;;  %2041 = vmatpush3.bf16.msra.mxu1 %v2619_v61 }
 0x13b   :  { %2016 = vmatprep.subr.bf16.mxu0 %v2566_v44  ;;  %2042 = vmatprep.subr.bf16.mxu1 %v2414_v3 }
 0x13e   :  { %2018 = vmatpush1.bf16.msra.mxu0 %v2585_v50  ;;  %2044 = vmatpush3.bf16.msra.mxu1 %v2638_v6 }
 0x13f   :  { %2020 = vmatprep.subr.bf16.mxu0 %v2594_v53  ;;  %2045 = vmatprep.subr.bf16.mxu1 %v2414_v3 }
 0x142   :  { %2022 = vmatpush1.bf16.msra.mxu0 %v2613_v59  ;;  %2047 = vmatpush3.bf16.msra.mxu1 %v2650_v11 }
 0x143   :  { %2024 = vmatprep.subr.bf16.mxu0 %v2622_v62  ;;  %2048 = vmatprep.subr.bf16.mxu1 %v2414_v3 }
 0x146   :  { %2026 = vmatpush1.bf16.msra.mxu0 %v2635_v2  ;;  %2050 = vmatpush3.bf16.msra.mxu1 %v2662_v14 }
 0x147   :  { %2052 = vmatprep.subr.bf16.mxu0 %v2448_v5  ;;  %2083 = vmatprep.subr.bf16.mxu1 %v2414_v3 }
 0x1fc   :  { %v311_v55 = vpop.f32.mrb[2].mxu0  ;;  %v382_v56 = vpop.f32.mrb[2].mxu1 }
 0x1fd   :  { %v386_v57 = vadd.f32 %v1425_v54, %v311_v55  ;;  %v313_v58 = vpop.f32.mrb[3].mxu0  ;;  %v1672_v60 = vpop.f32.mrb[3].mxu1  ;;  %v400_v17 = vadd.f32 %v2712_v33, %v382_v56  ;;  %v1433_v56 = vld [vmem:[%s3057_s0 + $0x40] sm:$0xff] }
 0x1fe   :  { %v393_v1 = vadd.f32 %v1426_v0, %v313_v58 }
 0x1ff   :  { %v1428_v63 = vmul.f32 -1.442695, %v386_v57 }
 0x200   :  { %v1429_v7 = vmul.f32 -1.442695, %v393_v1 }
 0x201   :  { %2344 = vpow2.f32 %v1428_v63 }
 0x202   :  { %2346 = vpow2.f32 %v1429_v7 }
 0x20b   :  { %v2345_v8 = vpop.eup %2344 }
 0x20c   :  { %v390_v12 = vadd.f32 1.0, %v2345_v8  ;;  %v2347_v13 = vpop.eup %2346 }
 0x20d   :  { %v397_v24 = vadd.f32 1.0, %v2347_v13 }
 0x20e   :  { %2348 = vrcp.f32 %v390_v12  ;;  %v1437_v12 = vld [vmem:[%s3057_s0 + $0x48] sm:$0xff] }
 0x218   :  { %v2349_v18 = vpop.eup %2348 }
 0x219   :  { %v401_v20 = vmul.f32 %v2349_v18, %v400_v17 }
 0x21b   :  { %v402_v22 = vadd.f32 %v1427_v19, %v401_v20 }
 0x21d   :  { %2350 = vtanh.f32 %v402_v22 }
 0x21e   :  { %2352 = vrcp.f32 %v397_v24  ;;  %v1438_v24 = vld [vmem:[%s3057_s0 + $0x50] sm:$0xff] }
 0x227   :  { %v2351_v25 = vpop.eup %2350 }
 0x228   :  { %v404_v26 = vsub.f32 %v2718_v51, %v2351_v25  ;;  %v2353_v27 = vpop.eup %2352 }
 0x22a   :  { %v405_v28 = vmul.f32 %v2353_v27, %v404_v26 }
 0x22c   :  { %v2772_v30 = vadd.f32 %v2351_v25, %v405_v28 }
 0x22e   :  { %1430 = vst [vmem:[%s3059_s3 + $0x8] sm:$0xff] %v2772_v30  ;;  %478 = vmatmul.mubr.f32.vlgmr.msra.gmra.mrb[4].mxu0 %v2772_v30  ;;  %1706 = vmatmul.mubr.f32.vlgmr.msra.gmra.mrb[4].mxu1 %v2772_v30 }
 0x22f   :  { %2054 = vmatpush1.bf16.msra.mxu0 %v2461_v9  ;;  %2085 = vmatpush3.bf16.msra.mxu1 %v2520_v29 }
 0x230   :  { %2056 = vmatprep.subr.bf16.mxu0 %v2463_v10  ;;  %2086 = vmatprep.subr.bf16.mxu1 %v2414_v3 }
 0x231   :  { %645 = vmatprep.mubr.f32.mxu0 %v2415_v4  ;;  %1740 = vmatprep.mubr.msk.f32.mxu1 %vm2416_vm0, %v2415_v4 }
 0x233   :  { %2058 = vmatpush1.bf16.msra.mxu0 %v2479_v15  ;;  %2088 = vmatpush3.bf16.msra.mxu1 %v2535_v34 }
 0x234   :  { %2060 = vmatprep.subr.bf16.mxu0 %v2482_v16  ;;  %2089 = vmatprep.subr.bf16.mxu1 %v2414_v3 }
 0x237   :  { %2062 = vmatpush1.bf16.msra.mxu0 %v2497_v21  ;;  %2091 = vmatpush3.bf16.msra.mxu1 %v2563_v43 }
 0x238   :  { %2064 = vmatprep.subr.bf16.mxu0 %v2503_v23  ;;  %2092 = vmatprep.subr.bf16.mxu1 %v2414_v3 }
 0x23b   :  { %2066 = vmatpush1.bf16.msra.mxu0 %v2529_v32  ;;  %2094 = vmatpush3.bf16.msra.mxu1 %v2591_v52 }
 0x23c   :  { %2068 = vmatprep.subr.bf16.mxu0 %v2538_v35  ;;  %2095 = vmatprep.subr.bf16.mxu1 %v2414_v3 }
 0x23f   :  { %2070 = vmatpush1.bf16.msra.mxu0 %v2557_v41  ;;  %2097 = vmatpush3.bf16.msra.mxu1 %v2619_v61 }
 0x240   :  { %2072 = vmatprep.subr.bf16.mxu0 %v2566_v44  ;;  %2098 = vmatprep.subr.bf16.mxu1 %v2414_v3 }
 0x243   :  { %2074 = vmatpush1.bf16.msra.mxu0 %v2585_v50  ;;  %2100 = vmatpush3.bf16.msra.mxu1 %v2638_v6 }
 0x244   :  { %2076 = vmatprep.subr.bf16.mxu0 %v2594_v53  ;;  %2101 = vmatprep.subr.bf16.mxu1 %v2414_v3 }
 0x247   :  { %2078 = vmatpush1.bf16.msra.mxu0 %v2613_v59  ;;  %2103 = vmatpush3.bf16.msra.mxu1 %v2650_v11 }
 0x248   :  { %2080 = vmatprep.subr.bf16.mxu0 %v2622_v62  ;;  %2104 = vmatprep.subr.bf16.mxu1 %v2414_v3 }
 0x24b   :  { %2082 = vmatpush1.bf16.msra.mxu0 %v2635_v2  ;;  %2106 = vmatpush3.bf16.msra.mxu1 %v2662_v14 }
 0x24c   :  { %2108 = vmatprep.subr.bf16.mxu0 %v2448_v5  ;;  %2139 = vmatprep.subr.bf16.mxu1 %v2414_v3 }
 0x301   :  { %v479_v36 = vpop.f32.mrb[4].mxu0  ;;  %v550_v37 = vpop.f32.mrb[4].mxu1 }
 0x302   :  { %v554_v38 = vadd.f32 %v1431_v31, %v479_v36  ;;  %v481_v39 = vpop.f32.mrb[5].mxu0  ;;  %v1707_v40 = vpop.f32.mrb[5].mxu1  ;;  %v568_v54 = vadd.f32 %v2712_v33, %v550_v37  ;;  %v1439_v37 = vld [vmem:[%s3057_s0 + $0x58] sm:$0xff] }
 0x303   :  { %v561_v46 = vadd.f32 %v1432_v45, %v481_v39 }
 0x304   :  { %v1434_v42 = vmul.f32 -1.442695, %v554_v38 }
 0x305   :  { %v1435_v47 = vmul.f32 -1.442695, %v561_v46 }
 0x306   :  { %2354 = vpow2.f32 %v1434_v42 }
 0x307   :  { %2356 = vpow2.f32 %v1435_v47 }
 0x310   :  { %v2355_v48 = vpop.eup %2354 }
 0x311   :  { %v558_v49 = vadd.f32 1.0, %v2355_v48  ;;  %v2357_v51 = vpop.eup %2356 }
 0x312   :  { %v565_v60 = vadd.f32 1.0, %v2357_v51 }
 0x313   :  { %2358 = vrcp.f32 %v558_v49  ;;  %v1443_v49 = vld [vmem:[%s3057_s0 + $0x60] sm:$0xff] }
 0x31d   :  { %v2359_v55 = vpop.eup %2358 }
 0x31e   :  { %v569_v57 = vmul.f32 %v2359_v55, %v568_v54 }
 0x320   :  { %v570_v58 = vadd.f32 %v1433_v56, %v569_v57 }
 0x322   :  { %2360 = vtanh.f32 %v570_v58 }
 0x323   :  { %2362 = vrcp.f32 %v565_v60  ;;  %v1444_v60 = vld [vmem:[%s3057_s0 + $0x68] sm:$0xff] }
 0x32c   :  { %v2361_v63 = vpop.eup %2360 }
 0x32d   :  { %v572_v0 = vsub.f32 %v2772_v30, %v2361_v63  ;;  %v2363_v1 = vpop.eup %2362 }
 0x32f   :  { %v573_v7 = vmul.f32 %v2363_v1, %v572_v0 }
 0x331   :  { %v2826_v8 = vadd.f32 %v2361_v63, %v573_v7 }
 0x333   :  { %1436 = vst [vmem:[%s3059_s3 + $0x10] sm:$0xff] %v2826_v8  ;;  %646 = vmatmul.mubr.f32.vlgmr.msra.gmra.mrb[6].mxu0 %v2826_v8  ;;  %1741 = vmatmul.mubr.f32.vlgmr.msra.gmra.mrb[6].mxu1 %v2826_v8 }
 0x334   :  { %2110 = vmatpush1.bf16.msra.mxu0 %v2461_v9  ;;  %2141 = vmatpush3.bf16.msra.mxu1 %v2520_v29 }
 0x335   :  { %2112 = vmatprep.subr.bf16.mxu0 %v2463_v10  ;;  %2142 = vmatprep.subr.bf16.mxu1 %v2414_v3 }
 0x336   :  { %813 = vmatprep.mubr.f32.mxu0 %v2415_v4  ;;  %1775 = vmatprep.mubr.msk.f32.mxu1 %vm2416_vm0, %v2415_v4 }
 0x338   :  { %2114 = vmatpush1.bf16.msra.mxu0 %v2479_v15  ;;  %2144 = vmatpush3.bf16.msra.mxu1 %v2535_v34 }
 0x339   :  { %2116 = vmatprep.subr.bf16.mxu0 %v2482_v16  ;;  %2145 = vmatprep.subr.bf16.mxu1 %v2414_v3 }
 0x33c   :  { %2118 = vmatpush1.bf16.msra.mxu0 %v2497_v21  ;;  %2147 = vmatpush3.bf16.msra.mxu1 %v2563_v43 }
 0x33d   :  { %2120 = vmatprep.subr.bf16.mxu0 %v2503_v23  ;;  %2148 = vmatprep.subr.bf16.mxu1 %v2414_v3 }
 0x340   :  { %2122 = vmatpush1.bf16.msra.mxu0 %v2529_v32  ;;  %2150 = vmatpush3.bf16.msra.mxu1 %v2591_v52 }
 0x341   :  { %2124 = vmatprep.subr.bf16.mxu0 %v2538_v35  ;;  %2151 = vmatprep.subr.bf16.mxu1 %v2414_v3 }
 0x344   :  { %2126 = vmatpush1.bf16.msra.mxu0 %v2557_v41  ;;  %2153 = vmatpush3.bf16.msra.mxu1 %v2619_v61 }
 0x345   :  { %2128 = vmatprep.subr.bf16.mxu0 %v2566_v44  ;;  %2154 = vmatprep.subr.bf16.mxu1 %v2414_v3 }
 0x348   :  { %2130 = vmatpush1.bf16.msra.mxu0 %v2585_v50  ;;  %2156 = vmatpush3.bf16.msra.mxu1 %v2638_v6 }
 0x349   :  { %2132 = vmatprep.subr.bf16.mxu0 %v2594_v53  ;;  %2157 = vmatprep.subr.bf16.mxu1 %v2414_v3 }
 0x34c   :  { %2134 = vmatpush1.bf16.msra.mxu0 %v2613_v59  ;;  %2159 = vmatpush3.bf16.msra.mxu1 %v2650_v11 }
 0x34d   :  { %2136 = vmatprep.subr.bf16.mxu0 %v2622_v62  ;;  %2160 = vmatprep.subr.bf16.mxu1 %v2414_v3 }
 0x350   :  { %2138 = vmatpush1.bf16.msra.mxu0 %v2635_v2  ;;  %2162 = vmatpush3.bf16.msra.mxu1 %v2662_v14 }
 0x351   :  { %2164 = vmatprep.subr.bf16.mxu0 %v2448_v5  ;;  %2195 = vmatprep.subr.bf16.mxu1 %v2414_v3 }
 0x406   :  { %v647_v13 = vpop.f32.mrb[6].mxu0  ;;  %v718_v17 = vpop.f32.mrb[6].mxu1 }
 0x407   :  { %v722_v18 = vadd.f32 %v1437_v12, %v647_v13  ;;  %v649_v19 = vpop.f32.mrb[7].mxu0  ;;  %v1742_v20 = vpop.f32.mrb[7].mxu1  ;;  %v736_v31 = vadd.f32 %v2712_v33, %v718_v17  ;;  %v1445_v17 = vld [vmem:[%s3057_s0 + $0x70] sm:$0xff] }
 0x408   :  { %v729_v25 = vadd.f32 %v1438_v24, %v649_v19 }
 0x409   :  { %v1440_v22 = vmul.f32 -1.442695, %v722_v18 }
 0x40a   :  { %v1441_v26 = vmul.f32 -1.442695, %v729_v25 }
 0x40b   :  { %2364 = vpow2.f32 %v1440_v22 }
 0x40c   :  { %2366 = vpow2.f32 %v1441_v26 }
 0x415   :  { %v2365_v27 = vpop.eup %2364 }
 0x416   :  { %v726_v28 = vadd.f32 1.0, %v2365_v27  ;;  %v2367_v30 = vpop.eup %2366 }
 0x417   :  { %v733_v40 = vadd.f32 1.0, %v2367_v30 }
 0x418   :  { %2368 = vrcp.f32 %v726_v28  ;;  %v1449_v28 = vld [vmem:[%s3057_s0 + $0x78] sm:$0xff] }
 0x422   :  { %v2369_v36 = vpop.eup %2368 }
 0x423   :  { %v737_v38 = vmul.f32 %v2369_v36, %v736_v31 }
 0x425   :  { %v738_v39 = vadd.f32 %v1439_v37, %v737_v38 }
 0x427   :  { %2370 = vtanh.f32 %v738_v39 }
 0x428   :  { %2372 = vrcp.f32 %v733_v40  ;;  %v1450_v40 = vld [vmem:[%s3057_s0 + $0x80] sm:$0xff] }
 0x431   :  { %v2371_v42 = vpop.eup %2370 }
 0x432   :  { %v740_v45 = vsub.f32 %v2826_v8, %v2371_v42  ;;  %v2373_v46 = vpop.eup %2372 }
 0x434   :  { %v741_v47 = vmul.f32 %v2373_v46, %v740_v45 }
 0x436   :  { %v2880_v48 = vadd.f32 %v2371_v42, %v741_v47 }
 0x438   :  { %1442 = vst [vmem:[%s3059_s3 + $0x18] sm:$0xff] %v2880_v48  ;;  %814 = vmatmul.mubr.f32.vlgmr.msra.gmra.mrb[8].mxu0 %v2880_v48  ;;  %1776 = vmatmul.mubr.f32.vlgmr.msra.gmra.mrb[8].mxu1 %v2880_v48 }
 0x439   :  { %2166 = vmatpush1.bf16.msra.mxu0 %v2461_v9  ;;  %2197 = vmatpush3.bf16.msra.mxu1 %v2520_v29 }
 0x43a   :  { %2168 = vmatprep.subr.bf16.mxu0 %v2463_v10  ;;  %2198 = vmatprep.subr.bf16.mxu1 %v2414_v3 }
 0x43b   :  { %981 = vmatprep.mubr.f32.mxu0 %v2415_v4  ;;  %1810 = vmatprep.mubr.msk.f32.mxu1 %vm2416_vm0, %v2415_v4 }
 0x43d   :  { %2170 = vmatpush1.bf16.msra.mxu0 %v2479_v15  ;;  %2200 = vmatpush3.bf16.msra.mxu1 %v2535_v34 }
 0x43e   :  { %2172 = vmatprep.subr.bf16.mxu0 %v2482_v16  ;;  %2201 = vmatprep.subr.bf16.mxu1 %v2414_v3 }
 0x441   :  { %2174 = vmatpush1.bf16.msra.mxu0 %v2497_v21  ;;  %2203 = vmatpush3.bf16.msra.mxu1 %v2563_v43 }
 0x442   :  { %2176 = vmatprep.subr.bf16.mxu0 %v2503_v23  ;;  %2204 = vmatprep.subr.bf16.mxu1 %v2414_v3 }
 0x445   :  { %2178 = vmatpush1.bf16.msra.mxu0 %v2529_v32  ;;  %2206 = vmatpush3.bf16.msra.mxu1 %v2591_v52 }
 0x446   :  { %2180 = vmatprep.subr.bf16.mxu0 %v2538_v35  ;;  %2207 = vmatprep.subr.bf16.mxu1 %v2414_v3 }
 0x449   :  { %2182 = vmatpush1.bf16.msra.mxu0 %v2557_v41  ;;  %2209 = vmatpush3.bf16.msra.mxu1 %v2619_v61 }
 0x44a   :  { %2184 = vmatprep.subr.bf16.mxu0 %v2566_v44  ;;  %2210 = vmatprep.subr.bf16.mxu1 %v2414_v3 }
 0x44d   :  { %2186 = vmatpush1.bf16.msra.mxu0 %v2585_v50  ;;  %2212 = vmatpush3.bf16.msra.mxu1 %v2638_v6 }
 0x44e   :  { %2188 = vmatprep.subr.bf16.mxu0 %v2594_v53  ;;  %2213 = vmatprep.subr.bf16.mxu1 %v2414_v3 }
 0x451   :  { %2190 = vmatpush1.bf16.msra.mxu0 %v2613_v59  ;;  %2215 = vmatpush3.bf16.msra.mxu1 %v2650_v11 }
 0x452   :  { %2192 = vmatprep.subr.bf16.mxu0 %v2622_v62  ;;  %2216 = vmatprep.subr.bf16.mxu1 %v2414_v3 }
 0x455   :  { %2194 = vmatpush1.bf16.msra.mxu0 %v2635_v2  ;;  %2218 = vmatpush3.bf16.msra.mxu1 %v2662_v14 }
 0x456   :  { %2220 = vmatprep.subr.bf16.mxu0 %v2448_v5  ;;  %2251 = vmatprep.subr.bf16.mxu1 %v2414_v3 }
 0x50b   :  { %v815_v51 = vpop.f32.mrb[8].mxu0  ;;  %v886_v54 = vpop.f32.mrb[8].mxu1 }
 0x50c   :  { %v890_v55 = vadd.f32 %v1443_v49, %v815_v51  ;;  %v817_v56 = vpop.f32.mrb[9].mxu0  ;;  %v1777_v57 = vpop.f32.mrb[9].mxu1  ;;  %v904_v12 = vadd.f32 %v2712_v33, %v886_v54  ;;  %v1451_v51 = vld [vmem:[%s3057_s0 + $0x88] sm:$0xff] }
 0x50d   :  { %v897_v63 = vadd.f32 %v1444_v60, %v817_v56 }
 0x50e   :  { %v1446_v58 = vmul.f32 -1.442695, %v890_v55 }
 0x50f   :  { %v1447_v0 = vmul.f32 -1.442695, %v897_v63 }
 0x510   :  { %2374 = vpow2.f32 %v1446_v58 }
 0x511   :  { %2376 = vpow2.f32 %v1447_v0 }
 0x51a   :  { %v2375_v1 = vpop.eup %2374 }
 0x51b   :  { %v894_v7 = vadd.f32 1.0, %v2375_v1  ;;  %v2377_v8 = vpop.eup %2376 }
 0x51c   :  { %v901_v20 = vadd.f32 1.0, %v2377_v8 }
 0x51d   :  { %2378 = vrcp.f32 %v894_v7 }
 0x527   :  { %v2379_v13 = vpop.eup %2378 }
 0x528   :  { %v905_v18 = vmul.f32 %v2379_v13, %v904_v12 }
 0x52a   :  { %v906_v19 = vadd.f32 %v1445_v17, %v905_v18  ;;  %v1462_v18 = vld [vmem:[%s3057_s0 + $0xb0] sm:$0xff] }
 0x52c   :  { %2380 = vtanh.f32 %v906_v19 }
 0x52d   :  { %2382 = vrcp.f32 %v901_v20 }
 0x536   :  { %v2381_v22 = vpop.eup %2380 }
 0x537   :  { %v908_v24 = vsub.f32 %v2880_v48, %v2381_v22  ;;  %v2383_v25 = vpop.eup %2382 }
 0x539   :  { %v909_v26 = vmul.f32 %v2383_v25, %v908_v24 }
 0x53b   :  { %v2934_v27 = vadd.f32 %v2381_v22, %v909_v26 }
 0x53d   :  { %1448 = vst [vmem:[%s3059_s3 + $0x20] sm:$0xff] %v2934_v27  ;;  %982 = vmatmul.mubr.f32.vlgmr.msra.gmra.mrb[10].mxu0 %v2934_v27  ;;  %1811 = vmatmul.mubr.f32.vlgmr.msra.gmra.mrb[10].mxu1 %v2934_v27 }
 0x53e   :  { %2222 = vmatpush1.bf16.msra.mxu0 %v2461_v9  ;;  %2253 = vmatpush3.bf16.msra.mxu1 %v2520_v29 }
 0x53f   :  { %2224 = vmatprep.subr.bf16.mxu0 %v2463_v10  ;;  %2254 = vmatprep.subr.bf16.mxu1 %v2414_v3 }
 0x540   :  { %1149 = vmatprep.mubr.f32.mxu0 %v2415_v4  ;;  %1845 = vmatprep.mubr.msk.f32.mxu1 %vm2416_vm0, %v2415_v4 }
 0x542   :  { %2226 = vmatpush1.bf16.msra.mxu0 %v2479_v15  ;;  %2256 = vmatpush3.bf16.msra.mxu1 %v2535_v34 }
 0x543   :  { %2228 = vmatprep.subr.bf16.mxu0 %v2482_v16  ;;  %2257 = vmatprep.subr.bf16.mxu1 %v2414_v3 }
 0x546   :  { %2230 = vmatpush1.bf16.msra.mxu0 %v2497_v21  ;;  %2259 = vmatpush3.bf16.msra.mxu1 %v2563_v43 }
 0x547   :  { %2232 = vmatprep.subr.bf16.mxu0 %v2503_v23  ;;  %2260 = vmatprep.subr.bf16.mxu1 %v2414_v3 }
 0x54a   :  { %2234 = vmatpush1.bf16.msra.mxu0 %v2529_v32  ;;  %2262 = vmatpush3.bf16.msra.mxu1 %v2591_v52 }
 0x54b   :  { %2236 = vmatprep.subr.bf16.mxu0 %v2538_v35  ;;  %2263 = vmatprep.subr.bf16.mxu1 %v2414_v3 }
 0x54e   :  { %2238 = vmatpush1.bf16.msra.mxu0 %v2557_v41  ;;  %2265 = vmatpush3.bf16.msra.mxu1 %v2619_v61 }
 0x54f   :  { %2240 = vmatprep.subr.bf16.mxu0 %v2566_v44  ;;  %2266 = vmatprep.subr.bf16.mxu1 %v2414_v3 }
 0x552   :  { %2242 = vmatpush1.bf16.msra.mxu0 %v2585_v50  ;;  %2268 = vmatpush3.bf16.msra.mxu1 %v2638_v6 }
 0x553   :  { %2244 = vmatprep.subr.bf16.mxu0 %v2594_v53  ;;  %2269 = vmatprep.subr.bf16.mxu1 %v2414_v3 }
 0x556   :  { %2246 = vmatpush1.bf16.msra.mxu0 %v2613_v59  ;;  %2271 = vmatpush3.bf16.msra.mxu1 %v2650_v11 }
 0x557   :  { %2248 = vmatprep.subr.bf16.mxu0 %v2622_v62  ;;  %2272 = vmatprep.subr.bf16.mxu1 %v2414_v3 }
 0x55a   :  { %2250 = vmatpush1.bf16.msra.mxu0 %v2635_v2  ;;  %2274 = vmatpush3.bf16.msra.mxu1 %v2662_v14 }
 0x55b   :  { %2276 = vmatprep.subr.bf16.mxu0 %v2448_v5  ;;  %2307 = vmatprep.subr.bf16.mxu1 %v2414_v3 }
 0x610   :  { %v983_v30 = vpop.f32.mrb[10].mxu0  ;;  %v1054_v31 = vpop.f32.mrb[10].mxu1 }
 0x611   :  { %v1058_v36 = vadd.f32 %v1449_v28, %v983_v30  ;;  %v985_v37 = vpop.f32.mrb[11].mxu0  ;;  %v1812_v38 = vpop.f32.mrb[11].mxu1  ;;  %v1072_v48 = vadd.f32 %v2712_v33, %v1054_v31  ;;  %v1463_v28 = vld [vmem:[%s3057_s0 + $0xb8] sm:$0xff] }
 0x612   :  { %v1065_v42 = vadd.f32 %v1450_v40, %v985_v37 }
 0x613   :  { %v1452_v39 = vmul.f32 -1.442695, %v1058_v36 }
 0x614   :  { %v1453_v45 = vmul.f32 -1.442695, %v1065_v42 }
 0x615   :  { %2384 = vpow2.f32 %v1452_v39 }
 0x616   :  { %2386 = vpow2.f32 %v1453_v45 }
 0x61f   :  { %v2385_v5 = vpop.eup %2384 }
 0x620   :  { %v1062_v46 = vadd.f32 1.0, %v2385_v5  ;;  %v2387_v47 = vpop.eup %2386 }
 0x621   :  { %v1069_v56 = vadd.f32 1.0, %v2387_v47 }
 0x622   :  { %2388 = vrcp.f32 %v1062_v46 }
 0x62c   :  { %v2389_v49 = vpop.eup %2388 }
 0x62d   :  { %v1073_v54 = vmul.f32 %v2389_v49, %v1072_v48 }
 0x62f   :  { %v1074_v55 = vadd.f32 %v1451_v51, %v1073_v54 }
 0x631   :  { %2390 = vtanh.f32 %v1074_v55 }
 0x632   :  { %2392 = vrcp.f32 %v1069_v56 }
 0x63b   :  { %v2391_v57 = vpop.eup %2390 }
 0x63c   :  { %v1076_v58 = vsub.f32 %v2934_v27, %v2391_v57  ;;  %v2393_v60 = vpop.eup %2392 }
 0x63e   :  { %v1077_v63 = vmul.f32 %v2393_v60, %v1076_v58 }
 0x640   :  { %v2988_v0 = vadd.f32 %v2391_v57, %v1077_v63 }
 0x642   :  { %1454 = vst [vmem:[%s3059_s3 + $0x28] sm:$0xff] %v2988_v0  ;;  %1150 = vmatmul.mubr.f32.vlgmr.msra.gmra.mrb[12].mxu0 %v2988_v0  ;;  %1846 = vmatmul.mubr.f32.vlgmr.msra.gmra.mrb[12].mxu1 %v2988_v0 }
 0x643   :  { %2278 = vmatpush1.bf16.msra.mxu0 %v2461_v9  ;;  %2309 = vmatpush3.bf16.msra.mxu1 %v2520_v29  ;;  %v1456_v29 = vld [vmem:[%s3057_s0 + $0x98] sm:$0xff] }
 0x644   :  { %2280 = vmatprep.subr.bf16.mxu0 %v2463_v10  ;;  %2310 = vmatprep.subr.bf16.mxu1 %v2414_v3 }
 0x645   :  { %1317 = vmatprep.mubr.f32.mxu0 %v2415_v4  ;;  %1880 = vmatprep.mubr.msk.f32.mxu1 %vm2416_vm0, %v2415_v4  ;;  %v1455_v4 = vld [vmem:[%s3057_s0 + $0x90] sm:$0xff] }
 0x647   :  { %2282 = vmatpush1.bf16.msra.mxu0 %v2479_v15  ;;  %2312 = vmatpush3.bf16.msra.mxu1 %v2535_v34 }
 0x648   :  { %2284 = vmatprep.subr.bf16.mxu0 %v2482_v16  ;;  %2313 = vmatprep.subr.bf16.mxu1 %v2414_v3 }
 0x64b   :  { %2286 = vmatpush1.bf16.msra.mxu0 %v2497_v21  ;;  %2315 = vmatpush3.bf16.msra.mxu1 %v2563_v43 }
 0x64c   :  { %2288 = vmatprep.subr.bf16.mxu0 %v2503_v23  ;;  %2316 = vmatprep.subr.bf16.mxu1 %v2414_v3 }
 0x64f   :  { %2290 = vmatpush1.bf16.msra.mxu0 %v2529_v32  ;;  %2318 = vmatpush3.bf16.msra.mxu1 %v2591_v52 }
 0x650   :  { %2292 = vmatprep.subr.bf16.mxu0 %v2538_v35  ;;  %2319 = vmatprep.subr.bf16.mxu1 %v2414_v3 }
 0x653   :  { %2294 = vmatpush1.bf16.msra.mxu0 %v2557_v41  ;;  %2321 = vmatpush3.bf16.msra.mxu1 %v2619_v61 }
 0x654   :  { %2296 = vmatprep.subr.bf16.mxu0 %v2566_v44  ;;  %2322 = vmatprep.subr.bf16.mxu1 %v2414_v3 }
 0x657   :  { %2298 = vmatpush1.bf16.msra.mxu0 %v2585_v50  ;;  %2324 = vmatpush3.bf16.msra.mxu1 %v2638_v6  ;;  %v1457_v50 = vld [vmem:[%s3057_s0 + $0xa0] sm:$0xff] }
 0x658   :  { %2300 = vmatprep.subr.bf16.mxu0 %v2594_v53  ;;  %2325 = vmatprep.subr.bf16.mxu1 %v2414_v3 }
 0x65b   :  { %2302 = vmatpush1.bf16.msra.mxu0 %v2613_v59  ;;  %2327 = vmatpush3.bf16.msra.mxu1 %v2650_v11 }
 0x65c   :  { %2304 = vmatprep.subr.bf16.mxu0 %v2622_v62  ;;  %2328 = vmatprep.subr.bf16.mxu1 %v2414_v3 }
 0x65f   :  { %2306 = vmatpush1.bf16.msra.mxu0 %v2635_v2  ;;  %2330 = vmatpush3.bf16.msra.mxu1 %v2662_v14  ;;  %v1461_v14 = vld [vmem:[%s3057_s0 + $0xa8] sm:$0xff] }
 0x715   :  { %v1151_v9 = vpop.f32.mrb[12].mxu0  ;;  %v1222_v10 = vpop.f32.mrb[12].mxu1 }
 0x716   :  { %v1226_v15 = vadd.f32 %v1455_v4, %v1151_v9  ;;  %v1153_v16 = vpop.f32.mrb[13].mxu0  ;;  %v1847_v21 = vpop.f32.mrb[13].mxu1  ;;  %v1240_v43 = vadd.f32 %v2712_v33, %v1222_v10 }
 0x717   :  { %v1233_v3 = vadd.f32 %v1456_v29, %v1153_v16 }
 0x718   :  { %v1458_v23 = vmul.f32 -1.442695, %v1226_v15 }
 0x719   :  { %v1459_v32 = vmul.f32 -1.442695, %v1233_v3 }
 0x71a   :  { %2394 = vpow2.f32 %v1458_v23 }
 0x71b   :  { %2396 = vpow2.f32 %v1459_v32 }
 0x724   :  { %v2395_v34 = vpop.eup %2394 }
 0x725   :  { %v1230_v35 = vadd.f32 1.0, %v2395_v34  ;;  %v2397_v41 = vpop.eup %2396 }
 0x726   :  { %v1237_v59 = vadd.f32 1.0, %v2397_v41 }
 0x727   :  { %2398 = vrcp.f32 %v1230_v35 }
 0x731   :  { %v2399_v44 = vpop.eup %2398 }
 0x732   :  { %v1241_v52 = vmul.f32 %v2399_v44, %v1240_v43 }
 0x734   :  { %v1242_v53 = vadd.f32 %v1457_v50, %v1241_v52 }
 0x736   :  { %2400 = vtanh.f32 %v1242_v53 }
 0x737   :  { %2402 = vrcp.f32 %v1237_v59 }
 0x740   :  { %v2401_v61 = vpop.eup %2400 }
 0x741   :  { %v1244_v62 = vsub.f32 %v2988_v0, %v2401_v61  ;;  %v2403_v2 = vpop.eup %2402 }
 0x743   :  { %v1245_v6 = vmul.f32 %v2403_v2, %v1244_v62 }
 0x745   :  { %v1246_v11 = vadd.f32 %v2401_v61, %v1245_v6 }
 0x747   :  { %1460 = vst [vmem:[%s3059_s3 + $0x30] sm:$0xff] %v1246_v11  ;;  %1318 = vmatmul.mubr.f32.vlgmr.msra.gmra.mrb[14].mxu0 %v1246_v11  ;;  %1881 = vmatmul.mubr.f32.vlgmr.msra.gmra.mrb[14].mxu1 %v1246_v11 }
 0x81a   :  { %v1319_v1 = vpop.f32.mrb[14].mxu0  ;;  %v1390_v7 = vpop.f32.mrb[14].mxu1 }
 0x81b   :  { %v1394_v8 = vadd.f32 %v1461_v14, %v1319_v1  ;;  %v1321_v12 = vpop.f32.mrb[15].mxu0  ;;  %v1882_v13 = vpop.f32.mrb[15].mxu1  ;;  %v1408_v26 = vadd.f32 %v2712_v33, %v1390_v7 }
 0x81c   :  { %v1401_v19 = vadd.f32 %v1462_v18, %v1321_v12 }
 0x81d   :  { %v1464_v17 = vmul.f32 -1.442695, %v1394_v8 }
 0x81e   :  { %v1465_v20 = vmul.f32 -1.442695, %v1401_v19 }
 0x81f   :  { %2404 = vpow2.f32 %v1464_v17 }
 0x820   :  { %2406 = vpow2.f32 %v1465_v20 }
 0x829   :  { %v2405_v22 = vpop.eup %2404 }
 0x82a   :  { %v1398_v24 = vadd.f32 1.0, %v2405_v22  ;;  %v2407_v25 = vpop.eup %2406 }
 0x82b   :  { %v1405_v36 = vadd.f32 1.0, %v2407_v25 }
 0x82c   :  { %2408 = vrcp.f32 %v1398_v24 }
 0x836   :  { %v2409_v27 = vpop.eup %2408 }
 0x837   :  { %v1409_v30 = vmul.f32 %v2409_v27, %v1408_v26 }
 0x839   :  { %v1410_v31 = vadd.f32 %v1463_v28, %v1409_v30 }
 0x83b   :  { %2410 = vtanh.f32 %v1410_v31 }
 0x83c   :  { %2412 = vrcp.f32 %v1405_v36 }
 0x845   :  { %v2411_v37 = vpop.eup %2410 }
 0x846   :  { %v1412_v38 = vsub.f32 %v1246_v11, %v2411_v37  ;;  %v2413_v39 = vpop.eup %2412 }
 0x848   :  { %v1413_v40 = vmul.f32 %v2413_v39, %v1412_v38 }
 0x84a   :  { %v1414_v42 = vadd.f32 %v2411_v37, %v1413_v40 }
 0x84c   :  { %1466 = vst [vmem:[%s3059_s3 + $0x38] sm:$0xff] %v1414_v42 }

// kernel: forward.2
= control target key start
LH: loop header
LB: loop body
LE: loop exit
PB: predicated region body
PF: predicated region fallthrough
CT: control target
= control target key end

     0   :  { %8 = vsyncpa [#allocation4], 0  ;;  %s2456_s12 = smov [#allocation3]   ;;  %s2969_s0 = inlined_call_operand.vmem [shape: f32[8,8,384], index: 0, kind: input, shape index: {}]   ;;  %s2970_s1 = inlined_call_operand.hbm [shape: f32[128,384], index: 1, kind: input, shape index: {}]   ;;  %s2971_s2 = inlined_call_operand.vmem [shape: f32[1,128], index: 2, kind: input, shape index: {}]   ;;  %s2972_s3 = inlined_call_operand.vmem [shape: f32[8,8,128], index: 3, kind: output, shape index: {}]  }
   0x1   :  { %s16_s13 = sshll.u32 %s2456_s12, 4  ;;  %s2432_s16 = scalar_lea.hbm %s2970_s1, 6144  ;;  %s17_s13 = int_to_ptr.vmem [resolvable:$true] %s16_s13 }
   0x2   :  { %p2433_p0 = scmp.ne.s32.totalorder %s2970_s1, %s2432_s16  ;;  %p2436_p1 = scmp.lt.u32.totalorder %s2432_s16, %s2970_s1 }
   0x4   :  { %p2438_p2 = pnand %p2436_p1, %p2433_p0 }
   0x6   :  { %2441 = shalt.err (!%p2438_p2)
}
   0x7   :  { %s2442_s21 = scalar_lea.vmem %s17_s13, 6144  ;;  %p2447_p4 = scmp.lt.s32.totalorder %s17_s13, %s17_s13 }
   0x8   :  { %p2443_p3 = scmp.ne.s32.totalorder %s17_s13, %s2442_s21  ;;  %p2448_p5 = scmp.lt.s32.totalorder %s2442_s21, %s2442_s21 }
   0xa   :  { %p2449_p6 = por %p2448_p5, %p2447_p4 }
   0xc   :  { %p2450_p7 = pnand %p2449_p6, %p2443_p3 }
   0xe   :  { %2453 = shalt.err (!%p2450_p7)
}
   0xf   :  { %s2457_s22 = smov 384   ;;  %s2458_s23 = smov 24  }
  0x10   :  { %22 = dma.hbm_to_vmem [thread:$0]  %s2970_s1, 6144, %s17_s13, [#allocation4], %s2457_s22, %s2457_s22, %s2458_s23  }
  0x11   :  { %2454 = dma.done.wait [#allocation4], 6144  }
  0x12   :  { %2455 = vsyncadd [#allocation4], 4294961152  ;;  %v2459_v0 = vmov 0.0|0.0   ;;  %v2460_v1 = vmov 0.0   ;;  %vm2461_vm0 = vmmov 0   ;;  %v34_v2 = vld [vmem:[#allocation3 + $0x8] sm:$0xff] }
  0x13   :  { %1930 = vmatprep.subr.bf16.mxu1 %v2459_v0  ;;  %150 = vmatprep.mubr.f32.mxu0 %v2460_v1  ;;  %v37_v3 = vld [vmem:[#allocation3 + $0x20] sm:$0xff]  ;;  %v36_v6 = vld [vmem:[#allocation3 + $0x18] sm:$0xff]  ;;  %v43_v8 = vld [vmem:[#allocation3 + $0x50] sm:$0xff] }
  0x14   :  { %1650 = vmatprep.mubr.msk.f32.mxu1 %vm2461_vm0, %v2460_v1  ;;  %v33_v4 = vld [vmem:[#allocation3] sm:$0xff]  ;;  %v2498_v5 = vpack.c.bf16 %v37_v3, %v34_v2  ;;  %v40_v7 = vld [vmem:[#allocation3 + $0x38] sm:$0xff]  ;;  %v39_v11 = vld [vmem:[#allocation3 + $0x30] sm:$0xff] }
  0x15   :  { %v2500_v9 = vpack.c.bf16 %v36_v6, %v33_v4  ;;  %v2502_v10 = vpack.c.bf16 %v43_v8, %v40_v7  ;;  %v42_v12 = vld [vmem:[#allocation3 + $0x48] sm:$0xff]  ;;  %v49_v14 = vld [vmem:[#allocation3 + $0x80] sm:$0xff]  ;;  %v48_v18 = vld [vmem:[#allocation3 + $0x78] sm:$0xff] }
  0x16   :  { %v46_v13 = vld [vmem:[#allocation3 + $0x68] sm:$0xff]  ;;  %1899 = vmatprep.subr.bf16.mxu0 %v2498_v5  ;;  %v2506_v15 = vpack.c.bf16 %v42_v12, %v39_v11  ;;  %v45_v17 = vld [vmem:[#allocation3 + $0x60] sm:$0xff]  ;;  %v52_v19 = vld [vmem:[#allocation3 + $0x98] sm:$0xff] }
  0x17   :  { %1901 = vmatpush1.bf16.msra.mxu0 %v2500_v9  ;;  %v2509_v16 = vpack.c.bf16 %v49_v14, %v46_v13  ;;  %v55_v20 = vld [vmem:[#allocation3 + $0xb0] sm:$0xff]  ;;  %v2512_v21 = vpack.c.bf16 %v48_v18, %v45_v17  ;;  %v54_v24 = vld [vmem:[#allocation3 + $0xa8] sm:$0xff]  ;;  %v61_v28 = vld [vmem:[#allocation3 + $0xe0] sm:$0xff] }
  0x18   :  { %1903 = vmatprep.subr.bf16.mxu0 %v2502_v10  ;;  %v51_v22 = vld [vmem:[#allocation3 + $0x90] sm:$0xff]  ;;  %v2515_v23 = vpack.c.bf16 %v55_v20, %v52_v19  ;;  %v38_v26 = vld [vmem:[#allocation3 + $0x28] sm:$0xff]  ;;  %v41_v30 = vld [vmem:[#allocation3 + $0x40] sm:$0xff] }
  0x19   :  { %v35_v25 = vld [vmem:[#allocation3 + $0x10] sm:$0xff]  ;;  %v58_v27 = vld [vmem:[#allocation3 + $0xc8] sm:$0xff]  ;;  %v44_v31 = vld [vmem:[#allocation3 + $0x58] sm:$0xff]  ;;  %v2520_v32 = vpack.c.bf16 %v54_v24, %v51_v22 }
  0x1a   :  { %v2517_v29 = vpack.c.bf16 %v38_v26, %v35_v25  ;;  %v57_v33 = vld [vmem:[#allocation3 + $0xc0] sm:$0xff]  ;;  %v2523_v34 = vpack.c.bf16 %v44_v31, %v41_v30  ;;  %v2526_v35 = vpack.c.bf16 %v61_v28, %v58_v27  ;;  %v60_v36 = vld [vmem:[#allocation3 + $0xd8] sm:$0xff]  ;;  %v47_v37 = vld [vmem:[#allocation3 + $0x70] sm:$0xff] }
  0x1b   :  { %1905 = vmatpush1.bf16.msra.mxu0 %v2506_v15  ;;  %v50_v38 = vld [vmem:[#allocation3 + $0x88] sm:$0xff]  ;;  %v64_v39 = vld [vmem:[#allocation3 + $0xf8] sm:$0xff]  ;;  %v67_v40 = vld [vmem:[#allocation3 + $0x110] sm:$0xff]  ;;  %v2530_v41 = vpack.c.bf16 %v60_v36, %v57_v33 }
  0x1c   :  { %1907 = vmatprep.subr.bf16.mxu0 %v2509_v16  ;;  %1932 = vmatpush3.bf16.msra.mxu1 %v2517_v29  ;;  %v63_v42 = vld [vmem:[#allocation3 + $0xf0] sm:$0xff]  ;;  %v2533_v43 = vpack.c.bf16 %v50_v38, %v47_v37  ;;  %v2536_v44 = vpack.c.bf16 %v67_v40, %v64_v39  ;;  %v66_v45 = vld [vmem:[#allocation3 + $0x108] sm:$0xff]  ;;  %v53_v46 = vld [vmem:[#allocation3 + $0xa0] sm:$0xff] }
  0x1d   :  { %1933 = vmatprep.subr.bf16.mxu1 %v2459_v0  ;;  %v56_v47 = vld [vmem:[#allocation3 + $0xb8] sm:$0xff]  ;;  %v70_v48 = vld [vmem:[#allocation3 + $0x128] sm:$0xff]  ;;  %v73_v49 = vld [vmem:[#allocation3 + $0x140] sm:$0xff]  ;;  %v2540_v50 = vpack.c.bf16 %v66_v45, %v63_v42 }
  0x1e   :  { %v69_v51 = vld [vmem:[#allocation3 + $0x120] sm:$0xff]  ;;  %v2543_v52 = vpack.c.bf16 %v56_v47, %v53_v46  ;;  %v2546_v53 = vpack.c.bf16 %v73_v49, %v70_v48  ;;  %v72_v54 = vld [vmem:[#allocation3 + $0x138] sm:$0xff]  ;;  %v59_v55 = vld [vmem:[#allocation3 + $0xd0] sm:$0xff] }
  0x1f   :  { %1909 = vmatpush1.bf16.msra.mxu0 %v2512_v21  ;;  %v62_v56 = vld [vmem:[#allocation3 + $0xe8] sm:$0xff]  ;;  %v76_v57 = vld [vmem:[#allocation3 + $0x158] sm:$0xff]  ;;  %v79_v58 = vld [vmem:[#allocation3 + $0x170] sm:$0xff]  ;;  %v2550_v59 = vpack.c.bf16 %v72_v54, %v69_v51 }
  0x20   :  { %1911 = vmatprep.subr.bf16.mxu0 %v2515_v23  ;;  %1935 = vmatpush3.bf16.msra.mxu1 %v2523_v34  ;;  %v75_v60 = vld [vmem:[#allocation3 + $0x150] sm:$0xff]  ;;  %v2553_v61 = vpack.c.bf16 %v62_v56, %v59_v55  ;;  %v2556_v62 = vpack.c.bf16 %v79_v58, %v76_v57  ;;  %v78_v63 = vld [vmem:[#allocation3 + $0x168] sm:$0xff]  ;;  %v65_v2 = vld [vmem:[#allocation3 + $0x100] sm:$0xff] }
  0x21   :  { %1936 = vmatprep.subr.bf16.mxu1 %v2459_v0  ;;  %v68_v3 = vld [vmem:[#allocation3 + $0x118] sm:$0xff]  ;;  %v2560_v4 = vpack.c.bf16 %v78_v63, %v75_v60  ;;  %v71_v7 = vld [vmem:[#allocation3 + $0x130] sm:$0xff]  ;;  %v74_v8 = vld [vmem:[#allocation3 + $0x148] sm:$0xff] }
  0x22   :  { %v2563_v6 = vpack.c.bf16 %v68_v3, %v65_v2  ;;  %v2569_v11 = vpack.c.bf16 %v74_v8, %v71_v7  ;;  %v77_v12 = vld [vmem:[#allocation3 + $0x160] sm:$0xff]  ;;  %v80_v13 = vld [vmem:[#allocation3 + $0x178] sm:$0xff]  ;;  %v84_v24 = vld [vmem:[%s2969_s0 + $0x8] sm:$0xff] }
  0x23   :  { %1913 = vmatpush1.bf16.msra.mxu0 %v2520_v32  ;;  %v2575_v14 = vpack.c.bf16 %v80_v13, %v77_v12  ;;  %v83_v17 = vld [vmem:[%s2969_s0] sm:$0xff]  ;;  %v85_v39 = vld [vmem:[%s2969_s0 + $0x10] sm:$0xff]  ;;  %v1440_v54 = vld [vmem:[%s2969_s0 + $0x18] sm:$0xff] }
  0x24   :  { %1915 = vmatprep.subr.bf16.mxu0 %v2526_v35  ;;  %1938 = vmatpush3.bf16.msra.mxu1 %v2533_v43  ;;  %v2625_v33 = vld [vmem:[%s2971_s2] ss:$0 sm:$0xff] }
  0x25   :  { %1939 = vmatprep.subr.bf16.mxu1 %v2459_v0  ;;  %v1441_v2 = vld [vmem:[%s2969_s0 + $0x20] sm:$0xff] }
  0x27   :  { %1917 = vmatpush1.bf16.msra.mxu0 %v2530_v41 }
  0x28   :  { %1919 = vmatprep.subr.bf16.mxu0 %v2536_v44  ;;  %1941 = vmatpush3.bf16.msra.mxu1 %v2543_v52 }
  0x29   :  { %1942 = vmatprep.subr.bf16.mxu1 %v2459_v0 }
  0x2b   :  { %1921 = vmatpush1.bf16.msra.mxu0 %v2540_v50 }
  0x2c   :  { %1923 = vmatprep.subr.bf16.mxu0 %v2546_v53  ;;  %1944 = vmatpush3.bf16.msra.mxu1 %v2553_v61 }
  0x2d   :  { %1945 = vmatprep.subr.bf16.mxu1 %v2459_v0 }
  0x2f   :  { %1925 = vmatpush1.bf16.msra.mxu0 %v2550_v59 }
  0x30   :  { %1927 = vmatprep.subr.bf16.mxu0 %v2556_v62  ;;  %1947 = vmatpush3.bf16.msra.mxu1 %v2563_v6 }
  0x31   :  { %1948 = vmatprep.subr.bf16.mxu1 %v2459_v0 }
  0x33   :  { %1929 = vmatpush1.bf16.msra.mxu0 %v2560_v4 }
  0x34   :  { %1955 = vmatprep.subr.bf16.mxu0 %v2498_v5  ;;  %1950 = vmatpush3.bf16.msra.mxu1 %v2569_v11 }
  0x35   :  { %1951 = vmatprep.subr.bf16.mxu1 %v2459_v0 }
  0x36   :  { %151 = vmatmul.mubr.f32.vlgmr.msra.gmra.mrb[0].mxu0 %v2460_v1 }
  0x37   :  { %1957 = vmatpush1.bf16.msra.mxu0 %v2500_v9  ;;  %323 = vmatprep.mubr.f32.mxu0 %v2460_v1 }
  0x38   :  { %1959 = vmatprep.subr.bf16.mxu0 %v2502_v10  ;;  %1953 = vmatpush3.bf16.msra.mxu1 %v2575_v14 }
  0x39   :  { %1986 = vmatprep.subr.bf16.mxu1 %v2459_v0 }
  0x3b   :  { %1961 = vmatpush1.bf16.msra.mxu0 %v2506_v15  ;;  %1651 = vmatmul.mubr.f32.vlgmr.msra.gmra.mrb[0].mxu1 %v2460_v1 }
  0x3c   :  { %1963 = vmatprep.subr.bf16.mxu0 %v2509_v16  ;;  %1988 = vmatpush3.bf16.msra.mxu1 %v2517_v29 }
  0x3d   :  { %1989 = vmatprep.subr.bf16.mxu1 %v2459_v0  ;;  %1685 = vmatprep.mubr.msk.f32.mxu1 %vm2461_vm0, %v2460_v1 }
  0x3f   :  { %1965 = vmatpush1.bf16.msra.mxu0 %v2512_v21 }
  0x40   :  { %1967 = vmatprep.subr.bf16.mxu0 %v2515_v23  ;;  %1991 = vmatpush3.bf16.msra.mxu1 %v2523_v34 }
  0x41   :  { %1992 = vmatprep.subr.bf16.mxu1 %v2459_v0 }
  0x43   :  { %1969 = vmatpush1.bf16.msra.mxu0 %v2520_v32 }
  0x44   :  { %1971 = vmatprep.subr.bf16.mxu0 %v2526_v35  ;;  %1994 = vmatpush3.bf16.msra.mxu1 %v2533_v43 }
  0x45   :  { %1995 = vmatprep.subr.bf16.mxu1 %v2459_v0 }
  0x47   :  { %1973 = vmatpush1.bf16.msra.mxu0 %v2530_v41 }
  0x48   :  { %1975 = vmatprep.subr.bf16.mxu0 %v2536_v44  ;;  %1997 = vmatpush3.bf16.msra.mxu1 %v2543_v52 }
  0x49   :  { %1998 = vmatprep.subr.bf16.mxu1 %v2459_v0 }
  0x4b   :  { %1977 = vmatpush1.bf16.msra.mxu0 %v2540_v50 }
  0x4c   :  { %1979 = vmatprep.subr.bf16.mxu0 %v2546_v53  ;;  %2000 = vmatpush3.bf16.msra.mxu1 %v2553_v61 }
  0x4d   :  { %2001 = vmatprep.subr.bf16.mxu1 %v2459_v0 }
  0x4f   :  { %1981 = vmatpush1.bf16.msra.mxu0 %v2550_v59 }
  0x50   :  { %1983 = vmatprep.subr.bf16.mxu0 %v2556_v62  ;;  %2003 = vmatpush3.bf16.msra.mxu1 %v2563_v6 }
  0x51   :  { %2004 = vmatprep.subr.bf16.mxu1 %v2459_v0 }
  0x53   :  { %1985 = vmatpush1.bf16.msra.mxu0 %v2560_v4 }
  0x54   :  { %2011 = vmatprep.subr.bf16.mxu0 %v2498_v5  ;;  %2006 = vmatpush3.bf16.msra.mxu1 %v2569_v11 }
  0x55   :  { %2007 = vmatprep.subr.bf16.mxu1 %v2459_v0 }
  0x58   :  { %2009 = vmatpush3.bf16.msra.mxu1 %v2575_v14 }
  0x59   :  { %2042 = vmatprep.subr.bf16.mxu1 %v2459_v0 }
 0x109   :  { %v152_v18 = vpop.f32.mrb[0].mxu0 }
 0x10a   :  { %v227_v19 = vadd.f32 %v152_v18, %v83_v17  ;;  %v154_v20 = vpop.f32.mrb[1].mxu0 }
 0x10b   :  { %v234_v26 = vadd.f32 %v154_v20, %v84_v24 }
 0x10c   :  { %v1437_v22 = vmul.f32 -1.442695, %v227_v19  ;;  %v1442_v19 = vld [vmem:[%s2969_s0 + $0x28] sm:$0xff] }
 0x10d   :  { %v1438_v28 = vmul.f32 -1.442695, %v234_v26 }
 0x10e   :  { %2352 = vpow2.f32 %v1437_v22  ;;  %v223_v25 = vpop.f32.mrb[0].mxu1 }
 0x10f   :  { %v1652_v27 = vpop.f32.mrb[1].mxu1  ;;  %2354 = vpow2.f32 %v1438_v28  ;;  %v247_v36 = vadd.f32 %v2625_v33, %v223_v25 }
 0x118   :  { %v2353_v30 = vpop.eup %2352 }
 0x119   :  { %v231_v31 = vadd.f32 1.0, %v2353_v30  ;;  %v2355_v37 = vpop.eup %2354 }
 0x11a   :  { %v238_v42 = vadd.f32 1.0, %v2355_v37 }
 0x11b   :  { %2356 = vrcp.f32 %v231_v31  ;;  %v1446_v31 = vld [vmem:[%s2969_s0 + $0x30] sm:$0xff] }
 0x125   :  { %v2357_v38 = vpop.eup %2356 }
 0x126   :  { %v248_v40 = vmul.f32 %v2357_v38, %v247_v36 }
 0x128   :  { %v249_v45 = vadd.f32 %v248_v40, %v85_v39 }
 0x12a   :  { %2358 = vtanh.f32 %v249_v45  ;;  %v1447_v45 = vld [vmem:[%s2969_s0 + $0x38] sm:$0xff] }
 0x12b   :  { %2360 = vrcp.f32 %v238_v42 }
 0x134   :  { %v2359_v46 = vpop.eup %2358 }
 0x135   :  { %v251_v47 = vsub.f32 0.0, %v2359_v46  ;;  %v2361_v48 = vpop.eup %2360 }
 0x137   :  { %v252_v49 = vmul.f32 %v2361_v48, %v251_v47 }
 0x139   :  { %v2631_v51 = vadd.f32 %v2359_v46, %v252_v49 }
 0x13b   :  { %254 = vst [vmem:[%s2972_s3] sm:$0xff] %v2631_v51  ;;  %324 = vmatmul.mubr.f32.vlgmr.msra.gmra.mrb[2].mxu0 %v2631_v51  ;;  %1686 = vmatmul.mubr.f32.vlgmr.msra.gmra.mrb[2].mxu1 %v2631_v51 }
 0x13c   :  { %2013 = vmatpush1.bf16.msra.mxu0 %v2500_v9  ;;  %2044 = vmatpush3.bf16.msra.mxu1 %v2517_v29 }
 0x13d   :  { %2015 = vmatprep.subr.bf16.mxu0 %v2502_v10  ;;  %2045 = vmatprep.subr.bf16.mxu1 %v2459_v0 }
 0x13e   :  { %491 = vmatprep.mubr.f32.mxu0 %v2460_v1  ;;  %1720 = vmatprep.mubr.msk.f32.mxu1 %vm2461_vm0, %v2460_v1 }
 0x140   :  { %2017 = vmatpush1.bf16.msra.mxu0 %v2506_v15  ;;  %2047 = vmatpush3.bf16.msra.mxu1 %v2523_v34 }
 0x141   :  { %2019 = vmatprep.subr.bf16.mxu0 %v2509_v16  ;;  %2048 = vmatprep.subr.bf16.mxu1 %v2459_v0 }
 0x144   :  { %2021 = vmatpush1.bf16.msra.mxu0 %v2512_v21  ;;  %2050 = vmatpush3.bf16.msra.mxu1 %v2533_v43 }
 0x145   :  { %2023 = vmatprep.subr.bf16.mxu0 %v2515_v23  ;;  %2051 = vmatprep.subr.bf16.mxu1 %v2459_v0 }
 0x148   :  { %2025 = vmatpush1.bf16.msra.mxu0 %v2520_v32  ;;  %2053 = vmatpush3.bf16.msra.mxu1 %v2543_v52 }
 0x149   :  { %2027 = vmatprep.subr.bf16.mxu0 %v2526_v35  ;;  %2054 = vmatprep.subr.bf16.mxu1 %v2459_v0 }
 0x14c   :  { %2029 = vmatpush1.bf16.msra.mxu0 %v2530_v41  ;;  %2056 = vmatpush3.bf16.msra.mxu1 %v2553_v61 }
 0x14d   :  { %2031 = vmatprep.subr.bf16.mxu0 %v2536_v44  ;;  %2057 = vmatprep.subr.bf16.mxu1 %v2459_v0 }
 0x150   :  { %2033 = vmatpush1.bf16.msra.mxu0 %v2540_v50  ;;  %2059 = vmatpush3.bf16.msra.mxu1 %v2563_v6 }
 0x151   :  { %2035 = vmatprep.subr.bf16.mxu0 %v2546_v53  ;;  %2060 = vmatprep.subr.bf16.mxu1 %v2459_v0 }
 0x154   :  { %2037 = vmatpush1.bf16.msra.mxu0 %v2550_v59  ;;  %2062 = vmatpush3.bf16.msra.mxu1 %v2569_v11 }
 0x155   :  { %2039 = vmatprep.subr.bf16.mxu0 %v2556_v62  ;;  %2063 = vmatprep.subr.bf16.mxu1 %v2459_v0 }
 0x158   :  { %2041 = vmatpush1.bf16.msra.mxu0 %v2560_v4  ;;  %2065 = vmatpush3.bf16.msra.mxu1 %v2575_v14 }
 0x159   :  { %2067 = vmatprep.subr.bf16.mxu0 %v2498_v5  ;;  %2098 = vmatprep.subr.bf16.mxu1 %v2459_v0 }
 0x20e   :  { %v325_v55 = vpop.f32.mrb[2].mxu0  ;;  %v396_v56 = vpop.f32.mrb[2].mxu1 }
 0x20f   :  { %v400_v57 = vadd.f32 %v1440_v54, %v325_v55  ;;  %v327_v58 = vpop.f32.mrb[3].mxu0  ;;  %v1687_v60 = vpop.f32.mrb[3].mxu1  ;;  %v414_v17 = vadd.f32 %v2625_v33, %v396_v56  ;;  %v1448_v56 = vld [vmem:[%s2969_s0 + $0x40] sm:$0xff] }
 0x210   :  { %v407_v3 = vadd.f32 %v1441_v2, %v327_v58 }
 0x211   :  { %v1443_v63 = vmul.f32 -1.442695, %v400_v57 }
 0x212   :  { %v1444_v7 = vmul.f32 -1.442695, %v407_v3 }
 0x213   :  { %2362 = vpow2.f32 %v1443_v63 }
 0x214   :  { %2364 = vpow2.f32 %v1444_v7 }
 0x21d   :  { %v2363_v8 = vpop.eup %2362 }
 0x21e   :  { %v404_v12 = vadd.f32 1.0, %v2363_v8  ;;  %v2365_v13 = vpop.eup %2364 }
 0x21f   :  { %v411_v24 = vadd.f32 1.0, %v2365_v13 }
 0x220   :  { %2366 = vrcp.f32 %v404_v12  ;;  %v1452_v12 = vld [vmem:[%s2969_s0 + $0x48] sm:$0xff] }
 0x22a   :  { %v2367_v18 = vpop.eup %2366 }
 0x22b   :  { %v415_v20 = vmul.f32 %v2367_v18, %v414_v17 }
 0x22d   :  { %v416_v22 = vadd.f32 %v1442_v19, %v415_v20 }
 0x22f   :  { %2368 = vtanh.f32 %v416_v22 }
 0x230   :  { %2370 = vrcp.f32 %v411_v24  ;;  %v1453_v24 = vld [vmem:[%s2969_s0 + $0x50] sm:$0xff] }
 0x239   :  { %v2369_v25 = vpop.eup %2368 }
 0x23a   :  { %v418_v26 = vsub.f32 %v2631_v51, %v2369_v25  ;;  %v2371_v27 = vpop.eup %2370 }
 0x23c   :  { %v419_v28 = vmul.f32 %v2371_v27, %v418_v26 }
 0x23e   :  { %v2685_v30 = vadd.f32 %v2369_v25, %v419_v28 }
 0x240   :  { %1445 = vst [vmem:[%s2972_s3 + $0x8] sm:$0xff] %v2685_v30  ;;  %492 = vmatmul.mubr.f32.vlgmr.msra.gmra.mrb[4].mxu0 %v2685_v30  ;;  %1721 = vmatmul.mubr.f32.vlgmr.msra.gmra.mrb[4].mxu1 %v2685_v30 }
 0x241   :  { %2069 = vmatpush1.bf16.msra.mxu0 %v2500_v9  ;;  %2100 = vmatpush3.bf16.msra.mxu1 %v2517_v29 }
 0x242   :  { %2071 = vmatprep.subr.bf16.mxu0 %v2502_v10  ;;  %2101 = vmatprep.subr.bf16.mxu1 %v2459_v0 }
 0x243   :  { %659 = vmatprep.mubr.f32.mxu0 %v2460_v1  ;;  %1755 = vmatprep.mubr.msk.f32.mxu1 %vm2461_vm0, %v2460_v1 }
 0x245   :  { %2073 = vmatpush1.bf16.msra.mxu0 %v2506_v15  ;;  %2103 = vmatpush3.bf16.msra.mxu1 %v2523_v34 }
 0x246   :  { %2075 = vmatprep.subr.bf16.mxu0 %v2509_v16  ;;  %2104 = vmatprep.subr.bf16.mxu1 %v2459_v0 }
 0x249   :  { %2077 = vmatpush1.bf16.msra.mxu0 %v2512_v21  ;;  %2106 = vmatpush3.bf16.msra.mxu1 %v2533_v43 }
 0x24a   :  { %2079 = vmatprep.subr.bf16.mxu0 %v2515_v23  ;;  %2107 = vmatprep.subr.bf16.mxu1 %v2459_v0 }
 0x24d   :  { %2081 = vmatpush1.bf16.msra.mxu0 %v2520_v32  ;;  %2109 = vmatpush3.bf16.msra.mxu1 %v2543_v52 }
 0x24e   :  { %2083 = vmatprep.subr.bf16.mxu0 %v2526_v35  ;;  %2110 = vmatprep.subr.bf16.mxu1 %v2459_v0 }
 0x251   :  { %2085 = vmatpush1.bf16.msra.mxu0 %v2530_v41  ;;  %2112 = vmatpush3.bf16.msra.mxu1 %v2553_v61 }
 0x252   :  { %2087 = vmatprep.subr.bf16.mxu0 %v2536_v44  ;;  %2113 = vmatprep.subr.bf16.mxu1 %v2459_v0 }
 0x255   :  { %2089 = vmatpush1.bf16.msra.mxu0 %v2540_v50  ;;  %2115 = vmatpush3.bf16.msra.mxu1 %v2563_v6 }
 0x256   :  { %2091 = vmatprep.subr.bf16.mxu0 %v2546_v53  ;;  %2116 = vmatprep.subr.bf16.mxu1 %v2459_v0 }
 0x259   :  { %2093 = vmatpush1.bf16.msra.mxu0 %v2550_v59  ;;  %2118 = vmatpush3.bf16.msra.mxu1 %v2569_v11 }
 0x25a   :  { %2095 = vmatprep.subr.bf16.mxu0 %v2556_v62  ;;  %2119 = vmatprep.subr.bf16.mxu1 %v2459_v0 }
 0x25d   :  { %2097 = vmatpush1.bf16.msra.mxu0 %v2560_v4  ;;  %2121 = vmatpush3.bf16.msra.mxu1 %v2575_v14 }
 0x25e   :  { %2123 = vmatprep.subr.bf16.mxu0 %v2498_v5  ;;  %2154 = vmatprep.subr.bf16.mxu1 %v2459_v0 }
 0x313   :  { %v493_v36 = vpop.f32.mrb[4].mxu0  ;;  %v564_v37 = vpop.f32.mrb[4].mxu1 }
 0x314   :  { %v568_v38 = vadd.f32 %v1446_v31, %v493_v36  ;;  %v495_v39 = vpop.f32.mrb[5].mxu0  ;;  %v1722_v40 = vpop.f32.mrb[5].mxu1  ;;  %v582_v54 = vadd.f32 %v2625_v33, %v564_v37  ;;  %v1454_v37 = vld [vmem:[%s2969_s0 + $0x58] sm:$0xff] }
 0x315   :  { %v575_v46 = vadd.f32 %v1447_v45, %v495_v39 }
 0x316   :  { %v1449_v42 = vmul.f32 -1.442695, %v568_v38 }
 0x317   :  { %v1450_v47 = vmul.f32 -1.442695, %v575_v46 }
 0x318   :  { %2372 = vpow2.f32 %v1449_v42 }
 0x319   :  { %2374 = vpow2.f32 %v1450_v47 }
 0x322   :  { %v2373_v48 = vpop.eup %2372 }
 0x323   :  { %v572_v49 = vadd.f32 1.0, %v2373_v48  ;;  %v2375_v51 = vpop.eup %2374 }
 0x324   :  { %v579_v60 = vadd.f32 1.0, %v2375_v51 }
 0x325   :  { %2376 = vrcp.f32 %v572_v49  ;;  %v1458_v49 = vld [vmem:[%s2969_s0 + $0x60] sm:$0xff] }
 0x32f   :  { %v2377_v55 = vpop.eup %2376 }
 0x330   :  { %v583_v57 = vmul.f32 %v2377_v55, %v582_v54 }
 0x332   :  { %v584_v58 = vadd.f32 %v1448_v56, %v583_v57 }
 0x334   :  { %2378 = vtanh.f32 %v584_v58 }
 0x335   :  { %2380 = vrcp.f32 %v579_v60  ;;  %v1459_v60 = vld [vmem:[%s2969_s0 + $0x68] sm:$0xff] }
 0x33e   :  { %v2379_v63 = vpop.eup %2378 }
 0x33f   :  { %v586_v2 = vsub.f32 %v2685_v30, %v2379_v63  ;;  %v2381_v3 = vpop.eup %2380 }
 0x341   :  { %v587_v7 = vmul.f32 %v2381_v3, %v586_v2 }
 0x343   :  { %v2739_v8 = vadd.f32 %v2379_v63, %v587_v7 }
 0x345   :  { %1451 = vst [vmem:[%s2972_s3 + $0x10] sm:$0xff] %v2739_v8  ;;  %660 = vmatmul.mubr.f32.vlgmr.msra.gmra.mrb[6].mxu0 %v2739_v8  ;;  %1756 = vmatmul.mubr.f32.vlgmr.msra.gmra.mrb[6].mxu1 %v2739_v8 }
 0x346   :  { %2125 = vmatpush1.bf16.msra.mxu0 %v2500_v9  ;;  %2156 = vmatpush3.bf16.msra.mxu1 %v2517_v29 }
 0x347   :  { %2127 = vmatprep.subr.bf16.mxu0 %v2502_v10  ;;  %2157 = vmatprep.subr.bf16.mxu1 %v2459_v0 }
 0x348   :  { %827 = vmatprep.mubr.f32.mxu0 %v2460_v1  ;;  %1790 = vmatprep.mubr.msk.f32.mxu1 %vm2461_vm0, %v2460_v1 }
 0x34a   :  { %2129 = vmatpush1.bf16.msra.mxu0 %v2506_v15  ;;  %2159 = vmatpush3.bf16.msra.mxu1 %v2523_v34 }
 0x34b   :  { %2131 = vmatprep.subr.bf16.mxu0 %v2509_v16  ;;  %2160 = vmatprep.subr.bf16.mxu1 %v2459_v0 }
 0x34e   :  { %2133 = vmatpush1.bf16.msra.mxu0 %v2512_v21  ;;  %2162 = vmatpush3.bf16.msra.mxu1 %v2533_v43 }
 0x34f   :  { %2135 = vmatprep.subr.bf16.mxu0 %v2515_v23  ;;  %2163 = vmatprep.subr.bf16.mxu1 %v2459_v0 }
 0x352   :  { %2137 = vmatpush1.bf16.msra.mxu0 %v2520_v32  ;;  %2165 = vmatpush3.bf16.msra.mxu1 %v2543_v52 }
 0x353   :  { %2139 = vmatprep.subr.bf16.mxu0 %v2526_v35  ;;  %2166 = vmatprep.subr.bf16.mxu1 %v2459_v0 }
 0x356   :  { %2141 = vmatpush1.bf16.msra.mxu0 %v2530_v41  ;;  %2168 = vmatpush3.bf16.msra.mxu1 %v2553_v61 }
 0x357   :  { %2143 = vmatprep.subr.bf16.mxu0 %v2536_v44  ;;  %2169 = vmatprep.subr.bf16.mxu1 %v2459_v0 }
 0x35a   :  { %2145 = vmatpush1.bf16.msra.mxu0 %v2540_v50  ;;  %2171 = vmatpush3.bf16.msra.mxu1 %v2563_v6 }
 0x35b   :  { %2147 = vmatprep.subr.bf16.mxu0 %v2546_v53  ;;  %2172 = vmatprep.subr.bf16.mxu1 %v2459_v0 }
 0x35e   :  { %2149 = vmatpush1.bf16.msra.mxu0 %v2550_v59  ;;  %2174 = vmatpush3.bf16.msra.mxu1 %v2569_v11 }
 0x35f   :  { %2151 = vmatprep.subr.bf16.mxu0 %v2556_v62  ;;  %2175 = vmatprep.subr.bf16.mxu1 %v2459_v0 }
 0x362   :  { %2153 = vmatpush1.bf16.msra.mxu0 %v2560_v4  ;;  %2177 = vmatpush3.bf16.msra.mxu1 %v2575_v14 }
 0x363   :  { %2179 = vmatprep.subr.bf16.mxu0 %v2498_v5  ;;  %2210 = vmatprep.subr.bf16.mxu1 %v2459_v0 }
 0x418   :  { %v661_v13 = vpop.f32.mrb[6].mxu0  ;;  %v732_v17 = vpop.f32.mrb[6].mxu1 }
 0x419   :  { %v736_v18 = vadd.f32 %v1452_v12, %v661_v13  ;;  %v663_v19 = vpop.f32.mrb[7].mxu0  ;;  %v1757_v20 = vpop.f32.mrb[7].mxu1  ;;  %v750_v31 = vadd.f32 %v2625_v33, %v732_v17  ;;  %v1460_v17 = vld [vmem:[%s2969_s0 + $0x70] sm:$0xff] }
 0x41a   :  { %v743_v25 = vadd.f32 %v1453_v24, %v663_v19 }
 0x41b   :  { %v1455_v22 = vmul.f32 -1.442695, %v736_v18 }
 0x41c   :  { %v1456_v26 = vmul.f32 -1.442695, %v743_v25 }
 0x41d   :  { %2382 = vpow2.f32 %v1455_v22 }
 0x41e   :  { %2384 = vpow2.f32 %v1456_v26 }
 0x427   :  { %v2383_v27 = vpop.eup %2382 }
 0x428   :  { %v740_v28 = vadd.f32 1.0, %v2383_v27  ;;  %v2385_v30 = vpop.eup %2384 }
 0x429   :  { %v747_v40 = vadd.f32 1.0, %v2385_v30 }
 0x42a   :  { %2386 = vrcp.f32 %v740_v28  ;;  %v1464_v28 = vld [vmem:[%s2969_s0 + $0x78] sm:$0xff] }
 0x434   :  { %v2387_v36 = vpop.eup %2386 }
 0x435   :  { %v751_v38 = vmul.f32 %v2387_v36, %v750_v31 }
 0x437   :  { %v752_v39 = vadd.f32 %v1454_v37, %v751_v38 }
 0x439   :  { %2388 = vtanh.f32 %v752_v39 }
 0x43a   :  { %2390 = vrcp.f32 %v747_v40  ;;  %v1465_v40 = vld [vmem:[%s2969_s0 + $0x80] sm:$0xff] }
 0x443   :  { %v2389_v42 = vpop.eup %2388 }
 0x444   :  { %v754_v45 = vsub.f32 %v2739_v8, %v2389_v42  ;;  %v2391_v46 = vpop.eup %2390 }
 0x446   :  { %v755_v47 = vmul.f32 %v2391_v46, %v754_v45 }
 0x448   :  { %v2793_v48 = vadd.f32 %v2389_v42, %v755_v47 }
 0x44a   :  { %1457 = vst [vmem:[%s2972_s3 + $0x18] sm:$0xff] %v2793_v48  ;;  %828 = vmatmul.mubr.f32.vlgmr.msra.gmra.mrb[8].mxu0 %v2793_v48  ;;  %1791 = vmatmul.mubr.f32.vlgmr.msra.gmra.mrb[8].mxu1 %v2793_v48 }
 0x44b   :  { %2181 = vmatpush1.bf16.msra.mxu0 %v2500_v9  ;;  %2212 = vmatpush3.bf16.msra.mxu1 %v2517_v29 }
 0x44c   :  { %2183 = vmatprep.subr.bf16.mxu0 %v2502_v10  ;;  %2213 = vmatprep.subr.bf16.mxu1 %v2459_v0 }
 0x44d   :  { %995 = vmatprep.mubr.f32.mxu0 %v2460_v1  ;;  %1825 = vmatprep.mubr.msk.f32.mxu1 %vm2461_vm0, %v2460_v1 }
 0x44f   :  { %2185 = vmatpush1.bf16.msra.mxu0 %v2506_v15  ;;  %2215 = vmatpush3.bf16.msra.mxu1 %v2523_v34 }
 0x450   :  { %2187 = vmatprep.subr.bf16.mxu0 %v2509_v16  ;;  %2216 = vmatprep.subr.bf16.mxu1 %v2459_v0 }
 0x453   :  { %2189 = vmatpush1.bf16.msra.mxu0 %v2512_v21  ;;  %2218 = vmatpush3.bf16.msra.mxu1 %v2533_v43 }
 0x454   :  { %2191 = vmatprep.subr.bf16.mxu0 %v2515_v23  ;;  %2219 = vmatprep.subr.bf16.mxu1 %v2459_v0 }
 0x457   :  { %2193 = vmatpush1.bf16.msra.mxu0 %v2520_v32  ;;  %2221 = vmatpush3.bf16.msra.mxu1 %v2543_v52 }
 0x458   :  { %2195 = vmatprep.subr.bf16.mxu0 %v2526_v35  ;;  %2222 = vmatprep.subr.bf16.mxu1 %v2459_v0 }
 0x45b   :  { %2197 = vmatpush1.bf16.msra.mxu0 %v2530_v41  ;;  %2224 = vmatpush3.bf16.msra.mxu1 %v2553_v61 }
 0x45c   :  { %2199 = vmatprep.subr.bf16.mxu0 %v2536_v44  ;;  %2225 = vmatprep.subr.bf16.mxu1 %v2459_v0 }
 0x45f   :  { %2201 = vmatpush1.bf16.msra.mxu0 %v2540_v50  ;;  %2227 = vmatpush3.bf16.msra.mxu1 %v2563_v6 }
 0x460   :  { %2203 = vmatprep.subr.bf16.mxu0 %v2546_v53  ;;  %2228 = vmatprep.subr.bf16.mxu1 %v2459_v0 }
 0x463   :  { %2205 = vmatpush1.bf16.msra.mxu0 %v2550_v59  ;;  %2230 = vmatpush3.bf16.msra.mxu1 %v2569_v11 }
 0x464   :  { %2207 = vmatprep.subr.bf16.mxu0 %v2556_v62  ;;  %2231 = vmatprep.subr.bf16.mxu1 %v2459_v0 }
 0x467   :  { %2209 = vmatpush1.bf16.msra.mxu0 %v2560_v4  ;;  %2233 = vmatpush3.bf16.msra.mxu1 %v2575_v14 }
 0x468   :  { %2235 = vmatprep.subr.bf16.mxu0 %v2498_v5  ;;  %2266 = vmatprep.subr.bf16.mxu1 %v2459_v0 }
 0x51d   :  { %v829_v51 = vpop.f32.mrb[8].mxu0  ;;  %v900_v54 = vpop.f32.mrb[8].mxu1 }
 0x51e   :  { %v904_v55 = vadd.f32 %v1458_v49, %v829_v51  ;;  %v831_v56 = vpop.f32.mrb[9].mxu0  ;;  %v1792_v57 = vpop.f32.mrb[9].mxu1  ;;  %v918_v12 = vadd.f32 %v2625_v33, %v900_v54  ;;  %v1466_v51 = vld [vmem:[%s2969_s0 + $0x88] sm:$0xff] }
 0x51f   :  { %v911_v63 = vadd.f32 %v1459_v60, %v831_v56 }
 0x520   :  { %v1461_v58 = vmul.f32 -1.442695, %v904_v55 }
 0x521   :  { %v1462_v2 = vmul.f32 -1.442695, %v911_v63 }
 0x522   :  { %2392 = vpow2.f32 %v1461_v58 }
 0x523   :  { %2394 = vpow2.f32 %v1462_v2 }
 0x52c   :  { %v2393_v3 = vpop.eup %2392 }
 0x52d   :  { %v908_v7 = vadd.f32 1.0, %v2393_v3  ;;  %v2395_v8 = vpop.eup %2394 }
 0x52e   :  { %v915_v20 = vadd.f32 1.0, %v2395_v8 }
 0x52f   :  { %2396 = vrcp.f32 %v908_v7 }
 0x539   :  { %v2397_v13 = vpop.eup %2396 }
 0x53a   :  { %v919_v18 = vmul.f32 %v2397_v13, %v918_v12 }
 0x53c   :  { %v920_v19 = vadd.f32 %v1460_v17, %v919_v18  ;;  %v1477_v18 = vld [vmem:[%s2969_s0 + $0xb0] sm:$0xff] }
 0x53e   :  { %2398 = vtanh.f32 %v920_v19 }
 0x53f   :  { %2400 = vrcp.f32 %v915_v20 }
 0x548   :  { %v2399_v22 = vpop.eup %2398 }
 0x549   :  { %v922_v24 = vsub.f32 %v2793_v48, %v2399_v22  ;;  %v2401_v25 = vpop.eup %2400 }
 0x54b   :  { %v923_v26 = vmul.f32 %v2401_v25, %v922_v24 }
 0x54d   :  { %v2847_v27 = vadd.f32 %v2399_v22, %v923_v26 }
 0x54f   :  { %1463 = vst [vmem:[%s2972_s3 + $0x20] sm:$0xff] %v2847_v27  ;;  %996 = vmatmul.mubr.f32.vlgmr.msra.gmra.mrb[10].mxu0 %v2847_v27  ;;  %1826 = vmatmul.mubr.f32.vlgmr.msra.gmra.mrb[10].mxu1 %v2847_v27 }
 0x550   :  { %2237 = vmatpush1.bf16.msra.mxu0 %v2500_v9  ;;  %2268 = vmatpush3.bf16.msra.mxu1 %v2517_v29 }
 0x551   :  { %2239 = vmatprep.subr.bf16.mxu0 %v2502_v10  ;;  %2269 = vmatprep.subr.bf16.mxu1 %v2459_v0 }
 0x552   :  { %1163 = vmatprep.mubr.f32.mxu0 %v2460_v1  ;;  %1860 = vmatprep.mubr.msk.f32.mxu1 %vm2461_vm0, %v2460_v1 }
 0x554   :  { %2241 = vmatpush1.bf16.msra.mxu0 %v2506_v15  ;;  %2271 = vmatpush3.bf16.msra.mxu1 %v2523_v34 }
 0x555   :  { %2243 = vmatprep.subr.bf16.mxu0 %v2509_v16  ;;  %2272 = vmatprep.subr.bf16.mxu1 %v2459_v0 }
 0x558   :  { %2245 = vmatpush1.bf16.msra.mxu0 %v2512_v21  ;;  %2274 = vmatpush3.bf16.msra.mxu1 %v2533_v43 }
 0x559   :  { %2247 = vmatprep.subr.bf16.mxu0 %v2515_v23  ;;  %2275 = vmatprep.subr.bf16.mxu1 %v2459_v0 }
 0x55c   :  { %2249 = vmatpush1.bf16.msra.mxu0 %v2520_v32  ;;  %2277 = vmatpush3.bf16.msra.mxu1 %v2543_v52 }
 0x55d   :  { %2251 = vmatprep.subr.bf16.mxu0 %v2526_v35  ;;  %2278 = vmatprep.subr.bf16.mxu1 %v2459_v0 }
 0x560   :  { %2253 = vmatpush1.bf16.msra.mxu0 %v2530_v41  ;;  %2280 = vmatpush3.bf16.msra.mxu1 %v2553_v61 }
 0x561   :  { %2255 = vmatprep.subr.bf16.mxu0 %v2536_v44  ;;  %2281 = vmatprep.subr.bf16.mxu1 %v2459_v0 }
 0x564   :  { %2257 = vmatpush1.bf16.msra.mxu0 %v2540_v50  ;;  %2283 = vmatpush3.bf16.msra.mxu1 %v2563_v6 }
 0x565   :  { %2259 = vmatprep.subr.bf16.mxu0 %v2546_v53  ;;  %2284 = vmatprep.subr.bf16.mxu1 %v2459_v0 }
 0x568   :  { %2261 = vmatpush1.bf16.msra.mxu0 %v2550_v59  ;;  %2286 = vmatpush3.bf16.msra.mxu1 %v2569_v11 }
 0x569   :  { %2263 = vmatprep.subr.bf16.mxu0 %v2556_v62  ;;  %2287 = vmatprep.subr.bf16.mxu1 %v2459_v0 }
 0x56c   :  { %2265 = vmatpush1.bf16.msra.mxu0 %v2560_v4  ;;  %2289 = vmatpush3.bf16.msra.mxu1 %v2575_v14 }
 0x56d   :  { %2291 = vmatprep.subr.bf16.mxu0 %v2498_v5  ;;  %2322 = vmatprep.subr.bf16.mxu1 %v2459_v0 }
 0x622   :  { %v997_v30 = vpop.f32.mrb[10].mxu0  ;;  %v1068_v31 = vpop.f32.mrb[10].mxu1 }
 0x623   :  { %v1072_v36 = vadd.f32 %v1464_v28, %v997_v30  ;;  %v999_v37 = vpop.f32.mrb[11].mxu0  ;;  %v1827_v38 = vpop.f32.mrb[11].mxu1  ;;  %v1086_v48 = vadd.f32 %v2625_v33, %v1068_v31  ;;  %v1478_v28 = vld [vmem:[%s2969_s0 + $0xb8] sm:$0xff] }
 0x624   :  { %v1079_v42 = vadd.f32 %v1465_v40, %v999_v37 }
 0x625   :  { %v1467_v39 = vmul.f32 -1.442695, %v1072_v36 }
 0x626   :  { %v1468_v45 = vmul.f32 -1.442695, %v1079_v42 }
 0x627   :  { %2402 = vpow2.f32 %v1467_v39 }
 0x628   :  { %2404 = vpow2.f32 %v1468_v45 }
 0x631   :  { %v2403_v5 = vpop.eup %2402 }
 0x632   :  { %v1076_v46 = vadd.f32 1.0, %v2403_v5  ;;  %v2405_v47 = vpop.eup %2404 }
 0x633   :  { %v1083_v56 = vadd.f32 1.0, %v2405_v47 }
 0x634   :  { %2406 = vrcp.f32 %v1076_v46 }
 0x63e   :  { %v2407_v49 = vpop.eup %2406 }
 0x63f   :  { %v1087_v54 = vmul.f32 %v2407_v49, %v1086_v48 }
 0x641   :  { %v1088_v55 = vadd.f32 %v1466_v51, %v1087_v54 }
 0x643   :  { %2408 = vtanh.f32 %v1088_v55 }
 0x644   :  { %2410 = vrcp.f32 %v1083_v56 }
 0x64d   :  { %v2409_v57 = vpop.eup %2408 }
 0x64e   :  { %v1090_v58 = vsub.f32 %v2847_v27, %v2409_v57  ;;  %v2411_v60 = vpop.eup %2410 }
 0x650   :  { %v1091_v63 = vmul.f32 %v2411_v60, %v1090_v58 }
 0x652   :  { %v2901_v2 = vadd.f32 %v2409_v57, %v1091_v63 }
 0x654   :  { %1469 = vst [vmem:[%s2972_s3 + $0x28] sm:$0xff] %v2901_v2  ;;  %1164 = vmatmul.mubr.f32.vlgmr.msra.gmra.mrb[12].mxu0 %v2901_v2  ;;  %1861 = vmatmul.mubr.f32.vlgmr.msra.gmra.mrb[12].mxu1 %v2901_v2 }
 0x655   :  { %2293 = vmatpush1.bf16.msra.mxu0 %v2500_v9  ;;  %2324 = vmatpush3.bf16.msra.mxu1 %v2517_v29  ;;  %v1471_v29 = vld [vmem:[%s2969_s0 + $0x98] sm:$0xff] }
 0x656   :  { %2295 = vmatprep.subr.bf16.mxu0 %v2502_v10  ;;  %2325 = vmatprep.subr.bf16.mxu1 %v2459_v0 }
 0x657   :  { %1331 = vmatprep.mubr.f32.mxu0 %v2460_v1  ;;  %1895 = vmatprep.mubr.msk.f32.mxu1 %vm2461_vm0, %v2460_v1  ;;  %v1470_v1 = vld [vmem:[%s2969_s0 + $0x90] sm:$0xff] }
 0x659   :  { %2297 = vmatpush1.bf16.msra.mxu0 %v2506_v15  ;;  %2327 = vmatpush3.bf16.msra.mxu1 %v2523_v34 }
 0x65a   :  { %2299 = vmatprep.subr.bf16.mxu0 %v2509_v16  ;;  %2328 = vmatprep.subr.bf16.mxu1 %v2459_v0 }
 0x65d   :  { %2301 = vmatpush1.bf16.msra.mxu0 %v2512_v21  ;;  %2330 = vmatpush3.bf16.msra.mxu1 %v2533_v43 }
 0x65e   :  { %2303 = vmatprep.subr.bf16.mxu0 %v2515_v23  ;;  %2331 = vmatprep.subr.bf16.mxu1 %v2459_v0 }
 0x661   :  { %2305 = vmatpush1.bf16.msra.mxu0 %v2520_v32  ;;  %2333 = vmatpush3.bf16.msra.mxu1 %v2543_v52 }
 0x662   :  { %2307 = vmatprep.subr.bf16.mxu0 %v2526_v35  ;;  %2334 = vmatprep.subr.bf16.mxu1 %v2459_v0 }
 0x665   :  { %2309 = vmatpush1.bf16.msra.mxu0 %v2530_v41  ;;  %2336 = vmatpush3.bf16.msra.mxu1 %v2553_v61 }
 0x666   :  { %2311 = vmatprep.subr.bf16.mxu0 %v2536_v44  ;;  %2337 = vmatprep.subr.bf16.mxu1 %v2459_v0 }
 0x669   :  { %2313 = vmatpush1.bf16.msra.mxu0 %v2540_v50  ;;  %2339 = vmatpush3.bf16.msra.mxu1 %v2563_v6  ;;  %v1472_v50 = vld [vmem:[%s2969_s0 + $0xa0] sm:$0xff] }
 0x66a   :  { %2315 = vmatprep.subr.bf16.mxu0 %v2546_v53  ;;  %2340 = vmatprep.subr.bf16.mxu1 %v2459_v0 }
 0x66d   :  { %2317 = vmatpush1.bf16.msra.mxu0 %v2550_v59  ;;  %2342 = vmatpush3.bf16.msra.mxu1 %v2569_v11 }
 0x66e   :  { %2319 = vmatprep.subr.bf16.mxu0 %v2556_v62  ;;  %2343 = vmatprep.subr.bf16.mxu1 %v2459_v0 }
 0x671   :  { %2321 = vmatpush1.bf16.msra.mxu0 %v2560_v4  ;;  %2345 = vmatpush3.bf16.msra.mxu1 %v2575_v14  ;;  %v1476_v14 = vld [vmem:[%s2969_s0 + $0xa8] sm:$0xff] }
 0x727   :  { %v1165_v9 = vpop.f32.mrb[12].mxu0  ;;  %v1236_v10 = vpop.f32.mrb[12].mxu1 }
 0x728   :  { %v1240_v15 = vadd.f32 %v1470_v1, %v1165_v9  ;;  %v1167_v16 = vpop.f32.mrb[13].mxu0  ;;  %v1862_v21 = vpop.f32.mrb[13].mxu1  ;;  %v1254_v43 = vadd.f32 %v2625_v33, %v1236_v10 }
 0x729   :  { %v1247_v0 = vadd.f32 %v1471_v29, %v1167_v16 }
 0x72a   :  { %v1473_v23 = vmul.f32 -1.442695, %v1240_v15 }
 0x72b   :  { %v1474_v32 = vmul.f32 -1.442695, %v1247_v0 }
 0x72c   :  { %2412 = vpow2.f32 %v1473_v23 }
 0x72d   :  { %2414 = vpow2.f32 %v1474_v32 }
 0x736   :  { %v2413_v34 = vpop.eup %2412 }
 0x737   :  { %v1244_v35 = vadd.f32 1.0, %v2413_v34  ;;  %v2415_v41 = vpop.eup %2414 }
 0x738   :  { %v1251_v59 = vadd.f32 1.0, %v2415_v41 }
 0x739   :  { %2416 = vrcp.f32 %v1244_v35 }
 0x743   :  { %v2417_v44 = vpop.eup %2416 }
 0x744   :  { %v1255_v52 = vmul.f32 %v2417_v44, %v1254_v43 }
 0x746   :  { %v1256_v53 = vadd.f32 %v1472_v50, %v1255_v52 }
 0x748   :  { %2418 = vtanh.f32 %v1256_v53 }
 0x749   :  { %2420 = vrcp.f32 %v1251_v59 }
 0x752   :  { %v2419_v61 = vpop.eup %2418 }
 0x753   :  { %v1258_v62 = vsub.f32 %v2901_v2, %v2419_v61  ;;  %v2421_v4 = vpop.eup %2420 }
 0x755   :  { %v1259_v6 = vmul.f32 %v2421_v4, %v1258_v62 }
 0x757   :  { %v1260_v11 = vadd.f32 %v2419_v61, %v1259_v6 }
 0x759   :  { %1475 = vst [vmem:[%s2972_s3 + $0x30] sm:$0xff] %v1260_v11  ;;  %1332 = vmatmul.mubr.f32.vlgmr.msra.gmra.mrb[14].mxu0 %v1260_v11  ;;  %1896 = vmatmul.mubr.f32.vlgmr.msra.gmra.mrb[14].mxu1 %v1260_v11 }
 0x82c   :  { %v1333_v3 = vpop.f32.mrb[14].mxu0  ;;  %v1404_v7 = vpop.f32.mrb[14].mxu1 }
 0x82d   :  { %v1408_v8 = vadd.f32 %v1476_v14, %v1333_v3  ;;  %v1335_v12 = vpop.f32.mrb[15].mxu0  ;;  %v1897_v13 = vpop.f32.mrb[15].mxu1  ;;  %v1422_v26 = vadd.f32 %v2625_v33, %v1404_v7 }
 0x82e   :  { %v1415_v19 = vadd.f32 %v1477_v18, %v1335_v12 }
 0x82f   :  { %v1479_v17 = vmul.f32 -1.442695, %v1408_v8 }
 0x830   :  { %v1480_v20 = vmul.f32 -1.442695, %v1415_v19 }
 0x831   :  { %2422 = vpow2.f32 %v1479_v17 }
 0x832   :  { %2424 = vpow2.f32 %v1480_v20 }
 0x83b   :  { %v2423_v22 = vpop.eup %2422 }
 0x83c   :  { %v1412_v24 = vadd.f32 1.0, %v2423_v22  ;;  %v2425_v25 = vpop.eup %2424 }
 0x83d   :  { %v1419_v36 = vadd.f32 1.0, %v2425_v25 }
 0x83e   :  { %2426 = vrcp.f32 %v1412_v24 }
 0x848   :  { %v2427_v27 = vpop.eup %2426 }
 0x849   :  { %v1423_v30 = vmul.f32 %v2427_v27, %v1422_v26 }
 0x84b   :  { %v1424_v31 = vadd.f32 %v1478_v28, %v1423_v30 }
 0x84d   :  { %2428 = vtanh.f32 %v1424_v31 }
 0x84e   :  { %2430 = vrcp.f32 %v1419_v36 }
 0x857   :  { %v2429_v37 = vpop.eup %2428 }
 0x858   :  { %v1426_v38 = vsub.f32 %v1260_v11, %v2429_v37  ;;  %v2431_v39 = vpop.eup %2430 }
 0x85a   :  { %v1427_v40 = vmul.f32 %v2431_v39, %v1426_v38 }
 0x85c   :  { %v1428_v42 = vadd.f32 %v2429_v37, %v1427_v40 }
 0x85e   :  { %1481 = vst [vmem:[%s2972_s3 + $0x38] sm:$0xff] %v1428_v42 }
 0x85f   :  { %1436 = vsyncpa [#allocation4], 1 }

</bundles_post_ra>
